<compile_context>
chip_gen: v7x
topology: tpu7x:2x2x1
jax: 0.10.0
libtpu: 0.0.40
codegen_flags: <defaults>
</compile_context>

<pallas_src>
import functools

import jax
import jax.numpy as jnp
from jax.experimental import pallas as pl
from jax.experimental.pallas import tpu as pltpu


# ----------------------------------------------------------------------------
# Pallas kernels: matmul + bias with fused epilogues
# ----------------------------------------------------------------------------
def _mm_bias_kernel(x_ref, w_ref, b_ref, o_ref):
    acc = jnp.dot(x_ref[...], w_ref[...], preferred_element_type=jnp.float32)
    o_ref[...] = acc + b_ref[...]


def _mm_bias_relu_add_kernel(x_ref, w_ref, b_ref, r_ref, o_ref):
    acc = jnp.dot(x_ref[...], w_ref[...], preferred_element_type=jnp.float32)
    o_ref[...] = jnp.maximum(acc + b_ref[...], 0.0) + r_ref[...]


def _mm_bias_tanh_kernel(x_ref, w_ref, b_ref, o_ref):
    acc = jnp.dot(x_ref[...], w_ref[...], preferred_element_type=jnp.float32)
    o_ref[...] = jnp.tanh(acc + b_ref[...])


_KERNELS = {
    "none": _mm_bias_kernel,
    "relu_add": _mm_bias_relu_add_kernel,
    "tanh": _mm_bias_tanh_kernel,
}


def pallas_mm(x, w, b, resid=None, epilogue="none", row_split=2):
    """out = epilogue(x @ w + b [, + resid]) with an optional row-parallel grid.

    Rows (M) are split into `row_split` blocks when M is large enough, marked
    "parallel" so v7x's two TensorCores can each take a block; on single-core
    chips this is just one extra (cheap) grid step.  All operands are whole
    tiles in VMEM (every operand here is far below the VMEM budget).
    """
    M, K = x.shape
    N = w.shape[1]
    if M >= 256 and M % (8 * row_split) == 0:
        nblk, tm = row_split, M // row_split
    else:
        nblk, tm = 1, M

    def row_spec(n_cols):
        return pl.BlockSpec((tm, n_cols), lambda i: (i, 0))

    def full_spec(shape):
        return pl.BlockSpec(shape, lambda i: (0, 0))

    in_specs = [row_spec(K), full_spec((K, N)), full_spec((1, N))]
    args = [x, w, b.reshape(1, N)]
    if epilogue == "relu_add":
        in_specs.append(row_spec(N))
        args.append(resid)

    return pl.pallas_call(
        _KERNELS[epilogue],
        out_shape=jax.ShapeDtypeStruct((M, N), jnp.float32),
        grid=(nblk,),
        in_specs=in_specs,
        out_specs=row_spec(N),
        compiler_params=pltpu.CompilerParams(
            dimension_semantics=("parallel",)),
    )(*args)


# ----------------------------------------------------------------------------
# JAX glue: ConvTranspose2d(k=4, s=2, p=1) -> im2col patches of the
# interior-padded input (transposed conv == conv with the flipped kernel).
# ----------------------------------------------------------------------------
def conv_transpose_patches(x_nhwc, K=4, stride=2, pad=1):
    B, H, W, C = x_nhwc.shape
    pp = K - 1 - pad
    cfg = ((0, 0, 0), (pp, pp, stride - 1), (pp, pp, stride - 1), (0, 0, 0))
    xp = jax.lax.pad(x_nhwc, jnp.array(0.0, x_nhwc.dtype), cfg)
    Hout = (H - 1) * stride - 2 * pad + K
    Wout = (W - 1) * stride - 2 * pad + K
    patches = jnp.concatenate(
        [xp[:, kh:kh + Hout, kw:kw + Wout, :] for kh in range(K) for kw in range(K)],
        axis=-1,
    )  # (B, Hout, Wout, K*K*C); patch column = (kh*K + kw)*C + ci
    return patches.reshape(B * Hout * Wout, K * K * C), Hout


def deconv_weight_matrix(w):
    """PyTorch ConvTranspose2d weight (Cin, Cout, K, K) -> (K*K*Cin, Cout)
    with spatially flipped taps, matching the patch layout above."""
    Cin, Cout, K, _ = w.shape
    wf = w[:, :, ::-1, ::-1]
    return jnp.transpose(wf, (2, 3, 0, 1)).reshape(K * K * Cin, Cout)


# ----------------------------------------------------------------------------
# One-time parameter preprocessing (fusion / layout) — outside the hot path
# ----------------------------------------------------------------------------
def prepare_params(p, out_channels, ch, latent_dims, cond_dims):
    def fc_nhwc(w, b, C, H):
        # torch Linear weight (C*H*H, in) / bias (C*H*H,), outputs NCHW-flat.
        # Reorder output features to NHWC-flat: (in, H*H*C), (H*H*C,).
        din = w.shape[1]
        wt = w.T.reshape(din, C, H, H).transpose(0, 2, 3, 1).reshape(din, H * H * C)
        bt = b.reshape(C, H, H).transpose(1, 2, 0).reshape(H * H * C)
        return wt, bt

    segs = [
        fc_nhwc(p['fc1_w'], p['fc1_b'], ch[3], 4),
        fc_nhwc(p['fc2_w'], p['fc2_b'], ch[2], 8),
        fc_nhwc(p['fc3_w'], p['fc3_b'], ch[1], 16),
        fc_nhwc(p['fcc1_w'], p['fcc1_b'], ch[3], 4),
        fc_nhwc(p['fcc2_w'], p['fcc2_b'], ch[2], 8),
    ]
    d_in = [latent_dims[0], latent_dims[1], latent_dims[2],
            cond_dims[0], cond_dims[1]]
    n_in = sum(d_in)
    n_out = sum(w.shape[1] for w, _ in segs)

    # Block-diagonal fused FC weight: one matmul replaces 5 Linear layers.
    fc_w = jnp.zeros((n_in, n_out), jnp.float32)
    r = c = 0
    for din, (w, _) in zip(d_in, segs):
        fc_w = fc_w.at[r:r + din, c:c + w.shape[1]].set(w)
        r += din
        c += w.shape[1]
    fc_b = jnp.concatenate([b for _, b in segs])

    # Fold the 1x1 out_conv into deconv3 (exact: tanh(OC(DC3(x)))).
    oc = p['oc_w'][:, :, 0, 0]                              # (out_ch, ch0)
    dc3_w = jnp.einsum('ickl,oc->iokl', p['dc3_w'], oc)     # (ch1, out_ch, K, K)
    dc3_b = oc @ p['dc3_b'] + p['oc_b']

    return {
        'fc_w': fc_w, 'fc_b': fc_b,
        'dc1_w': deconv_weight_matrix(p['dc1_w']), 'dc1_b': p['dc1_b'],
        'dc2_w': deconv_weight_matrix(p['dc2_w']), 'dc2_b': p['dc2_b'],
        'dc3_w': deconv_weight_matrix(dc3_w),      'dc3_b': dc3_b,
    }


# ----------------------------------------------------------------------------
# Full decoder forward: 4 pallas_calls + fused XLA glue
# ----------------------------------------------------------------------------
@functools.partial(jax.jit, static_argnames=("ch",))
def decoder_forward(pp, z1, z2, z3, c1, c2, *, ch):
    B = z1.shape[0]

    # ---- all 5 fully-connected layers: one fused, lane-dense matmul --------
    zin = jnp.concatenate([z1, z2, z3, c1, c2], axis=1)
    fc = pallas_mm(zin, pp['fc_w'], pp['fc_b'])              # (B, sum_out) NHWC-flat segments

    s1, s2, s3 = ch[3] * 16, ch[2] * 64, ch[1] * 256
    o2, o3, o4, o5 = s1, s1 + s2, s1 + s2 + s3, s1 + s2 + s3 + s1
    z1v = fc[:, :s1].reshape(B, 4, 4, ch[3])                 # NHWC
    z2r = fc[:, o2:o2 + s2].reshape(B * 8 * 8, ch[2])        # residual, pixel rows
    z3r = fc[:, o3:o3 + s3].reshape(B * 16 * 16, ch[1])
    c1v = fc[:, o4:o4 + s1].reshape(B, 4, 4, ch[3])
    c2v = fc[:, o5:o5 + s2].reshape(B, 8, 8, ch[2])

    # ---- deconv1 + ReLU + residual z2 (fused epilogue) ----------------------
    x1 = jnp.concatenate([z1v, c1v], axis=-1)                # (B, 4, 4, 2*ch3)
    pat1, H1 = conv_transpose_patches(x1)
    x2 = pallas_mm(pat1, pp['dc1_w'], pp['dc1_b'], resid=z2r, epilogue="relu_add")
    x2 = jnp.concatenate([x2.reshape(B, H1, H1, ch[2]), c2v], axis=-1)

    # ---- deconv2 + ReLU + residual z3 ---------------------------------------
    pat2, H2 = conv_transpose_patches(x2)
    x3 = pallas_mm(pat2, pp['dc2_w'], pp['dc2_b'], resid=z3r, epilogue="relu_add")
    x3 = x3.reshape(B, H2, H2, ch[1])

    # ---- deconv3 (+ folded 1x1 out_conv) + tanh -----------------------------
    pat3, H3 = conv_transpose_patches(x3)
    out = pallas_mm(pat3, pp['dc3_w'], pp['dc3_b'], epilogue="tanh")  # (B*32*32, out_ch)
    return out.reshape(B, H3, H3, -1).transpose(0, 3, 1, 2)           # NCHW


# ----------------------------------------------------------------------------
# Pure-JAX reference (independent NCHW scatter formulation of ConvTranspose2d)
# ----------------------------------------------------------------------------
def ref_deconv(x, w, b, s=2, p=1):
    B, Cin, H, W = x.shape
    Cout, K = w.shape[1], w.shape[2]
    Hout = (H - 1) * s - 2 * p + K
    Wout = (W - 1) * s - 2 * p + K
    full = jnp.zeros((B, Cout, (H - 1) * s + K, (W - 1) * s + K), x.dtype)
    for kh in range(K):
        for kw in range(K):
            contrib = jnp.einsum('bihw,io->bohw', x, w[:, :, kh, kw])
            full = full.at[:, :, kh:kh + (H - 1) * s + 1:s,
                           kw:kw + (W - 1) * s + 1:s].add(contrib)
    return full[:, :, p:p + Hout, p:p + Wout] + b[None, :, None, None]


def ref_forward(p, z1, z2, z3, c1, c2, ch):
    lin = lambda x, w, b: x @ w.T + b
    z1v = lin(z1, p['fc1_w'], p['fc1_b']).reshape(-1, ch[3], 4, 4)
    z2v = lin(z2, p['fc2_w'], p['fc2_b']).reshape(-1, ch[2], 8, 8)
    z3v = lin(z3, p['fc3_w'], p['fc3_b']).reshape(-1, ch[1], 16, 16)
    c1v = lin(c1, p['fcc1_w'], p['fcc1_b']).reshape(-1, ch[3], 4, 4)
    c2v = lin(c2, p['fcc2_w'], p['fcc2_b']).reshape(-1, ch[2], 8, 8)
    x1 = jnp.concatenate([z1v, c1v], axis=1)
    x2 = jax.nn.relu(ref_deconv(x1, p['dc1_w'], p['dc1_b'])) + z2v
    x2 = jnp.concatenate([x2, c2v], axis=1)
    x3 = jax.nn.relu(ref_deconv(x2, p['dc2_w'], p['dc2_b'])) + z3v
    x4 = ref_deconv(x3, p['dc3_w'], p['dc3_b'])
    out = jnp.einsum('bchw,oc->bohw', x4, p['oc_w'][:, :, 0, 0]) \
        + p['oc_b'][None, :, None, None]
    return jnp.tanh(out)


# ----------------------------------------------------------------------------
# Deterministic parameter init (PyTorch-layout shapes)
# ----------------------------------------------------------------------------
def init_params(key, out_channels, ch, latent_dims, cond_dims):
    ks = jax.random.split(key, 18)
    w = lambda k, s, scale=0.05: scale * jax.random.normal(k, s, jnp.float32)
    p = {}
    p['fc1_w'] = w(ks[0], (ch[3] * 16, latent_dims[0]));  p['fc1_b'] = w(ks[1], (ch[3] * 16,), 0.01)
    p['fc2_w'] = w(ks[2], (ch[2] * 64, latent_dims[1]));  p['fc2_b'] = w(ks[3], (ch[2] * 64,), 0.01)
    p['fc3_w'] = w(ks[4], (ch[1] * 256, latent_dims[2])); p['fc3_b'] = w(ks[5], (ch[1] * 256,), 0.01)
    p['fcc1_w'] = w(ks[6], (ch[3] * 16, cond_dims[0]));   p['fcc1_b'] = w(ks[7], (ch[3] * 16,), 0.01)
    p['fcc2_w'] = w(ks[8], (ch[2] * 64, cond_dims[1]));   p['fcc2_b'] = w(ks[9], (ch[2] * 64,), 0.01)
    p['dc1_w'] = w(ks[10], (ch[3] * 2, ch[2], 4, 4));     p['dc1_b'] = w(ks[11], (ch[2],), 0.01)
    p['dc2_w'] = w(ks[12], (ch[2] * 2, ch[1], 4, 4));     p['dc2_b'] = w(ks[13], (ch[1],), 0.01)
    p['dc3_w'] = w(ks[14], (ch[1], ch[0], 4, 4));         p['dc3_b'] = w(ks[15], (ch[0],), 0.01)
    p['oc_w'] = w(ks[16], (out_channels, ch[0], 1, 1));   p['oc_b'] = w(ks[17], (out_channels,), 0.01)
    return p


if __name__ == "__main__":
    B = 2
    out_channels = 3
    ch = (4, 8, 16, 32)            # channels[0..3]
    latent_dims = (16, 16, 16)
    cond_dims = (8, 8)

    root = jax.random.PRNGKey(0)
    kp, kz1, kz2, kz3, kc1, kc2 = jax.random.split(root, 6)
    params = init_params(kp, out_channels, ch, latent_dims, cond_dims)
    prepared = prepare_params(params, out_channels, ch, latent_dims, cond_dims)

    z1 = jax.random.normal(kz1, (B, latent_dims[0]), jnp.float32)
    z2 = jax.random.normal(kz2, (B, latent_dims[1]), jnp.float32)
    z3 = jax.random.normal(kz3, (B, latent_dims[2]), jnp.float32)
    c1 = jax.random.normal(kc1, (B, cond_dims[0]), jnp.float32)
    c2 = jax.random.normal(kc2, (B, cond_dims[1]), jnp.float32)

    out = decoder_forward(prepared, z1, z2, z3, c1, c2, ch=ch)
    out = jax.block_until_ready(out)

    ref = jax.block_until_ready(ref_forward(params, z1, z2, z3, c1, c2, ch))
    assert out.shape == (B, out_channels, 32, 32), out.shape
    assert bool(jnp.allclose(out, ref, atol=2e-4, rtol=2e-4)), \
        float(jnp.max(jnp.abs(out - ref)))

    print("KERNEL_OK")
</pallas_src>

<mosaic_0001>
module attributes {stable_mosaic.version = 11 : i64} {
  func.func @_mm_bias_kernel(%arg0: i32, %arg1: memref<2x64xf32, #tpu.memory_space<vmem>>, %arg2: memref<64x5120xf32, #tpu.memory_space<vmem>>, %arg3: memref<1x5120xf32, #tpu.memory_space<vmem>>, %arg4: memref<2x5120xf32, #tpu.memory_space<vmem>>) attributes {dimension_semantics = [#tpu.dimension_semantics<parallel>], iteration_bounds = array<i64: 1>, scalar_prefetch = 0 : i64, scratch_operands = 0 : i64, tpu.core_type = #tpu.core_type<tc>, window_params = [{transform_indices = @transform_0, window_bounds = array<i64: 2, 64>}, {pipeline_mode = #tpu.pipeline_mode<synchronous>, transform_indices = @transform_1, window_bounds = array<i64: 64, 5120>}, {pipeline_mode = #tpu.pipeline_mode<synchronous>, transform_indices = @transform_2, window_bounds = array<i64: 1, 5120>}, {transform_indices = @transform_3, window_bounds = array<i64: 2, 5120>}]} {
    %c0 = arith.constant 0 : index
    %c0_0 = arith.constant 0 : index
    %0 = vector.load %arg1[%c0, %c0_0] : memref<2x64xf32, #tpu.memory_space<vmem>>, vector<2x64xf32>
    %c0_1 = arith.constant 0 : index
    %c0_2 = arith.constant 0 : index
    %1 = vector.load %arg2[%c0_1, %c0_2] : memref<64x5120xf32, #tpu.memory_space<vmem>>, vector<64x5120xf32>
    %cst = arith.constant dense<0.000000e+00> : vector<2x5120xf32>
    %2 = tpu.matmul %0, %1, %cst {dimension_numbers = #tpu.dot_dimension_numbers<[1], [0], [0], [1], [0, 0, 1, 1], [], []>} : vector<2x64xf32>, vector<64x5120xf32>, vector<2x5120xf32> -> vector<2x5120xf32>
    %c0_3 = arith.constant 0 : index
    %c0_4 = arith.constant 0 : index
    %3 = vector.load %arg3[%c0_3, %c0_4] : memref<1x5120xf32, #tpu.memory_space<vmem>>, vector<1x5120xf32>
    %4 = vector.broadcast %3 : vector<1x5120xf32> to vector<2x5120xf32>
    %5 = arith.addf %2, %4 : vector<2x5120xf32>
    %c0_5 = arith.constant 0 : index
    %c0_6 = arith.constant 0 : index
    %6 = vector.load %arg4[%c0_5, %c0_6] : memref<2x5120xf32, #tpu.memory_space<vmem>>, vector<2x5120xf32>
    tpu.vector_store %arg4[%c0_5, %c0_6], %5 {strides = array<i32>} : memref<2x5120xf32, #tpu.memory_space<vmem>>, vector<2x5120xf32>,
    return
  }
  func.func @transform_0(%arg0: i32) -> (i32, i32) {
    %c0_i32 = arith.constant 0 : i32
    %c0_i32_0 = arith.constant 0 : i32
    return %arg0, %c0_i32 : i32, i32
  }
  func.func @transform_1(%arg0: i32) -> (i32, i32) {
    %c0_i32 = arith.constant 0 : i32
    %c0_i32_0 = arith.constant 0 : i32
    %c0_i32_1 = arith.constant 0 : i32
    return %c0_i32, %c0_i32_0 : i32, i32
  }
  func.func @transform_2(%arg0: i32) -> (i32, i32) {
    %c0_i32 = arith.constant 0 : i32
    %c0_i32_0 = arith.constant 0 : i32
    %c0_i32_1 = arith.constant 0 : i32
    return %c0_i32, %c0_i32_0 : i32, i32
  }
  func.func @transform_3(%arg0: i32) -> (i32, i32) {
    %c0_i32 = arith.constant 0 : i32
    %c0_i32_0 = arith.constant 0 : i32
    return %arg0, %c0_i32 : i32, i32
  }
}

module attributes {stable_mosaic.version = 11 : i64} {
  func.func @_mm_bias_relu_add_kernel(%arg0: i32, %arg1: memref<128x1024xf32, #tpu.memory_space<vmem>>, %arg2: memref<1024x16xf32, #tpu.memory_space<vmem>>, %arg3: memref<1x16xf32, #tpu.memory_space<vmem>>, %arg4: memref<128x16xf32, #tpu.memory_space<vmem>>, %arg5: memref<128x16xf32, #tpu.memory_space<vmem>>) attributes {dimension_semantics = [#tpu.dimension_semantics<parallel>], iteration_bounds = array<i64: 1>, scalar_prefetch = 0 : i64, scratch_operands = 0 : i64, tpu.core_type = #tpu.core_type<tc>, window_params = [{transform_indices = @transform_0, window_bounds = array<i64: 128, 1024>}, {pipeline_mode = #tpu.pipeline_mode<synchronous>, transform_indices = @transform_1, window_bounds = array<i64: 1024, 16>}, {pipeline_mode = #tpu.pipeline_mode<synchronous>, transform_indices = @transform_2, window_bounds = array<i64: 1, 16>}, {transform_indices = @transform_3, window_bounds = array<i64: 128, 16>}, {transform_indices = @transform_4, window_bounds = array<i64: 128, 16>}]} {
    %c0 = arith.constant 0 : index
    %c0_0 = arith.constant 0 : index
    %0 = vector.load %arg1[%c0, %c0_0] : memref<128x1024xf32, #tpu.memory_space<vmem>>, vector<128x1024xf32>
    %c0_1 = arith.constant 0 : index
    %c0_2 = arith.constant 0 : index
    %1 = vector.load %arg2[%c0_1, %c0_2] : memref<1024x16xf32, #tpu.memory_space<vmem>>, vector<1024x16xf32>
    %cst = arith.constant dense<0.000000e+00> : vector<128x16xf32>
    %2 = tpu.matmul %0, %1, %cst {dimension_numbers = #tpu.dot_dimension_numbers<[1], [0], [0], [1], [0, 0, 1, 1], [], []>} : vector<128x1024xf32>, vector<1024x16xf32>, vector<128x16xf32> -> vector<128x16xf32>
    %c0_3 = arith.constant 0 : index
    %c0_4 = arith.constant 0 : index
    %3 = vector.load %arg3[%c0_3, %c0_4] : memref<1x16xf32, #tpu.memory_space<vmem>>, vector<1x16xf32>
    %4 = vector.broadcast %3 : vector<1x16xf32> to vector<128x16xf32>
    %5 = arith.addf %2, %4 : vector<128x16xf32>
    %cst_5 = arith.constant 0.000000e+00 : f32
    %6 = vector.broadcast %cst_5 : f32 to vector<128x16xf32>
    %7 = arith.maximumf %5, %6 : vector<128x16xf32>
    %c0_6 = arith.constant 0 : index
    %c0_7 = arith.constant 0 : index
    %8 = vector.load %arg4[%c0_6, %c0_7] : memref<128x16xf32, #tpu.memory_space<vmem>>, vector<128x16xf32>
    %9 = arith.addf %7, %8 : vector<128x16xf32>
    %c0_8 = arith.constant 0 : index
    %c0_9 = arith.constant 0 : index
    %10 = vector.load %arg5[%c0_8, %c0_9] : memref<128x16xf32, #tpu.memory_space<vmem>>, vector<128x16xf32>
    tpu.vector_store %arg5[%c0_8, %c0_9], %9 {strides = array<i32>} : memref<128x16xf32, #tpu.memory_space<vmem>>, vector<128x16xf32>,
    return
  }
  func.func @transform_0(%arg0: i32) -> (i32, i32) {
    %c0_i32 = arith.constant 0 : i32
    %c0_i32_0 = arith.constant 0 : i32
    return %arg0, %c0_i32 : i32, i32
  }
  func.func @transform_1(%arg0: i32) -> (i32, i32) {
    %c0_i32 = arith.constant 0 : i32
    %c0_i32_0 = arith.constant 0 : i32
    %c0_i32_1 = arith.constant 0 : i32
    return %c0_i32, %c0_i32_0 : i32, i32
  }
  func.func @transform_2(%arg0: i32) -> (i32, i32) {
    %c0_i32 = arith.constant 0 : i32
    %c0_i32_0 = arith.constant 0 : i32
    %c0_i32_1 = arith.constant 0 : i32
    return %c0_i32, %c0_i32_0 : i32, i32
  }
  func.func @transform_3(%arg0: i32) -> (i32, i32) {
    %c0_i32 = arith.constant 0 : i32
    %c0_i32_0 = arith.constant 0 : i32
    return %arg0, %c0_i32 : i32, i32
  }
  func.func @transform_4(%arg0: i32) -> (i32, i32) {
    %c0_i32 = arith.constant 0 : i32
    %c0_i32_0 = arith.constant 0 : i32
    return %arg0, %c0_i32 : i32, i32
  }
}

module attributes {stable_mosaic.version = 11 : i64} {
  func.func @_mm_bias_relu_add_kernel(%arg0: i32, %arg1: memref<256x512xf32, #tpu.memory_space<vmem>>, %arg2: memref<512x8xf32, #tpu.memory_space<vmem>>, %arg3: memref<1x8xf32, #tpu.memory_space<vmem>>, %arg4: memref<256x8xf32, #tpu.memory_space<vmem>>, %arg5: memref<256x8xf32, #tpu.memory_space<vmem>>) attributes {dimension_semantics = [#tpu.dimension_semantics<parallel>], iteration_bounds = array<i64: 2>, scalar_prefetch = 0 : i64, scratch_operands = 0 : i64, tpu.core_type = #tpu.core_type<tc>, window_params = [{transform_indices = @transform_0, window_bounds = array<i64: 256, 512>}, {pipeline_mode = #tpu.pipeline_mode<synchronous>, transform_indices = @transform_1, window_bounds = array<i64: 512, 8>}, {pipeline_mode = #tpu.pipeline_mode<synchronous>, transform_indices = @transform_2, window_bounds = array<i64: 1, 8>}, {transform_indices = @transform_3, window_bounds = array<i64: 256, 8>}, {transform_indices = @transform_4, window_bounds = array<i64: 256, 8>}]} {
    %c0 = arith.constant 0 : index
    %c0_0 = arith.constant 0 : index
    %0 = vector.load %arg1[%c0, %c0_0] : memref<256x512xf32, #tpu.memory_space<vmem>>, vector<256x512xf32>
    %c0_1 = arith.constant 0 : index
    %c0_2 = arith.constant 0 : index
    %1 = vector.load %arg2[%c0_1, %c0_2] : memref<512x8xf32, #tpu.memory_space<vmem>>, vector<512x8xf32>
    %cst = arith.constant dense<0.000000e+00> : vector<256x8xf32>
    %2 = tpu.matmul %0, %1, %cst {dimension_numbers = #tpu.dot_dimension_numbers<[1], [0], [0], [1], [0, 0, 1, 1], [], []>} : vector<256x512xf32>, vector<512x8xf32>, vector<256x8xf32> -> vector<256x8xf32>
    %c0_3 = arith.constant 0 : index
    %c0_4 = arith.constant 0 : index
    %3 = vector.load %arg3[%c0_3, %c0_4] : memref<1x8xf32, #tpu.memory_space<vmem>>, vector<1x8xf32>
    %4 = vector.broadcast %3 : vector<1x8xf32> to vector<256x8xf32>
    %5 = arith.addf %2, %4 : vector<256x8xf32>
    %cst_5 = arith.constant 0.000000e+00 : f32
    %6 = vector.broadcast %cst_5 : f32 to vector<256x8xf32>
    %7 = arith.maximumf %5, %6 : vector<256x8xf32>
    %c0_6 = arith.constant 0 : index
    %c0_7 = arith.constant 0 : index
    %8 = vector.load %arg4[%c0_6, %c0_7] : memref<256x8xf32, #tpu.memory_space<vmem>>, vector<256x8xf32>
    %9 = arith.addf %7, %8 : vector<256x8xf32>
    %c0_8 = arith.constant 0 : index
    %c0_9 = arith.constant 0 : index
    %10 = vector.load %arg5[%c0_8, %c0_9] : memref<256x8xf32, #tpu.memory_space<vmem>>, vector<256x8xf32>
    tpu.vector_store %arg5[%c0_8, %c0_9], %9 {strides = array<i32>} : memref<256x8xf32, #tpu.memory_space<vmem>>, vector<256x8xf32>,
    return
  }
  func.func @transform_0(%arg0: i32) -> (i32, i32) {
    %c0_i32 = arith.constant 0 : i32
    %c0_i32_0 = arith.constant 0 : i32
    return %arg0, %c0_i32 : i32, i32
  }
  func.func @transform_1(%arg0: i32) -> (i32, i32) {
    %c0_i32 = arith.constant 0 : i32
    %c0_i32_0 = arith.constant 0 : i32
    %c0_i32_1 = arith.constant 0 : i32
    return %c0_i32, %c0_i32_0 : i32, i32
  }
  func.func @transform_2(%arg0: i32) -> (i32, i32) {
    %c0_i32 = arith.constant 0 : i32
    %c0_i32_0 = arith.constant 0 : i32
    %c0_i32_1 = arith.constant 0 : i32
    return %c0_i32, %c0_i32_0 : i32, i32
  }
  func.func @transform_3(%arg0: i32) -> (i32, i32) {
    %c0_i32 = arith.constant 0 : i32
    %c0_i32_0 = arith.constant 0 : i32
    return %arg0, %c0_i32 : i32, i32
  }
  func.func @transform_4(%arg0: i32) -> (i32, i32) {
    %c0_i32 = arith.constant 0 : i32
    %c0_i32_0 = arith.constant 0 : i32
    return %arg0, %c0_i32 : i32, i32
  }
}

module attributes {stable_mosaic.version = 11 : i64} {
  func.func @_mm_bias_tanh_kernel(%arg0: i32, %arg1: memref<1024x128xf32, #tpu.memory_space<vmem>>, %arg2: memref<128x3xf32, #tpu.memory_space<vmem>>, %arg3: memref<1x3xf32, #tpu.memory_space<vmem>>, %arg4: memref<1024x3xf32, #tpu.memory_space<vmem>>) attributes {dimension_semantics = [#tpu.dimension_semantics<parallel>], iteration_bounds = array<i64: 2>, scalar_prefetch = 0 : i64, scratch_operands = 0 : i64, tpu.core_type = #tpu.core_type<tc>, window_params = [{transform_indices = @transform_0, window_bounds = array<i64: 1024, 128>}, {pipeline_mode = #tpu.pipeline_mode<synchronous>, transform_indices = @transform_1, window_bounds = array<i64: 128, 3>}, {pipeline_mode = #tpu.pipeline_mode<synchronous>, transform_indices = @transform_2, window_bounds = array<i64: 1, 3>}, {transform_indices = @transform_3, window_bounds = array<i64: 1024, 3>}]} {
    %c0 = arith.constant 0 : index
    %c0_0 = arith.constant 0 : index
    %0 = vector.load %arg1[%c0, %c0_0] : memref<1024x128xf32, #tpu.memory_space<vmem>>, vector<1024x128xf32>
    %c0_1 = arith.constant 0 : index
    %c0_2 = arith.constant 0 : index
    %1 = vector.load %arg2[%c0_1, %c0_2] : memref<128x3xf32, #tpu.memory_space<vmem>>, vector<128x3xf32>
    %cst = arith.constant dense<0.000000e+00> : vector<1024x3xf32>
    %2 = tpu.matmul %0, %1, %cst {dimension_numbers = #tpu.dot_dimension_numbers<[1], [0], [0], [1], [0, 0, 1, 1], [], []>} : vector<1024x128xf32>, vector<128x3xf32>, vector<1024x3xf32> -> vector<1024x3xf32>
    %c0_3 = arith.constant 0 : index
    %c0_4 = arith.constant 0 : index
    %3 = vector.load %arg3[%c0_3, %c0_4] : memref<1x3xf32, #tpu.memory_space<vmem>>, vector<1x3xf32>
    %4 = vector.broadcast %3 : vector<1x3xf32> to vector<1024x3xf32>
    %5 = arith.addf %2, %4 : vector<1024x3xf32>
    %6 = math.tanh %5 : vector<1024x3xf32>
    %c0_5 = arith.constant 0 : index
    %c0_6 = arith.constant 0 : index
    %7 = vector.load %arg4[%c0_5, %c0_6] : memref<1024x3xf32, #tpu.memory_space<vmem>>, vector<1024x3xf32>
    tpu.vector_store %arg4[%c0_5, %c0_6], %6 {strides = array<i32>} : memref<1024x3xf32, #tpu.memory_space<vmem>>, vector<1024x3xf32>,
    return
  }
  func.func @transform_0(%arg0: i32) -> (i32, i32) {
    %c0_i32 = arith.constant 0 : i32
    %c0_i32_0 = arith.constant 0 : i32
    return %arg0, %c0_i32 : i32, i32
  }
  func.func @transform_1(%arg0: i32) -> (i32, i32) {
    %c0_i32 = arith.constant 0 : i32
    %c0_i32_0 = arith.constant 0 : i32
    %c0_i32_1 = arith.constant 0 : i32
    return %c0_i32, %c0_i32_0 : i32, i32
  }
  func.func @transform_2(%arg0: i32) -> (i32, i32) {
    %c0_i32 = arith.constant 0 : i32
    %c0_i32_0 = arith.constant 0 : i32
    %c0_i32_1 = arith.constant 0 : i32
    return %c0_i32, %c0_i32_0 : i32, i32
  }
  func.func @transform_3(%arg0: i32) -> (i32, i32) {
    %c0_i32 = arith.constant 0 : i32
    %c0_i32_0 = arith.constant 0 : i32
    return %arg0, %c0_i32 : i32, i32
  }
}

</mosaic_0001>

<bundles_post_ra>
// kernel: decoder_forward.5
= control target key start
LH: loop header
LB: loop body
LE: loop exit
PB: predicated region body
PF: predicated region fallthrough
CT: control target
= control target key end

     0   :  { %vm908_vm0 = vcmask 130048   ;;  %s2352_s1 = inlined_call_operand.vmem [shape: f32[1024,16], index: 1, kind: input, shape index: {}]   ;;  %s2353_s0 = inlined_call_operand.vmem [shape: f32[128,1024], index: 0, kind: input, shape index: {}]   ;;  %s2354_s2 = inlined_call_operand.vmem [shape: f32[1,16], index: 2, kind: input, shape index: {}]   ;;  %s2355_s3 = inlined_call_operand.vmem [shape: f32[128,16], index: 3, kind: input, shape index: {}]   ;;  %s2356_s4 = inlined_call_operand.vmem [shape: f32[128,16], index: 4, kind: output, shape index: {}]  }
   0x1   :  { %v161_v0 = vld [vmem:[%s2352_s1 + $0x80] sm:$0xff]  ;;  %v162_v1 = vld [vmem:[%s2352_s1 + $0x88] sm:$0xff]  ;;  %v163_v11 = vld [vmem:[%s2352_s1 + $0x90] sm:$0xff] }
   0x2   :  { %v145_v2 = vld [vmem:[%s2352_s1] sm:$0xff]  ;;  %v1250_v3 = vpack.c.bf16 %v162_v1, %v161_v0  ;;  %v146_v4 = vld [vmem:[%s2352_s1 + $0x8] sm:$0xff]  ;;  %v164_v13 = vld [vmem:[%s2352_s1 + $0x98] sm:$0xff] }
   0x3   :  { %v193_v5 = vld [vmem:[%s2352_s1 + $0x180] sm:$0xff]  ;;  %v194_v6 = vld [vmem:[%s2352_s1 + $0x188] sm:$0xff]  ;;  %v1252_v7 = vpack.c.bf16 %v146_v4, %v145_v2  ;;  %v147_v14 = vld [vmem:[%s2352_s1 + $0x10] sm:$0xff]  ;;  %v1254_v16 = vpack.c.bf16 %v164_v13, %v163_v11 }
   0x4   :  { %v1282_v8 = vpack.c.bf16 %v194_v6, %v193_v5  ;;  %v177_v9 = vld [vmem:[%s2352_s1 + $0x100] sm:$0xff]  ;;  %v178_v10 = vld [vmem:[%s2352_s1 + $0x108] sm:$0xff]  ;;  %1251 = vmatprep.subr.bf16.mxu0 %v1250_v3  ;;  %v148_v15 = vld [vmem:[%s2352_s1 + $0x18] sm:$0xff] }
   0x5   :  { %v1284_v12 = vpack.c.bf16 %v178_v10, %v177_v9  ;;  %1253 = vmatpush3.bf16.msra.mxu0 %v1252_v7  ;;  %v1256_v17 = vpack.c.bf16 %v148_v15, %v147_v14  ;;  %v195_v18 = vld [vmem:[%s2352_s1 + $0x190] sm:$0xff]  ;;  %v196_v19 = vld [vmem:[%s2352_s1 + $0x198] sm:$0xff]  ;;  %v165_v23 = vld [vmem:[%s2352_s1 + $0xa0] sm:$0xff] }
   0x6   :  { %1283 = vmatprep.subr.bf16.mxu1 %v1282_v8  ;;  %v179_v20 = vld [vmem:[%s2352_s1 + $0x110] sm:$0xff]  ;;  %v1286_v21 = vpack.c.bf16 %v196_v19, %v195_v18  ;;  %v180_v22 = vld [vmem:[%s2352_s1 + $0x118] sm:$0xff]  ;;  %v166_v24 = vld [vmem:[%s2352_s1 + $0xa8] sm:$0xff]  ;;  %1255 = vmatprep.subr.bf16.mxu0 %v1254_v16 }
   0x7   :  { %1285 = vmatpush3.bf16.msra.mxu1 %v1284_v12  ;;  %v1288_v25 = vpack.c.bf16 %v180_v22, %v179_v20  ;;  %v1258_v26 = vpack.c.bf16 %v166_v24, %v165_v23  ;;  %v149_v27 = vld [vmem:[%s2352_s1 + $0x20] sm:$0xff]  ;;  %v150_v28 = vld [vmem:[%s2352_s1 + $0x28] sm:$0xff]  ;;  %v167_v35 = vld [vmem:[%s2352_s1 + $0xb0] sm:$0xff] }
   0x8   :  { %v197_v29 = vld [vmem:[%s2352_s1 + $0x1a0] sm:$0xff]  ;;  %1287 = vmatprep.subr.bf16.mxu1 %v1286_v21  ;;  %v198_v30 = vld [vmem:[%s2352_s1 + $0x1a8] sm:$0xff]  ;;  %v1260_v33 = vpack.c.bf16 %v150_v28, %v149_v27  ;;  %v168_v36 = vld [vmem:[%s2352_s1 + $0xb8] sm:$0xff] }
   0x9   :  { %v181_v31 = vld [vmem:[%s2352_s1 + $0x120] sm:$0xff]  ;;  %v182_v32 = vld [vmem:[%s2352_s1 + $0x128] sm:$0xff]  ;;  %1257 = vmatpush3.bf16.msra.mxu0 %v1256_v17  ;;  %v1290_v34 = vpack.c.bf16 %v198_v30, %v197_v29  ;;  %v151_v37 = vld [vmem:[%s2352_s1 + $0x30] sm:$0xff]  ;;  %v1262_v39 = vpack.c.bf16 %v168_v36, %v167_v35 }
   0xa   :  { %1259 = vmatprep.subr.bf16.mxu0 %v1258_v26  ;;  %v1292_v38 = vpack.c.bf16 %v182_v32, %v181_v31  ;;  %v152_v40 = vld [vmem:[%s2352_s1 + $0x38] sm:$0xff]  ;;  %v199_v41 = vld [vmem:[%s2352_s1 + $0x1b0] sm:$0xff]  ;;  %v169_v46 = vld [vmem:[%s2352_s1 + $0xc0] sm:$0xff] }
   0xb   :  { %1289 = vmatpush3.bf16.msra.mxu1 %v1288_v25  ;;  %v200_v42 = vld [vmem:[%s2352_s1 + $0x1b8] sm:$0xff]  ;;  %v183_v44 = vld [vmem:[%s2352_s1 + $0x130] sm:$0xff]  ;;  %v170_v47 = vld [vmem:[%s2352_s1 + $0xc8] sm:$0xff]  ;;  %v1264_v48 = vpack.c.bf16 %v152_v40, %v151_v37 }
   0xc   :  { %1291 = vmatprep.subr.bf16.mxu1 %v1290_v34  ;;  %v1294_v43 = vpack.c.bf16 %v200_v42, %v199_v41  ;;  %v184_v45 = vld [vmem:[%s2352_s1 + $0x138] sm:$0xff]  ;;  %v201_v49 = vld [vmem:[%s2352_s1 + $0x1c0] sm:$0xff]  ;;  %v202_v50 = vld [vmem:[%s2352_s1 + $0x1c8] sm:$0xff]  ;;  %v1266_v52 = vpack.c.bf16 %v170_v47, %v169_v46 }
   0xd   :  { %1261 = vmatpush3.bf16.msra.mxu0 %v1260_v33  ;;  %v1296_v51 = vpack.c.bf16 %v184_v45, %v183_v44  ;;  %v153_v53 = vld [vmem:[%s2352_s1 + $0x40] sm:$0xff]  ;;  %v154_v54 = vld [vmem:[%s2352_s1 + $0x48] sm:$0xff]  ;;  %v1298_v56 = vpack.c.bf16 %v202_v50, %v201_v49  ;;  %v171_v58 = vld [vmem:[%s2352_s1 + $0xd0] sm:$0xff] }
   0xe   :  { %1263 = vmatprep.subr.bf16.mxu0 %v1262_v39  ;;  %v185_v55 = vld [vmem:[%s2352_s1 + $0x140] sm:$0xff]  ;;  %v186_v57 = vld [vmem:[%s2352_s1 + $0x148] sm:$0xff]  ;;  %v172_v59 = vld [vmem:[%s2352_s1 + $0xd8] sm:$0xff]  ;;  %v1268_v62 = vpack.c.bf16 %v154_v54, %v153_v53 }
   0xf   :  { %1293 = vmatpush3.bf16.msra.mxu1 %v1292_v38  ;;  %v203_v60 = vld [vmem:[%s2352_s1 + $0x1d0] sm:$0xff]  ;;  %v204_v61 = vld [vmem:[%s2352_s1 + $0x1d8] sm:$0xff]  ;;  %v1300_v63 = vpack.c.bf16 %v186_v57, %v185_v55  ;;  %v1270_v0 = vpack.c.bf16 %v172_v59, %v171_v58  ;;  %v173_v6 = vld [vmem:[%s2352_s1 + $0xe0] sm:$0xff] }
  0x10   :  { %1295 = vmatprep.subr.bf16.mxu1 %v1294_v43  ;;  %v155_v1 = vld [vmem:[%s2352_s1 + $0x50] sm:$0xff]  ;;  %v156_v2 = vld [vmem:[%s2352_s1 + $0x58] sm:$0xff]  ;;  %v1302_v4 = vpack.c.bf16 %v204_v61, %v203_v60  ;;  %v174_v7 = vld [vmem:[%s2352_s1 + $0xe8] sm:$0xff] }
  0x11   :  { %1265 = vmatpush3.bf16.msra.mxu0 %v1264_v48  ;;  %v187_v3 = vld [vmem:[%s2352_s1 + $0x150] sm:$0xff]  ;;  %v188_v5 = vld [vmem:[%s2352_s1 + $0x158] sm:$0xff]  ;;  %v205_v8 = vld [vmem:[%s2352_s1 + $0x1e0] sm:$0xff]  ;;  %v1272_v10 = vpack.c.bf16 %v156_v2, %v155_v1  ;;  %v1274_v14 = vpack.c.bf16 %v174_v7, %v173_v6 }
  0x12   :  { %1267 = vmatprep.subr.bf16.mxu0 %v1266_v52  ;;  %v206_v9 = vld [vmem:[%s2352_s1 + $0x1e8] sm:$0xff]  ;;  %v157_v11 = vld [vmem:[%s2352_s1 + $0x60] sm:$0xff]  ;;  %v1304_v13 = vpack.c.bf16 %v188_v5, %v187_v3  ;;  %v175_v19 = vld [vmem:[%s2352_s1 + $0xf0] sm:$0xff] }
  0x13   :  { %1297 = vmatpush3.bf16.msra.mxu1 %v1296_v51  ;;  %v18_v12 = vld [vmem:[%s2353_s0 + $0x8] sm:$0xff]  ;;  %v189_v16 = vld [vmem:[%s2352_s1 + $0x160] sm:$0xff]  ;;  %v1306_v18 = vpack.c.bf16 %v206_v9, %v205_v8  ;;  %v176_v20 = vld [vmem:[%s2352_s1 + $0xf8] sm:$0xff] }
  0x14   :  { %1299 = vmatprep.subr.bf16.mxu1 %v1298_v56  ;;  %v158_v15 = vld [vmem:[%s2352_s1 + $0x68] sm:$0xff]  ;;  %344 = vmatprep.mubr.f32.mxu0 %v18_v12  ;;  %v20_v21 = vld [vmem:[%s2353_s0 + $0x18] sm:$0xff]  ;;  %v207_v22 = vld [vmem:[%s2352_s1 + $0x1f0] sm:$0xff]  ;;  %v1278_v26 = vpack.c.bf16 %v176_v20, %v175_v19 }
  0x15   :  { %1269 = vmatpush3.bf16.msra.mxu0 %v1268_v62  ;;  %v190_v17 = vld [vmem:[%s2352_s1 + $0x168] sm:$0xff]  ;;  %v208_v23 = vld [vmem:[%s2352_s1 + $0x1f8] sm:$0xff]  ;;  %489 = vmatprep.mubr.f32.mxu1 %v20_v21  ;;  %v1276_v24 = vpack.c.bf16 %v158_v15, %v157_v11  ;;  %v159_v27 = vld [vmem:[%s2352_s1 + $0x70] sm:$0xff] }
  0x16   :  { %1271 = vmatprep.subr.bf16.mxu0 %v1270_v0  ;;  %v1308_v25 = vpack.c.bf16 %v190_v17, %v189_v16  ;;  %v160_v28 = vld [vmem:[%s2352_s1 + $0x78] sm:$0xff]  ;;  %v191_v29 = vld [vmem:[%s2352_s1 + $0x170] sm:$0xff]  ;;  %v1310_v30 = vpack.c.bf16 %v208_v23, %v207_v22  ;;  %v225_v32 = vld [vmem:[%s2352_s1 + $0x280] sm:$0xff] }
  0x17   :  { %1301 = vmatpush3.bf16.msra.mxu1 %v1300_v63  ;;  %v192_v31 = vld [vmem:[%s2352_s1 + $0x178] sm:$0xff]  ;;  %v226_v33 = vld [vmem:[%s2352_s1 + $0x288] sm:$0xff]  ;;  %v257_v34 = vld [vmem:[%s2352_s1 + $0x380] sm:$0xff]  ;;  %v1280_v36 = vpack.c.bf16 %v160_v28, %v159_v27 }
  0x18   :  { %1303 = vmatprep.subr.bf16.mxu1 %v1302_v4  ;;  %v258_v35 = vld [vmem:[%s2352_s1 + $0x388] sm:$0xff]  ;;  %v1312_v37 = vpack.c.bf16 %v192_v31, %v191_v29  ;;  %v1314_v38 = vpack.c.bf16 %v226_v33, %v225_v32  ;;  %v209_v39 = vld [vmem:[%s2352_s1 + $0x200] sm:$0xff]  ;;  %v227_v44 = vld [vmem:[%s2352_s1 + $0x290] sm:$0xff] }
  0x19   :  { %1273 = vmatpush3.bf16.msra.mxu0 %v1272_v10  ;;  %v210_v40 = vld [vmem:[%s2352_s1 + $0x208] sm:$0xff]  ;;  %v1346_v41 = vpack.c.bf16 %v258_v35, %v257_v34  ;;  %v241_v42 = vld [vmem:[%s2352_s1 + $0x300] sm:$0xff]  ;;  %v228_v45 = vld [vmem:[%s2352_s1 + $0x298] sm:$0xff] }
  0x1a   :  { %1275 = vmatprep.subr.bf16.mxu0 %v1274_v14  ;;  %v242_v43 = vld [vmem:[%s2352_s1 + $0x308] sm:$0xff]  ;;  %v17_v46 = vld [vmem:[%s2353_s0] sm:$0xff]  ;;  %v1316_v47 = vpack.c.bf16 %v210_v40, %v209_v39  ;;  %v259_v48 = vld [vmem:[%s2352_s1 + $0x390] sm:$0xff]  ;;  %v1318_v54 = vpack.c.bf16 %v228_v45, %v227_v44 }
  0x1b   :  { %1305 = vmatpush3.bf16.msra.mxu1 %v1304_v13  ;;  %v260_v49 = vld [vmem:[%s2352_s1 + $0x398] sm:$0xff]  ;;  %v19_v50 = vld [vmem:[%s2353_s0 + $0x10] sm:$0xff]  ;;  %v26_v51 = vld [vmem:[%s2353_s0 + $0x48] sm:$0xff]  ;;  %v1348_v52 = vpack.c.bf16 %v242_v43, %v241_v42 }
  0x1c   :  { %1307 = vmatprep.subr.bf16.mxu1 %v1306_v18  ;;  %v28_v53 = vld [vmem:[%s2353_s0 + $0x58] sm:$0xff]  ;;  %v211_v55 = vld [vmem:[%s2352_s1 + $0x210] sm:$0xff]  ;;  %v1350_v58 = vpack.c.bf16 %v260_v49, %v259_v48  ;;  %v229_v60 = vld [vmem:[%s2352_s1 + $0x2a0] sm:$0xff] }
  0x1d   :  { %1277 = vmatpush3.bf16.msra.mxu0 %v1276_v24  ;;  %v212_v56 = vld [vmem:[%s2352_s1 + $0x218] sm:$0xff]  ;;  %v243_v57 = vld [vmem:[%s2352_s1 + $0x310] sm:$0xff]  ;;  %v230_v61 = vld [vmem:[%s2352_s1 + $0x2a8] sm:$0xff] }
  0x1e   :  { %1279 = vmatprep.subr.bf16.mxu0 %v1278_v26  ;;  %v244_v59 = vld [vmem:[%s2352_s1 + $0x318] sm:$0xff]  ;;  %v25_v62 = vld [vmem:[%s2353_s0 + $0x40] sm:$0xff]  ;;  %v262_v0 = vld [vmem:[%s2352_s1 + $0x3a8] sm:$0xff]  ;;  %v1320_v4 = vpack.c.bf16 %v212_v56, %v211_v55  ;;  %v1322_v6 = vpack.c.bf16 %v230_v61, %v229_v60 }
  0x1f   :  { %1309 = vmatpush3.bf16.msra.mxu1 %v1308_v25  ;;  %v261_v63 = vld [vmem:[%s2352_s1 + $0x3a0] sm:$0xff]  ;;  %v27_v1 = vld [vmem:[%s2353_s0 + $0x50] sm:$0xff]  ;;  %v34_v2 = vld [vmem:[%s2353_s0 + $0x88] sm:$0xff]  ;;  %v1352_v5 = vpack.c.bf16 %v244_v59, %v243_v57 }
  0x20   :  { %1311 = vmatprep.subr.bf16.mxu1 %v1310_v30  ;;  %v36_v3 = vld [vmem:[%s2353_s0 + $0x98] sm:$0xff]  ;;  %v213_v7 = vld [vmem:[%s2352_s1 + $0x220] sm:$0xff]  ;;  %v214_v8 = vld [vmem:[%s2352_s1 + $0x228] sm:$0xff]  ;;  %v1354_v10 = vpack.c.bf16 %v262_v0, %v261_v63 }
  0x21   :  { %1281 = vmatpush3.bf16.msra.mxu0 %v1280_v36  ;;  %v245_v9 = vld [vmem:[%s2352_s1 + $0x320] sm:$0xff]  ;;  %v246_v11 = vld [vmem:[%s2352_s1 + $0x328] sm:$0xff]  ;;  %v231_v12 = vld [vmem:[%s2352_s1 + $0x2b0] sm:$0xff]  ;;  %v1324_v20 = vpack.c.bf16 %v214_v8, %v213_v7 }
  0x22   :  { %1315 = vmatprep.subr.bf16.mxu0 %v1314_v38  ;;  %v232_v13 = vld [vmem:[%s2352_s1 + $0x2b8] sm:$0xff]  ;;  %v33_v14 = vld [vmem:[%s2353_s0 + $0x80] sm:$0xff]  ;;  %v263_v15 = vld [vmem:[%s2352_s1 + $0x3b0] sm:$0xff]  ;;  %v1356_v21 = vpack.c.bf16 %v246_v11, %v245_v9 }
  0x23   :  { %1313 = vmatpush3.bf16.msra.mxu1 %v1312_v37  ;;  %v264_v16 = vld [vmem:[%s2352_s1 + $0x3b8] sm:$0xff]  ;;  %v35_v17 = vld [vmem:[%s2353_s0 + $0x90] sm:$0xff]  ;;  %v42_v18 = vld [vmem:[%s2353_s0 + $0xc8] sm:$0xff]  ;;  %v1326_v22 = vpack.c.bf16 %v232_v13, %v231_v12 }
  0x24   :  { %1347 = vmatprep.subr.bf16.mxu1 %v1346_v41  ;;  %345 = vmatmul.mubr.f32.vlgmr.msra.gmra.mrb[0].mxu0 %v17_v46  ;;  %v44_v19 = vld [vmem:[%s2353_s0 + $0xd8] sm:$0xff]  ;;  %v215_v23 = vld [vmem:[%s2352_s1 + $0x230] sm:$0xff]  ;;  %v1358_v26 = vpack.c.bf16 %v264_v16, %v263_v15  ;;  %v233_v28 = vld [vmem:[%s2352_s1 + $0x2c0] sm:$0xff] }
  0x25   :  { %1317 = vmatpush3.bf16.msra.mxu0 %v1316_v47  ;;  %349 = vmatprep.mubr.f32.mxu0 %v26_v51  ;;  %v216_v24 = vld [vmem:[%s2352_s1 + $0x238] sm:$0xff]  ;;  %v247_v25 = vld [vmem:[%s2352_s1 + $0x330] sm:$0xff]  ;;  %v234_v29 = vld [vmem:[%s2352_s1 + $0x2c8] sm:$0xff] }
  0x26   :  { %490 = vmatmul.mubr.f32.vlgmr.msra.gmra.mrb[0].mxu1 %v19_v50  ;;  %1319 = vmatprep.subr.bf16.mxu0 %v1318_v54  ;;  %v248_v27 = vld [vmem:[%s2352_s1 + $0x338] sm:$0xff]  ;;  %v41_v30 = vld [vmem:[%s2353_s0 + $0xc0] sm:$0xff]  ;;  %v43_v31 = vld [vmem:[%s2353_s0 + $0xd0] sm:$0xff]  ;;  %v1328_v33 = vpack.c.bf16 %v216_v24, %v215_v23  ;;  %v1330_v38 = vpack.c.bf16 %v234_v29, %v233_v28 }
  0x27   :  { %1349 = vmatpush3.bf16.msra.mxu1 %v1348_v52  ;;  %494 = vmatprep.mubr.f32.mxu1 %v28_v53  ;;  %v50_v32 = vld [vmem:[%s2353_s0 + $0x108] sm:$0xff]  ;;  %v265_v34 = vld [vmem:[%s2352_s1 + $0x3c0] sm:$0xff]  ;;  %v52_v36 = vld [vmem:[%s2353_s0 + $0x118] sm:$0xff]  ;;  %v1360_v37 = vpack.c.bf16 %v248_v27, %v247_v25 }
  0x28   :  { %350 = vmatmul.mubr.f32.gmra.mrb[2].mxu0 %v25_v62  ;;  %1351 = vmatprep.subr.bf16.mxu1 %v1350_v58  ;;  %v266_v35 = vld [vmem:[%s2352_s1 + $0x3c8] sm:$0xff]  ;;  %v217_v39 = vld [vmem:[%s2352_s1 + $0x240] sm:$0xff]  ;;  %v51_v45 = vld [vmem:[%s2353_s0 + $0x110] sm:$0xff] }
  0x29   :  { %354 = vmatprep.mubr.f32.mxu0 %v34_v2  ;;  %1321 = vmatpush3.bf16.msra.mxu0 %v1320_v4  ;;  %v218_v40 = vld [vmem:[%s2352_s1 + $0x248] sm:$0xff]  ;;  %v1362_v41 = vpack.c.bf16 %v266_v35, %v265_v34  ;;  %v249_v42 = vld [vmem:[%s2352_s1 + $0x340] sm:$0xff]  ;;  %v235_v46 = vld [vmem:[%s2352_s1 + $0x2d0] sm:$0xff] }
  0x2a   :  { %495 = vmatmul.mubr.f32.gmra.mrb[2].mxu1 %v27_v1  ;;  %1323 = vmatprep.subr.bf16.mxu0 %v1322_v6  ;;  %v250_v43 = vld [vmem:[%s2352_s1 + $0x348] sm:$0xff]  ;;  %v49_v44 = vld [vmem:[%s2353_s0 + $0x100] sm:$0xff]  ;;  %v60_v48 = vld [vmem:[%s2353_s0 + $0x158] sm:$0xff]  ;;  %v1332_v49 = vpack.c.bf16 %v218_v40, %v217_v39 }
  0x2b   :  { %499 = vmatprep.mubr.f32.mxu1 %v36_v3  ;;  %1353 = vmatpush3.bf16.msra.mxu1 %v1352_v5  ;;  %v58_v47 = vld [vmem:[%s2353_s0 + $0x148] sm:$0xff]  ;;  %v236_v50 = vld [vmem:[%s2352_s1 + $0x2d8] sm:$0xff]  ;;  %v1364_v51 = vpack.c.bf16 %v250_v43, %v249_v42  ;;  %v219_v53 = vld [vmem:[%s2352_s1 + $0x250] sm:$0xff] }
  0x2c   :  { %355 = vmatmul.mubr.f32.gmra.mrb[4].mxu0 %v33_v14  ;;  %1355 = vmatprep.subr.bf16.mxu1 %v1354_v10  ;;  %v1334_v52 = vpack.c.bf16 %v236_v50, %v235_v46  ;;  %v220_v54 = vld [vmem:[%s2352_s1 + $0x258] sm:$0xff]  ;;  %v267_v55 = vld [vmem:[%s2352_s1 + $0x3d0] sm:$0xff]  ;;  %v57_v58 = vld [vmem:[%s2353_s0 + $0x140] sm:$0xff] }
  0x2d   :  { %359 = vmatprep.mubr.f32.mxu0 %v42_v18  ;;  %1325 = vmatpush3.bf16.msra.mxu0 %v1324_v20  ;;  %v268_v56 = vld [vmem:[%s2352_s1 + $0x3d8] sm:$0xff]  ;;  %v251_v57 = vld [vmem:[%s2352_s1 + $0x350] sm:$0xff]  ;;  %v66_v62 = vld [vmem:[%s2353_s0 + $0x188] sm:$0xff]  ;;  %v1336_v63 = vpack.c.bf16 %v220_v54, %v219_v53 }
  0x2e   :  { %500 = vmatmul.mubr.f32.gmra.mrb[4].mxu1 %v35_v17  ;;  %1327 = vmatprep.subr.bf16.mxu0 %v1326_v22  ;;  %v1366_v59 = vpack.c.bf16 %v268_v56, %v267_v55  ;;  %v252_v60 = vld [vmem:[%s2352_s1 + $0x358] sm:$0xff]  ;;  %v59_v61 = vld [vmem:[%s2353_s0 + $0x150] sm:$0xff]  ;;  %v237_v2 = vld [vmem:[%s2352_s1 + $0x2e0] sm:$0xff] }
  0x2f   :  { %504 = vmatprep.mubr.f32.mxu1 %v44_v19  ;;  %1357 = vmatpush3.bf16.msra.mxu1 %v1356_v21  ;;  %v68_v0 = vld [vmem:[%s2353_s0 + $0x198] sm:$0xff]  ;;  %v1368_v1 = vpack.c.bf16 %v252_v60, %v251_v57  ;;  %v238_v3 = vld [vmem:[%s2352_s1 + $0x2e8] sm:$0xff]  ;;  %v65_v4 = vld [vmem:[%s2353_s0 + $0x180] sm:$0xff] }
  0x30   :  { %360 = vmatmul.mubr.f32.gmra.mrb[6].mxu0 %v41_v30  ;;  %1359 = vmatprep.subr.bf16.mxu1 %v1358_v26  ;;  %v1338_v5 = vpack.c.bf16 %v238_v3, %v237_v2  ;;  %v221_v6 = vld [vmem:[%s2352_s1 + $0x260] sm:$0xff]  ;;  %v222_v7 = vld [vmem:[%s2352_s1 + $0x268] sm:$0xff]  ;;  %v67_v8 = vld [vmem:[%s2353_s0 + $0x190] sm:$0xff] }
  0x31   :  { %364 = vmatprep.mubr.f32.mxu0 %v50_v32  ;;  %1329 = vmatpush3.bf16.msra.mxu0 %v1328_v33  ;;  %v269_v9 = vld [vmem:[%s2352_s1 + $0x3e0] sm:$0xff]  ;;  %v270_v10 = vld [vmem:[%s2352_s1 + $0x3e8] sm:$0xff]  ;;  %v1340_v12 = vpack.c.bf16 %v222_v7, %v221_v6  ;;  %v76_v16 = vld [vmem:[%s2353_s0 + $0x1d8] sm:$0xff] }
  0x32   :  { %505 = vmatmul.mubr.f32.gmra.mrb[6].mxu1 %v43_v31  ;;  %1331 = vmatprep.subr.bf16.mxu0 %v1330_v38  ;;  %v74_v11 = vld [vmem:[%s2353_s0 + $0x1c8] sm:$0xff]  ;;  %v1370_v13 = vpack.c.bf16 %v270_v10, %v269_v9  ;;  %v253_v14 = vld [vmem:[%s2352_s1 + $0x360] sm:$0xff]  ;;  %v239_v19 = vld [vmem:[%s2352_s1 + $0x2f0] sm:$0xff] }
  0x33   :  { %509 = vmatprep.mubr.f32.mxu1 %v52_v36  ;;  %1361 = vmatpush3.bf16.msra.mxu1 %v1360_v37  ;;  %v254_v15 = vld [vmem:[%s2352_s1 + $0x368] sm:$0xff]  ;;  %v73_v18 = vld [vmem:[%s2353_s0 + $0x1c0] sm:$0xff]  ;;  %v240_v20 = vld [vmem:[%s2352_s1 + $0x2f8] sm:$0xff] }
  0x34   :  { %365 = vmatmul.mubr.f32.gmra.mrb[8].mxu0 %v49_v44  ;;  %1363 = vmatprep.subr.bf16.mxu1 %v1362_v41  ;;  %v1372_v17 = vpack.c.bf16 %v254_v15, %v253_v14  ;;  %v75_v21 = vld [vmem:[%s2353_s0 + $0x1d0] sm:$0xff]  ;;  %v1342_v22 = vpack.c.bf16 %v240_v20, %v239_v19  ;;  %v224_v24 = vld [vmem:[%s2352_s1 + $0x278] sm:$0xff]  ;;  %v82_v25 = vld [vmem:[%s2353_s0 + $0x208] sm:$0xff] }
  0x35   :  { %369 = vmatprep.mubr.f32.mxu0 %v58_v47  ;;  %1333 = vmatpush3.bf16.msra.mxu0 %v1332_v49  ;;  %v223_v23 = vld [vmem:[%s2352_s1 + $0x270] sm:$0xff]  ;;  %v272_v28 = vld [vmem:[%s2352_s1 + $0x3f8] sm:$0xff]  ;;  %v81_v34 = vld [vmem:[%s2353_s0 + $0x200] sm:$0xff] }
  0x36   :  { %510 = vmatmul.mubr.f32.gmra.mrb[8].mxu1 %v51_v45  ;;  %1335 = vmatprep.subr.bf16.mxu0 %v1334_v52  ;;  %v1344_v26 = vpack.c.bf16 %v224_v24, %v223_v23  ;;  %v271_v27 = vld [vmem:[%s2352_s1 + $0x3f0] sm:$0xff]  ;;  %v84_v29 = vld [vmem:[%s2353_s0 + $0x218] sm:$0xff]  ;;  %v90_v36 = vld [vmem:[%s2353_s0 + $0x248] sm:$0xff] }
  0x37   :  { %514 = vmatprep.mubr.f32.mxu1 %v60_v48  ;;  %1365 = vmatpush3.bf16.msra.mxu1 %v1364_v51  ;;  %v1374_v30 = vpack.c.bf16 %v272_v28, %v271_v27  ;;  %v255_v31 = vld [vmem:[%s2352_s1 + $0x370] sm:$0xff]  ;;  %v256_v32 = vld [vmem:[%s2352_s1 + $0x378] sm:$0xff]  ;;  %v89_v38 = vld [vmem:[%s2353_s0 + $0x240] sm:$0xff] }
  0x38   :  { %370 = vmatmul.mubr.f32.gmra.mrb[10].mxu0 %v57_v58  ;;  %1367 = vmatprep.subr.bf16.mxu1 %v1366_v59  ;;  %v1376_v33 = vpack.c.bf16 %v256_v32, %v255_v31  ;;  %v83_v35 = vld [vmem:[%s2353_s0 + $0x210] sm:$0xff]  ;;  %v92_v37 = vld [vmem:[%s2353_s0 + $0x258] sm:$0xff]  ;;  %v98_v40 = vld [vmem:[%s2353_s0 + $0x288] sm:$0xff] }
  0x39   :  { %374 = vmatprep.mubr.f32.mxu0 %v66_v62  ;;  %1337 = vmatpush3.bf16.msra.mxu0 %v1336_v63  ;;  %v91_v39 = vld [vmem:[%s2353_s0 + $0x250] sm:$0xff]  ;;  %v100_v41 = vld [vmem:[%s2353_s0 + $0x298] sm:$0xff]  ;;  %v97_v42 = vld [vmem:[%s2353_s0 + $0x280] sm:$0xff] }
  0x3a   :  { %515 = vmatmul.mubr.f32.gmra.mrb[10].mxu1 %v59_v61  ;;  %1339 = vmatprep.subr.bf16.mxu0 %v1338_v5  ;;  %v99_v43 = vld [vmem:[%s2353_s0 + $0x290] sm:$0xff]  ;;  %v106_v44 = vld [vmem:[%s2353_s0 + $0x2c8] sm:$0xff]  ;;  %v108_v45 = vld [vmem:[%s2353_s0 + $0x2d8] sm:$0xff] }
  0x3b   :  { %519 = vmatprep.mubr.f32.mxu1 %v68_v0  ;;  %1369 = vmatpush3.bf16.msra.mxu1 %v1368_v1  ;;  %v105_v46 = vld [vmem:[%s2353_s0 + $0x2c0] sm:$0xff]  ;;  %v107_v47 = vld [vmem:[%s2353_s0 + $0x2d0] sm:$0xff]  ;;  %v114_v48 = vld [vmem:[%s2353_s0 + $0x308] sm:$0xff] }
  0x3c   :  { %375 = vmatmul.mubr.f32.gmra.mrb[12].mxu0 %v65_v4  ;;  %1371 = vmatprep.subr.bf16.mxu1 %v1370_v13  ;;  %v116_v49 = vld [vmem:[%s2353_s0 + $0x318] sm:$0xff]  ;;  %v113_v50 = vld [vmem:[%s2353_s0 + $0x300] sm:$0xff]  ;;  %v115_v51 = vld [vmem:[%s2353_s0 + $0x310] sm:$0xff] }
  0x3d   :  { %379 = vmatprep.mubr.f32.mxu0 %v74_v11  ;;  %1341 = vmatpush3.bf16.msra.mxu0 %v1340_v12  ;;  %v122_v52 = vld [vmem:[%s2353_s0 + $0x348] sm:$0xff]  ;;  %v124_v53 = vld [vmem:[%s2353_s0 + $0x358] sm:$0xff]  ;;  %v121_v54 = vld [vmem:[%s2353_s0 + $0x340] sm:$0xff] }
  0x3e   :  { %520 = vmatmul.mubr.f32.gmra.mrb[12].mxu1 %v67_v8  ;;  %1343 = vmatprep.subr.bf16.mxu0 %v1342_v22  ;;  %v123_v55 = vld [vmem:[%s2353_s0 + $0x350] sm:$0xff]  ;;  %v130_v56 = vld [vmem:[%s2353_s0 + $0x388] sm:$0xff]  ;;  %v132_v57 = vld [vmem:[%s2353_s0 + $0x398] sm:$0xff] }
  0x3f   :  { %524 = vmatprep.mubr.f32.mxu1 %v76_v16  ;;  %1373 = vmatpush3.bf16.msra.mxu1 %v1372_v17  ;;  %v129_v58 = vld [vmem:[%s2353_s0 + $0x380] sm:$0xff]  ;;  %v131_v59 = vld [vmem:[%s2353_s0 + $0x390] sm:$0xff]  ;;  %v138_v60 = vld [vmem:[%s2353_s0 + $0x3c8] sm:$0xff] }
  0x40   :  { %380 = vmatmul.mubr.f32.gmra.mrb[14].mxu0 %v73_v18  ;;  %1375 = vmatprep.subr.bf16.mxu1 %v1374_v30  ;;  %v140_v61 = vld [vmem:[%s2353_s0 + $0x3d8] sm:$0xff]  ;;  %v137_v62 = vld [vmem:[%s2353_s0 + $0x3c0] sm:$0xff]  ;;  %v139_v63 = vld [vmem:[%s2353_s0 + $0x3d0] sm:$0xff] }
  0x41   :  { %384 = vmatprep.mubr.f32.mxu0 %v82_v25  ;;  %1345 = vmatpush3.bf16.msra.mxu0 %v1344_v26  ;;  %v22_v0 = vld [vmem:[%s2353_s0 + $0x28] sm:$0xff]  ;;  %v24_v1 = vld [vmem:[%s2353_s0 + $0x38] sm:$0xff]  ;;  %v21_v2 = vld [vmem:[%s2353_s0 + $0x20] sm:$0xff] }
  0x42   :  { %525 = vmatmul.mubr.f32.gmra.mrb[14].mxu1 %v75_v21  ;;  %v23_v3 = vld [vmem:[%s2353_s0 + $0x30] sm:$0xff]  ;;  %v30_v4 = vld [vmem:[%s2353_s0 + $0x68] sm:$0xff]  ;;  %v32_v5 = vld [vmem:[%s2353_s0 + $0x78] sm:$0xff] }
  0x43   :  { %529 = vmatprep.mubr.f32.mxu1 %v84_v29  ;;  %1377 = vmatpush3.bf16.msra.mxu1 %v1376_v33  ;;  %v29_v6 = vld [vmem:[%s2353_s0 + $0x60] sm:$0xff]  ;;  %v31_v7 = vld [vmem:[%s2353_s0 + $0x70] sm:$0xff]  ;;  %v38_v8 = vld [vmem:[%s2353_s0 + $0xa8] sm:$0xff] }
  0x44   :  { %385 = vmatmul.mubr.f32.gmra.mrb[16].mxu0 %v81_v34  ;;  %v40_v9 = vld [vmem:[%s2353_s0 + $0xb8] sm:$0xff]  ;;  %v37_v10 = vld [vmem:[%s2353_s0 + $0xa0] sm:$0xff]  ;;  %v39_v11 = vld [vmem:[%s2353_s0 + $0xb0] sm:$0xff] }
  0x45   :  { %389 = vmatprep.mubr.f32.mxu0 %v90_v36  ;;  %v46_v12 = vld [vmem:[%s2353_s0 + $0xe8] sm:$0xff]  ;;  %v48_v13 = vld [vmem:[%s2353_s0 + $0xf8] sm:$0xff]  ;;  %v45_v14 = vld [vmem:[%s2353_s0 + $0xe0] sm:$0xff] }
  0x46   :  { %530 = vmatmul.mubr.f32.gmra.mrb[16].mxu1 %v83_v35  ;;  %v47_v15 = vld [vmem:[%s2353_s0 + $0xf0] sm:$0xff]  ;;  %v54_v16 = vld [vmem:[%s2353_s0 + $0x128] sm:$0xff]  ;;  %v56_v17 = vld [vmem:[%s2353_s0 + $0x138] sm:$0xff] }
  0x47   :  { %534 = vmatprep.mubr.f32.mxu1 %v92_v37  ;;  %v53_v18 = vld [vmem:[%s2353_s0 + $0x120] sm:$0xff]  ;;  %v55_v19 = vld [vmem:[%s2353_s0 + $0x130] sm:$0xff]  ;;  %v62_v20 = vld [vmem:[%s2353_s0 + $0x168] sm:$0xff] }
  0x48   :  { %390 = vmatmul.mubr.f32.gmra.mrb[18].mxu0 %v89_v38  ;;  %v64_v21 = vld [vmem:[%s2353_s0 + $0x178] sm:$0xff]  ;;  %v61_v22 = vld [vmem:[%s2353_s0 + $0x160] sm:$0xff]  ;;  %v63_v23 = vld [vmem:[%s2353_s0 + $0x170] sm:$0xff] }
  0x49   :  { %394 = vmatprep.mubr.f32.mxu0 %v98_v40  ;;  %v70_v24 = vld [vmem:[%s2353_s0 + $0x1a8] sm:$0xff]  ;;  %v72_v25 = vld [vmem:[%s2353_s0 + $0x1b8] sm:$0xff]  ;;  %v69_v26 = vld [vmem:[%s2353_s0 + $0x1a0] sm:$0xff] }
  0x4a   :  { %535 = vmatmul.mubr.f32.gmra.mrb[18].mxu1 %v91_v39  ;;  %v71_v27 = vld [vmem:[%s2353_s0 + $0x1b0] sm:$0xff]  ;;  %v78_v28 = vld [vmem:[%s2353_s0 + $0x1e8] sm:$0xff]  ;;  %v80_v29 = vld [vmem:[%s2353_s0 + $0x1f8] sm:$0xff] }
  0x4b   :  { %539 = vmatprep.mubr.f32.mxu1 %v100_v41  ;;  %v77_v30 = vld [vmem:[%s2353_s0 + $0x1e0] sm:$0xff]  ;;  %v79_v31 = vld [vmem:[%s2353_s0 + $0x1f0] sm:$0xff]  ;;  %v86_v32 = vld [vmem:[%s2353_s0 + $0x228] sm:$0xff] }
  0x4c   :  { %395 = vmatmul.mubr.f32.gmra.mrb[20].mxu0 %v97_v42  ;;  %v88_v33 = vld [vmem:[%s2353_s0 + $0x238] sm:$0xff]  ;;  %v85_v34 = vld [vmem:[%s2353_s0 + $0x220] sm:$0xff]  ;;  %v87_v35 = vld [vmem:[%s2353_s0 + $0x230] sm:$0xff] }
  0x4d   :  { %399 = vmatprep.mubr.f32.mxu0 %v106_v44  ;;  %v94_v36 = vld [vmem:[%s2353_s0 + $0x268] sm:$0xff]  ;;  %v96_v37 = vld [vmem:[%s2353_s0 + $0x278] sm:$0xff]  ;;  %v93_v38 = vld [vmem:[%s2353_s0 + $0x260] sm:$0xff] }
  0x4e   :  { %540 = vmatmul.mubr.f32.gmra.mrb[20].mxu1 %v99_v43  ;;  %v95_v39 = vld [vmem:[%s2353_s0 + $0x270] sm:$0xff]  ;;  %v102_v40 = vld [vmem:[%s2353_s0 + $0x2a8] sm:$0xff]  ;;  %v104_v41 = vld [vmem:[%s2353_s0 + $0x2b8] sm:$0xff] }
  0x4f   :  { %544 = vmatprep.mubr.f32.mxu1 %v108_v45  ;;  %v101_v42 = vld [vmem:[%s2353_s0 + $0x2a0] sm:$0xff]  ;;  %v103_v43 = vld [vmem:[%s2353_s0 + $0x2b0] sm:$0xff]  ;;  %v110_v44 = vld [vmem:[%s2353_s0 + $0x2e8] sm:$0xff] }
  0x50   :  { %400 = vmatmul.mubr.f32.gmra.mrb[22].mxu0 %v105_v46  ;;  %v112_v45 = vld [vmem:[%s2353_s0 + $0x2f8] sm:$0xff]  ;;  %v109_v46 = vld [vmem:[%s2353_s0 + $0x2e0] sm:$0xff] }
  0x51   :  { %404 = vmatprep.mubr.f32.mxu0 %v114_v48  ;;  %v118_v48 = vld [vmem:[%s2353_s0 + $0x328] sm:$0xff] }
  0x52   :  { %545 = vmatmul.mubr.f32.gmra.mrb[22].mxu1 %v107_v47  ;;  %v111_v47 = vld [vmem:[%s2353_s0 + $0x2f0] sm:$0xff] }
  0x53   :  { %549 = vmatprep.mubr.f32.mxu1 %v116_v49  ;;  %v120_v49 = vld [vmem:[%s2353_s0 + $0x338] sm:$0xff] }
  0x54   :  { %405 = vmatmul.mubr.f32.gmra.mrb[24].mxu0 %v113_v50  ;;  %v117_v50 = vld [vmem:[%s2353_s0 + $0x320] sm:$0xff] }
  0x55   :  { %409 = vmatprep.mubr.f32.mxu0 %v122_v52  ;;  %v126_v52 = vld [vmem:[%s2353_s0 + $0x368] sm:$0xff] }
  0x56   :  { %550 = vmatmul.mubr.f32.gmra.mrb[24].mxu1 %v115_v51  ;;  %v119_v51 = vld [vmem:[%s2353_s0 + $0x330] sm:$0xff] }
  0x57   :  { %554 = vmatprep.mubr.f32.mxu1 %v124_v53  ;;  %v128_v53 = vld [vmem:[%s2353_s0 + $0x378] sm:$0xff] }
  0x58   :  { %410 = vmatmul.mubr.f32.gmra.mrb[26].mxu0 %v121_v54  ;;  %v125_v54 = vld [vmem:[%s2353_s0 + $0x360] sm:$0xff] }
  0x59   :  { %414 = vmatprep.mubr.f32.mxu0 %v130_v56  ;;  %v134_v56 = vld [vmem:[%s2353_s0 + $0x3a8] sm:$0xff] }
  0x5a   :  { %555 = vmatmul.mubr.f32.gmra.mrb[26].mxu1 %v123_v55  ;;  %v127_v55 = vld [vmem:[%s2353_s0 + $0x370] sm:$0xff] }
  0x5b   :  { %559 = vmatprep.mubr.f32.mxu1 %v132_v57  ;;  %v136_v57 = vld [vmem:[%s2353_s0 + $0x3b8] sm:$0xff] }
  0x5c   :  { %415 = vmatmul.mubr.f32.gmra.mrb[28].mxu0 %v129_v58  ;;  %v133_v58 = vld [vmem:[%s2353_s0 + $0x3a0] sm:$0xff] }
  0x5d   :  { %419 = vmatprep.mubr.f32.mxu0 %v138_v60  ;;  %v142_v60 = vld [vmem:[%s2353_s0 + $0x3e8] sm:$0xff] }
  0x5e   :  { %560 = vmatmul.mubr.f32.gmra.mrb[28].mxu1 %v131_v59  ;;  %v135_v59 = vld [vmem:[%s2353_s0 + $0x3b0] sm:$0xff] }
  0x5f   :  { %564 = vmatprep.mubr.f32.mxu1 %v140_v61  ;;  %v144_v61 = vld [vmem:[%s2353_s0 + $0x3f8] sm:$0xff] }
  0x60   :  { %420 = vmatmul.mubr.f32.gmra.mrb[30].mxu0 %v137_v62  ;;  %v141_v62 = vld [vmem:[%s2353_s0 + $0x3e0] sm:$0xff] }
  0x61   :  { %634 = vmatprep.mubr.f32.mxu0 %v22_v0 }
  0x62   :  { %565 = vmatmul.mubr.f32.gmra.mrb[30].mxu1 %v139_v63  ;;  %v143_v63 = vld [vmem:[%s2353_s0 + $0x3f0] sm:$0xff] }
  0x63   :  { %779 = vmatprep.mubr.f32.mxu1 %v24_v1  ;;  %v2174_v1 = vld [vmem:[%s2354_s2] ss:$0 sm:$0xff] }
  0x64   :  { %635 = vmatmul.mubr.f32.vlgmr.msra.gmra.mrb[32].mxu0 %v21_v2 }
  0x65   :  { %639 = vmatprep.mubr.f32.mxu0 %v30_v4 }
  0x66   :  { %780 = vmatmul.mubr.f32.vlgmr.msra.gmra.mrb[32].mxu1 %v23_v3 }
  0x67   :  { %784 = vmatprep.mubr.f32.mxu1 %v32_v5 }
  0x68   :  { %640 = vmatmul.mubr.f32.gmra.mrb[34].mxu0 %v29_v6 }
  0x69   :  { %644 = vmatprep.mubr.f32.mxu0 %v38_v8 }
  0x6a   :  { %785 = vmatmul.mubr.f32.gmra.mrb[34].mxu1 %v31_v7 }
  0x6b   :  { %789 = vmatprep.mubr.f32.mxu1 %v40_v9 }
  0x6c   :  { %645 = vmatmul.mubr.f32.gmra.mrb[36].mxu0 %v37_v10 }
  0x6d   :  { %649 = vmatprep.mubr.f32.mxu0 %v46_v12 }
  0x6e   :  { %790 = vmatmul.mubr.f32.gmra.mrb[36].mxu1 %v39_v11 }
  0x6f   :  { %794 = vmatprep.mubr.f32.mxu1 %v48_v13 }
  0x70   :  { %650 = vmatmul.mubr.f32.gmra.mrb[38].mxu0 %v45_v14 }
  0x71   :  { %654 = vmatprep.mubr.f32.mxu0 %v54_v16 }
  0x72   :  { %795 = vmatmul.mubr.f32.gmra.mrb[38].mxu1 %v47_v15 }
  0x73   :  { %799 = vmatprep.mubr.f32.mxu1 %v56_v17 }
  0x74   :  { %655 = vmatmul.mubr.f32.gmra.mrb[40].mxu0 %v53_v18 }
  0x75   :  { %659 = vmatprep.mubr.f32.mxu0 %v62_v20 }
  0x76   :  { %800 = vmatmul.mubr.f32.gmra.mrb[40].mxu1 %v55_v19 }
  0x77   :  { %804 = vmatprep.mubr.f32.mxu1 %v64_v21 }
  0x78   :  { %660 = vmatmul.mubr.f32.gmra.mrb[42].mxu0 %v61_v22 }
  0x79   :  { %664 = vmatprep.mubr.f32.mxu0 %v70_v24 }
  0x7a   :  { %805 = vmatmul.mubr.f32.gmra.mrb[42].mxu1 %v63_v23 }
  0x7b   :  { %809 = vmatprep.mubr.f32.mxu1 %v72_v25 }
  0x7c   :  { %665 = vmatmul.mubr.f32.gmra.mrb[44].mxu0 %v69_v26 }
  0x7d   :  { %669 = vmatprep.mubr.f32.mxu0 %v78_v28 }
  0x7e   :  { %810 = vmatmul.mubr.f32.gmra.mrb[44].mxu1 %v71_v27 }
  0x7f   :  { %814 = vmatprep.mubr.f32.mxu1 %v80_v29 }
  0x80   :  { %670 = vmatmul.mubr.f32.gmra.mrb[46].mxu0 %v77_v30 }
  0x81   :  { %674 = vmatprep.mubr.f32.mxu0 %v86_v32 }
  0x82   :  { %815 = vmatmul.mubr.f32.gmra.mrb[46].mxu1 %v79_v31 }
  0x83   :  { %819 = vmatprep.mubr.f32.mxu1 %v88_v33 }
  0x84   :  { %675 = vmatmul.mubr.f32.gmra.mrb[48].mxu0 %v85_v34 }
  0x85   :  { %679 = vmatprep.mubr.f32.mxu0 %v94_v36 }
  0x86   :  { %820 = vmatmul.mubr.f32.gmra.mrb[48].mxu1 %v87_v35 }
  0x87   :  { %824 = vmatprep.mubr.f32.mxu1 %v96_v37 }
  0x88   :  { %680 = vmatmul.mubr.f32.gmra.mrb[50].mxu0 %v93_v38 }
  0x89   :  { %684 = vmatprep.mubr.f32.mxu0 %v102_v40 }
  0x8a   :  { %825 = vmatmul.mubr.f32.gmra.mrb[50].mxu1 %v95_v39 }
  0x8b   :  { %829 = vmatprep.mubr.f32.mxu1 %v104_v41 }
  0x8c   :  { %685 = vmatmul.mubr.f32.gmra.mrb[52].mxu0 %v101_v42 }
  0x8d   :  { %689 = vmatprep.mubr.f32.mxu0 %v110_v44 }
  0x8e   :  { %830 = vmatmul.mubr.f32.gmra.mrb[52].mxu1 %v103_v43 }
  0x8f   :  { %834 = vmatprep.mubr.f32.mxu1 %v112_v45 }
  0x90   :  { %690 = vmatmul.mubr.f32.gmra.mrb[54].mxu0 %v109_v46 }
  0x91   :  { %694 = vmatprep.mubr.f32.mxu0 %v118_v48 }
  0x92   :  { %835 = vmatmul.mubr.f32.gmra.mrb[54].mxu1 %v111_v47 }
  0x93   :  { %839 = vmatprep.mubr.f32.mxu1 %v120_v49 }
  0x94   :  { %695 = vmatmul.mubr.f32.gmra.mrb[56].mxu0 %v117_v50 }
  0x95   :  { %699 = vmatprep.mubr.f32.mxu0 %v126_v52 }
  0x96   :  { %840 = vmatmul.mubr.f32.gmra.mrb[56].mxu1 %v119_v51 }
  0x97   :  { %844 = vmatprep.mubr.f32.mxu1 %v128_v53 }
  0x98   :  { %700 = vmatmul.mubr.f32.gmra.mrb[58].mxu0 %v125_v54 }
  0x99   :  { %704 = vmatprep.mubr.f32.mxu0 %v134_v56 }
  0x9a   :  { %845 = vmatmul.mubr.f32.gmra.mrb[58].mxu1 %v127_v55 }
  0x9b   :  { %849 = vmatprep.mubr.f32.mxu1 %v136_v57 }
  0x9c   :  { %705 = vmatmul.mubr.f32.gmra.mrb[60].mxu0 %v133_v58 }
  0x9d   :  { %709 = vmatprep.mubr.f32.mxu0 %v142_v60 }
  0x9e   :  { %850 = vmatmul.mubr.f32.gmra.mrb[60].mxu1 %v135_v59 }
  0x9f   :  { %854 = vmatprep.mubr.f32.mxu1 %v144_v61 }
  0xa0   :  { %710 = vmatmul.mubr.f32.gmra.mrb[62].mxu0 %v141_v62 }
  0xa2   :  { %855 = vmatmul.mubr.f32.gmra.mrb[62].mxu1 %v143_v63 }
  0xf7   :  { %v962_v0 = vpop.f32.mrb[0].mxu0 }
  0xf8   :  { %v963_v2 = vpop.f32.mrb[1].mxu0 }
  0xf9   :  { %v1042_v3 = vpop.f32.mrb[0].mxu1  ;;  %v964_v4 = vadd.f32 %v963_v2, %v962_v0 }
  0xfa   :  { %v1043_v5 = vpop.f32.mrb[1].mxu1 }
  0xfb   :  { %v1044_v6 = vadd.f32 %v1043_v5, %v1042_v3  ;;  %v347_v7 = vadd.f32 %v964_v4, %v2174_v1  ;;  %v965_v8 = vpop.f32.mrb[2].mxu0 }
  0xfc   :  { %v966_v9 = vpop.f32.mrb[3].mxu0 }
  0xfd   :  { %v1045_v10 = vpop.f32.mrb[2].mxu1  ;;  %v2177_v11 = vadd.f32 %v1044_v6, %v347_v7  ;;  %v967_v12 = vadd.f32 %v966_v9, %v965_v8 }
  0xfe   :  { %v1046_v13 = vpop.f32.mrb[3].mxu1 }
  0xff   :  { %v1047_v14 = vadd.f32 %v1046_v13, %v1045_v10  ;;  %v352_v15 = vadd.f32 %v967_v12, %v2174_v1  ;;  %v968_v16 = vpop.f32.mrb[4].mxu0 }
 0x100   :  { %v969_v17 = vpop.f32.mrb[5].mxu0 }
 0x101   :  { %v1048_v18 = vpop.f32.mrb[4].mxu1  ;;  %v2180_v19 = vadd.f32 %v1047_v14, %v352_v15  ;;  %v970_v20 = vadd.f32 %v969_v17, %v968_v16 }
 0x102   :  { %v1049_v21 = vpop.f32.mrb[5].mxu1 }
 0x103   :  { %v1050_v22 = vadd.f32 %v1049_v21, %v1048_v18  ;;  %v357_v23 = vadd.f32 %v970_v20, %v2174_v1  ;;  %v971_v24 = vpop.f32.mrb[6].mxu0 }
 0x104   :  { %v972_v25 = vpop.f32.mrb[7].mxu0 }
 0x105   :  { %v1051_v26 = vpop.f32.mrb[6].mxu1  ;;  %v2183_v27 = vadd.f32 %v1050_v22, %v357_v23  ;;  %v973_v28 = vadd.f32 %v972_v25, %v971_v24 }
 0x106   :  { %v1052_v29 = vpop.f32.mrb[7].mxu1 }
 0x107   :  { %v1053_v30 = vadd.f32 %v1052_v29, %v1051_v26  ;;  %v362_v31 = vadd.f32 %v973_v28, %v2174_v1  ;;  %v974_v32 = vpop.f32.mrb[8].mxu0 }
 0x108   :  { %v975_v33 = vpop.f32.mrb[9].mxu0 }
 0x109   :  { %v1054_v34 = vpop.f32.mrb[8].mxu1  ;;  %v2186_v35 = vadd.f32 %v1053_v30, %v362_v31  ;;  %v976_v36 = vadd.f32 %v975_v33, %v974_v32 }
 0x10a   :  { %v1055_v37 = vpop.f32.mrb[9].mxu1 }
 0x10b   :  { %v1056_v38 = vadd.f32 %v1055_v37, %v1054_v34  ;;  %v367_v39 = vadd.f32 %v976_v36, %v2174_v1  ;;  %v977_v40 = vpop.f32.mrb[10].mxu0 }
 0x10c   :  { %v978_v41 = vpop.f32.mrb[11].mxu0 }
 0x10d   :  { %v1057_v42 = vpop.f32.mrb[10].mxu1  ;;  %v2189_v43 = vadd.f32 %v1056_v38, %v367_v39  ;;  %v979_v44 = vadd.f32 %v978_v41, %v977_v40 }
 0x10e   :  { %v1058_v45 = vpop.f32.mrb[11].mxu1 }
 0x10f   :  { %v1059_v46 = vadd.f32 %v1058_v45, %v1057_v42  ;;  %v372_v47 = vadd.f32 %v979_v44, %v2174_v1  ;;  %v980_v48 = vpop.f32.mrb[12].mxu0 }
 0x110   :  { %v981_v49 = vpop.f32.mrb[13].mxu0 }
 0x111   :  { %v1060_v50 = vpop.f32.mrb[12].mxu1  ;;  %v2192_v51 = vadd.f32 %v1059_v46, %v372_v47  ;;  %v982_v52 = vadd.f32 %v981_v49, %v980_v48 }
 0x112   :  { %v1061_v53 = vpop.f32.mrb[13].mxu1 }
 0x113   :  { %v1062_v54 = vadd.f32 %v1061_v53, %v1060_v50  ;;  %v377_v55 = vadd.f32 %v982_v52, %v2174_v1  ;;  %v983_v56 = vpop.f32.mrb[14].mxu0 }
 0x114   :  { %v984_v57 = vpop.f32.mrb[15].mxu0 }
 0x115   :  { %v1063_v58 = vpop.f32.mrb[14].mxu1  ;;  %v2195_v59 = vadd.f32 %v1062_v54, %v377_v55  ;;  %v985_v60 = vadd.f32 %v984_v57, %v983_v56 }
 0x116   :  { %v1064_v61 = vpop.f32.mrb[15].mxu1 }
 0x117   :  { %v1065_v62 = vadd.f32 %v1064_v61, %v1063_v58  ;;  %v382_v63 = vadd.f32 %v985_v60, %v2174_v1  ;;  %v986_v0 = vpop.f32.mrb[16].mxu0 }
 0x118   :  { %v987_v2 = vpop.f32.mrb[17].mxu0 }
 0x119   :  { %v1066_v3 = vpop.f32.mrb[16].mxu1  ;;  %v2198_v4 = vadd.f32 %v1065_v62, %v382_v63  ;;  %v988_v5 = vadd.f32 %v987_v2, %v986_v0 }
 0x11a   :  { %v1067_v6 = vpop.f32.mrb[17].mxu1 }
 0x11b   :  { %v1068_v7 = vadd.f32 %v1067_v6, %v1066_v3  ;;  %v387_v8 = vadd.f32 %v988_v5, %v2174_v1  ;;  %v989_v9 = vpop.f32.mrb[18].mxu0 }
 0x11c   :  { %v990_v10 = vpop.f32.mrb[19].mxu0 }
 0x11d   :  { %v1069_v12 = vpop.f32.mrb[18].mxu1  ;;  %v2201_v13 = vadd.f32 %v1068_v7, %v387_v8  ;;  %v991_v14 = vadd.f32 %v990_v10, %v989_v9 }
 0x11e   :  { %v1070_v15 = vpop.f32.mrb[19].mxu1 }
 0x11f   :  { %v1071_v16 = vadd.f32 %v1070_v15, %v1069_v12  ;;  %v392_v17 = vadd.f32 %v991_v14, %v2174_v1  ;;  %v992_v18 = vpop.f32.mrb[20].mxu0 }
 0x120   :  { %v993_v20 = vpop.f32.mrb[21].mxu0 }
 0x121   :  { %v1072_v21 = vpop.f32.mrb[20].mxu1  ;;  %v2204_v22 = vadd.f32 %v1071_v16, %v392_v17  ;;  %v994_v23 = vadd.f32 %v993_v20, %v992_v18 }
 0x122   :  { %v1073_v24 = vpop.f32.mrb[21].mxu1 }
 0x123   :  { %v1074_v25 = vadd.f32 %v1073_v24, %v1072_v21  ;;  %v397_v26 = vadd.f32 %v994_v23, %v2174_v1  ;;  %v995_v28 = vpop.f32.mrb[22].mxu0 }
 0x124   :  { %v996_v29 = vpop.f32.mrb[23].mxu0 }
 0x125   :  { %v1075_v30 = vpop.f32.mrb[22].mxu1  ;;  %v2207_v31 = vadd.f32 %v1074_v25, %v397_v26  ;;  %v997_v32 = vadd.f32 %v996_v29, %v995_v28 }
 0x126   :  { %v1076_v33 = vpop.f32.mrb[23].mxu1 }
 0x127   :  { %v1077_v34 = vadd.f32 %v1076_v33, %v1075_v30  ;;  %v402_v36 = vadd.f32 %v997_v32, %v2174_v1  ;;  %v998_v37 = vpop.f32.mrb[24].mxu0 }
 0x128   :  { %v999_v38 = vpop.f32.mrb[25].mxu0 }
 0x129   :  { %v1078_v39 = vpop.f32.mrb[24].mxu1  ;;  %v2210_v40 = vadd.f32 %v1077_v34, %v402_v36  ;;  %v1000_v41 = vadd.f32 %v999_v38, %v998_v37 }
 0x12a   :  { %v1079_v42 = vpop.f32.mrb[25].mxu1 }
 0x12b   :  { %v1080_v44 = vadd.f32 %v1079_v42, %v1078_v39  ;;  %v407_v45 = vadd.f32 %v1000_v41, %v2174_v1  ;;  %v1001_v46 = vpop.f32.mrb[26].mxu0  ;;  %v877_v41 = vld [vmem:[%s2355_s3 + $0x8] sm:$0xff] }
 0x12c   :  { %v1002_v47 = vpop.f32.mrb[27].mxu0 }
 0x12d   :  { %v1081_v48 = vpop.f32.mrb[26].mxu1  ;;  %v2213_v49 = vadd.f32 %v1080_v44, %v407_v45  ;;  %v1003_v50 = vadd.f32 %v1002_v47, %v1001_v46 }
 0x12e   :  { %v1082_v52 = vpop.f32.mrb[27].mxu1 }
 0x12f   :  { %v1083_v53 = vadd.f32 %v1082_v52, %v1081_v48  ;;  %v412_v54 = vadd.f32 %v1003_v50, %v2174_v1  ;;  %v1004_v55 = vpop.f32.mrb[28].mxu0 }
 0x130   :  { %v1005_v56 = vpop.f32.mrb[29].mxu0 }
 0x131   :  { %v1084_v57 = vpop.f32.mrb[28].mxu1  ;;  %v2216_v58 = vadd.f32 %v1083_v53, %v412_v54  ;;  %v1006_v60 = vadd.f32 %v1005_v56, %v1004_v55  ;;  %v878_v54 = vld [vmem:[%s2355_s3 + $0x10] sm:$0xff] }
 0x132   :  { %v1085_v61 = vpop.f32.mrb[29].mxu1 }
 0x133   :  { %v1086_v62 = vadd.f32 %v1085_v61, %v1084_v57  ;;  %v417_v63 = vadd.f32 %v1006_v60, %v2174_v1  ;;  %v1007_v0 = vpop.f32.mrb[30].mxu0 }
 0x134   :  { %v1008_v2 = vpop.f32.mrb[31].mxu0 }
 0x135   :  { %v1087_v3 = vpop.f32.mrb[30].mxu1  ;;  %v2219_v5 = vadd.f32 %v1086_v62, %v417_v63  ;;  %v1009_v6 = vadd.f32 %v1008_v2, %v1007_v0 }
 0x136   :  { %v1088_v7 = vpop.f32.mrb[31].mxu1 }
 0x137   :  { %v1089_v8 = vadd.f32 %v1088_v7, %v1087_v3  ;;  %v422_v9 = vadd.f32 %v1009_v6, %v2174_v1  ;;  %v1122_v10 = vpop.f32.mrb[32].mxu0  ;;  %v876_v1 = vld [vmem:[%s2355_s3] sm:$0xff]  ;;  %v879_v3 = vld [vmem:[%s2355_s3 + $0x18] sm:$0xff] }
 0x138   :  { %v1123_v12 = vpop.f32.mrb[33].mxu0 }
 0x139   :  { %v1202_v14 = vpop.f32.mrb[32].mxu1  ;;  %v2222_v15 = vadd.f32 %v1089_v8, %v422_v9  ;;  %v1124_v16 = vadd.f32 %v1123_v12, %v1122_v10 }
 0x13a   :  { %v1203_v17 = vpop.f32.mrb[33].mxu1 }
 0x13b   :  { %v1204_v18 = vadd.f32 %v1203_v17, %v1202_v14  ;;  %v637_v20 = vadd.f32 %v1124_v16, %v2177_v11  ;;  %v1125_v21 = vpop.f32.mrb[34].mxu0 }
 0x13c   :  { %v1126_v23 = vpop.f32.mrb[35].mxu0 }
 0x13d   :  { %v1205_v24 = vpop.f32.mrb[34].mxu1  ;;  %v782_v25 = vadd.f32 %v1204_v18, %v637_v20  ;;  %v1127_v26 = vadd.f32 %v1126_v23, %v1125_v21  ;;  %v880_v18 = vld [vmem:[%s2355_s3 + $0x20] sm:$0xff] }
 0x13e   :  { %v1206_v28 = vpop.f32.mrb[35].mxu1 }
 0x13f   :  { %v1207_v29 = vadd.f32 %v1206_v28, %v1205_v24  ;;  %v860_v30 = vmax.f32 %v782_v25, 0.0  ;;  %v642_v32 = vadd.f32 %v1127_v26, %v2180_v19  ;;  %v1128_v33 = vpop.f32.mrb[36].mxu0 }
 0x140   :  { %v1129_v34 = vpop.f32.mrb[37].mxu0 }
 0x141   :  { %v1208_v36 = vpop.f32.mrb[36].mxu1  ;;  %v892_v37 = vadd.f32 %v876_v1, %v860_v30  ;;  %v787_v11 = vadd.f32 %v1207_v29, %v642_v32  ;;  %v1130_v38 = vadd.f32 %v1129_v34, %v1128_v33  ;;  %v881_v30 = vld [vmem:[%s2355_s3 + $0x28] sm:$0xff] }
 0x142   :  { %v1209_v39 = vpop.f32.mrb[37].mxu1 }
 0x143   :  { %v1210_v42 = vadd.f32 %v1209_v39, %v1208_v36  ;;  %909 = vst.msk [vmem:[%s2356_s4] sm:$0xff] %vm908_vm0, %v892_v37  ;;  %v861_v44 = vmax.f32 %v787_v11, 0.0  ;;  %v647_v19 = vadd.f32 %v1130_v38, %v2183_v27  ;;  %v1131_v45 = vpop.f32.mrb[38].mxu0 }
 0x144   :  { %v1132_v46 = vpop.f32.mrb[39].mxu0 }
 0x145   :  { %v1211_v47 = vpop.f32.mrb[38].mxu1  ;;  %v893_v48 = vadd.f32 %v877_v41, %v861_v44  ;;  %v792_v50 = vadd.f32 %v1210_v42, %v647_v19  ;;  %v1133_v52 = vadd.f32 %v1132_v46, %v1131_v45  ;;  %v882_v42 = vld [vmem:[%s2355_s3 + $0x30] sm:$0xff] }
 0x146   :  { %v1212_v53 = vpop.f32.mrb[39].mxu1 }
 0x147   :  { %v1213_v55 = vadd.f32 %v1212_v53, %v1211_v47  ;;  %910 = vst.msk [vmem:[%s2356_s4 + $0x8] sm:$0xff] %vm908_vm0, %v893_v48  ;;  %v862_v56 = vmax.f32 %v792_v50, 0.0  ;;  %v652_v27 = vadd.f32 %v1133_v52, %v2186_v35  ;;  %v1134_v57 = vpop.f32.mrb[40].mxu0 }
 0x148   :  { %v1135_v60 = vpop.f32.mrb[41].mxu0 }
 0x149   :  { %v1214_v61 = vpop.f32.mrb[40].mxu1  ;;  %v894_v62 = vadd.f32 %v878_v54, %v862_v56  ;;  %v797_v63 = vadd.f32 %v1213_v55, %v652_v27  ;;  %v1136_v0 = vadd.f32 %v1135_v60, %v1134_v57  ;;  %v883_v54 = vld [vmem:[%s2355_s3 + $0x38] sm:$0xff] }
 0x14a   :  { %v1215_v2 = vpop.f32.mrb[41].mxu1 }
 0x14b   :  { %v1216_v6 = vadd.f32 %v1215_v2, %v1214_v61  ;;  %911 = vst.msk [vmem:[%s2356_s4 + $0x10] sm:$0xff] %vm908_vm0, %v894_v62  ;;  %v863_v7 = vmax.f32 %v797_v63, 0.0  ;;  %v657_v35 = vadd.f32 %v1136_v0, %v2189_v43  ;;  %v1137_v8 = vpop.f32.mrb[42].mxu0  ;;  %v884_v2 = vld [vmem:[%s2355_s3 + $0x40] sm:$0xff] }
 0x14c   :  { %v1138_v9 = vpop.f32.mrb[43].mxu0 }
 0x14d   :  { %v1217_v10 = vpop.f32.mrb[42].mxu1  ;;  %v895_v12 = vadd.f32 %v879_v3, %v863_v7  ;;  %v802_v14 = vadd.f32 %v1216_v6, %v657_v35  ;;  %v1139_v16 = vadd.f32 %v1138_v9, %v1137_v8 }
 0x14e   :  { %v1218_v17 = vpop.f32.mrb[43].mxu1 }
 0x14f   :  { %v1219_v20 = vadd.f32 %v1218_v17, %v1217_v10  ;;  %912 = vst.msk [vmem:[%s2356_s4 + $0x18] sm:$0xff] %vm908_vm0, %v895_v12  ;;  %v864_v21 = vmax.f32 %v802_v14, 0.0  ;;  %v662_v43 = vadd.f32 %v1139_v16, %v2192_v51  ;;  %v1140_v23 = vpop.f32.mrb[44].mxu0  ;;  %v885_v16 = vld [vmem:[%s2355_s3 + $0x48] sm:$0xff] }
 0x150   :  { %v1141_v24 = vpop.f32.mrb[45].mxu0 }
 0x151   :  { %v1220_v25 = vpop.f32.mrb[44].mxu1  ;;  %v896_v26 = vadd.f32 %v880_v18, %v864_v21  ;;  %v807_v28 = vadd.f32 %v1219_v20, %v662_v43  ;;  %v1142_v1 = vadd.f32 %v1141_v24, %v1140_v23 }
 0x152   :  { %v1221_v29 = vpop.f32.mrb[45].mxu1 }
 0x153   :  { %v1222_v32 = vadd.f32 %v1221_v29, %v1220_v25  ;;  %913 = vst.msk [vmem:[%s2356_s4 + $0x20] sm:$0xff] %vm908_vm0, %v896_v26  ;;  %v865_v33 = vmax.f32 %v807_v28, 0.0  ;;  %v667_v51 = vadd.f32 %v1142_v1, %v2195_v59  ;;  %v1143_v34 = vpop.f32.mrb[46].mxu0  ;;  %v886_v28 = vld [vmem:[%s2355_s3 + $0x50] sm:$0xff] }
 0x154   :  { %v1144_v36 = vpop.f32.mrb[47].mxu0 }
 0x155   :  { %v1223_v37 = vpop.f32.mrb[46].mxu1  ;;  %v897_v11 = vadd.f32 %v881_v30, %v865_v33  ;;  %v812_v38 = vadd.f32 %v1222_v32, %v667_v51  ;;  %v1145_v39 = vadd.f32 %v1144_v36, %v1143_v34 }
 0x156   :  { %v1224_v41 = vpop.f32.mrb[47].mxu1 }
 0x157   :  { %v1225_v44 = vadd.f32 %v1224_v41, %v1223_v37  ;;  %914 = vst.msk [vmem:[%s2356_s4 + $0x28] sm:$0xff] %vm908_vm0, %v897_v11  ;;  %v866_v19 = vmax.f32 %v812_v38, 0.0  ;;  %v672_v59 = vadd.f32 %v1145_v39, %v2198_v4  ;;  %v1146_v45 = vpop.f32.mrb[48].mxu0  ;;  %v887_v11 = vld [vmem:[%s2355_s3 + $0x58] sm:$0xff] }
 0x158   :  { %v1147_v46 = vpop.f32.mrb[49].mxu0 }
 0x159   :  { %v1226_v47 = vpop.f32.mrb[48].mxu1  ;;  %v898_v48 = vadd.f32 %v882_v42, %v866_v19  ;;  %v817_v50 = vadd.f32 %v1225_v44, %v672_v59  ;;  %v1148_v52 = vadd.f32 %v1147_v46, %v1146_v45 }
 0x15a   :  { %v1227_v53 = vpop.f32.mrb[49].mxu1 }
 0x15b   :  { %v1228_v55 = vadd.f32 %v1227_v53, %v1226_v47  ;;  %915 = vst.msk [vmem:[%s2356_s4 + $0x30] sm:$0xff] %vm908_vm0, %v898_v48  ;;  %v867_v56 = vmax.f32 %v817_v50, 0.0  ;;  %v677_v4 = vadd.f32 %v1148_v52, %v2201_v13  ;;  %v1149_v27 = vpop.f32.mrb[50].mxu0  ;;  %v888_v47 = vld [vmem:[%s2355_s3 + $0x60] sm:$0xff] }
 0x15c   :  { %v1150_v57 = vpop.f32.mrb[51].mxu0 }
 0x15d   :  { %v1229_v60 = vpop.f32.mrb[50].mxu1  ;;  %v899_v61 = vadd.f32 %v883_v54, %v867_v56  ;;  %v822_v62 = vadd.f32 %v1228_v55, %v677_v4  ;;  %v1151_v63 = vadd.f32 %v1150_v57, %v1149_v27  ;;  %v889_v57 = vld [vmem:[%s2355_s3 + $0x68] sm:$0xff] }
 0x15e   :  { %v1230_v0 = vpop.f32.mrb[51].mxu1 }
 0x15f   :  { %v1231_v3 = vadd.f32 %v1230_v0, %v1229_v60  ;;  %916 = vst.msk [vmem:[%s2356_s4 + $0x38] sm:$0xff] %vm908_vm0, %v899_v61  ;;  %v868_v6 = vmax.f32 %v822_v62, 0.0  ;;  %v682_v13 = vadd.f32 %v1151_v63, %v2204_v22  ;;  %v1152_v7 = vpop.f32.mrb[52].mxu0 }
 0x160   :  { %v1153_v35 = vpop.f32.mrb[53].mxu0 }
 0x161   :  { %v1232_v8 = vpop.f32.mrb[52].mxu1  ;;  %v900_v9 = vadd.f32 %v884_v2, %v868_v6  ;;  %v827_v10 = vadd.f32 %v1231_v3, %v682_v13  ;;  %v1154_v12 = vadd.f32 %v1153_v35, %v1152_v7  ;;  %v890_v7 = vld [vmem:[%s2355_s3 + $0x70] sm:$0xff] }
 0x162   :  { %v1233_v14 = vpop.f32.mrb[53].mxu1 }
 0x163   :  { %v1234_v17 = vadd.f32 %v1233_v14, %v1232_v8  ;;  %917 = vst.msk [vmem:[%s2356_s4 + $0x40] sm:$0xff] %vm908_vm0, %v900_v9  ;;  %v869_v18 = vmax.f32 %v827_v10, 0.0  ;;  %v687_v22 = vadd.f32 %v1154_v12, %v2207_v31  ;;  %v1155_v20 = vpop.f32.mrb[54].mxu0  ;;  %v891_v12 = vld [vmem:[%s2355_s3 + $0x78] sm:$0xff] }
 0x164   :  { %v1156_v21 = vpop.f32.mrb[55].mxu0 }
 0x165   :  { %v1235_v43 = vpop.f32.mrb[54].mxu1  ;;  %v901_v23 = vadd.f32 %v885_v16, %v869_v18  ;;  %v832_v24 = vadd.f32 %v1234_v17, %v687_v22  ;;  %v1157_v25 = vadd.f32 %v1156_v21, %v1155_v20 }
 0x166   :  { %v1236_v26 = vpop.f32.mrb[55].mxu1 }
 0x167   :  { %v1237_v1 = vadd.f32 %v1236_v26, %v1235_v43  ;;  %918 = vst.msk [vmem:[%s2356_s4 + $0x48] sm:$0xff] %vm908_vm0, %v901_v23  ;;  %v870_v29 = vmax.f32 %v832_v24, 0.0  ;;  %v692_v31 = vadd.f32 %v1157_v25, %v2210_v40  ;;  %v1158_v30 = vpop.f32.mrb[56].mxu0 }
 0x168   :  { %v1159_v32 = vpop.f32.mrb[57].mxu0 }
 0x169   :  { %v1238_v33 = vpop.f32.mrb[56].mxu1  ;;  %v902_v51 = vadd.f32 %v886_v28, %v870_v29  ;;  %v837_v34 = vadd.f32 %v1237_v1, %v692_v31  ;;  %v1160_v36 = vadd.f32 %v1159_v32, %v1158_v30 }
 0x16a   :  { %v1239_v37 = vpop.f32.mrb[57].mxu1 }
 0x16b   :  { %v1240_v38 = vadd.f32 %v1239_v37, %v1238_v33  ;;  %919 = vst.msk [vmem:[%s2356_s4 + $0x50] sm:$0xff] %vm908_vm0, %v902_v51  ;;  %v871_v39 = vmax.f32 %v837_v34, 0.0  ;;  %v697_v40 = vadd.f32 %v1160_v36, %v2213_v49  ;;  %v1161_v41 = vpop.f32.mrb[58].mxu0 }
 0x16c   :  { %v1162_v42 = vpop.f32.mrb[59].mxu0 }
 0x16d   :  { %v1241_v44 = vpop.f32.mrb[58].mxu1  ;;  %v903_v19 = vadd.f32 %v887_v11, %v871_v39  ;;  %v842_v59 = vadd.f32 %v1240_v38, %v697_v40  ;;  %v1163_v45 = vadd.f32 %v1162_v42, %v1161_v41 }
 0x16e   :  { %v1242_v46 = vpop.f32.mrb[59].mxu1 }
 0x16f   :  { %v1243_v48 = vadd.f32 %v1242_v46, %v1241_v44  ;;  %920 = vst.msk [vmem:[%s2356_s4 + $0x58] sm:$0xff] %vm908_vm0, %v903_v19  ;;  %v872_v50 = vmax.f32 %v842_v59, 0.0  ;;  %v702_v49 = vadd.f32 %v1163_v45, %v2216_v58  ;;  %v1164_v52 = vpop.f32.mrb[60].mxu0 }
 0x170   :  { %v1165_v53 = vpop.f32.mrb[61].mxu0 }
 0x171   :  { %v1244_v54 = vpop.f32.mrb[60].mxu1  ;;  %v904_v55 = vadd.f32 %v888_v47, %v872_v50  ;;  %v847_v56 = vadd.f32 %v1243_v48, %v702_v49  ;;  %v1166_v4 = vadd.f32 %v1165_v53, %v1164_v52 }
 0x172   :  { %v1245_v27 = vpop.f32.mrb[61].mxu1 }
 0x173   :  { %v1246_v60 = vadd.f32 %v1245_v27, %v1244_v54  ;;  %921 = vst.msk [vmem:[%s2356_s4 + $0x60] sm:$0xff] %vm908_vm0, %v904_v55  ;;  %v873_v61 = vmax.f32 %v847_v56, 0.0  ;;  %v707_v58 = vadd.f32 %v1166_v4, %v2219_v5  ;;  %v1167_v62 = vpop.f32.mrb[62].mxu0 }
 0x174   :  { %v1168_v63 = vpop.f32.mrb[63].mxu0 }
 0x175   :  { %v1247_v0 = vpop.f32.mrb[62].mxu1  ;;  %v905_v2 = vadd.f32 %v889_v57, %v873_v61  ;;  %v852_v3 = vadd.f32 %v1246_v60, %v707_v58  ;;  %v1169_v6 = vadd.f32 %v1168_v63, %v1167_v62 }
 0x176   :  { %v1248_v13 = vpop.f32.mrb[63].mxu1 }
 0x177   :  { %v1249_v35 = vadd.f32 %v1248_v13, %v1247_v0  ;;  %922 = vst.msk [vmem:[%s2356_s4 + $0x68] sm:$0xff] %vm908_vm0, %v905_v2  ;;  %v874_v8 = vmax.f32 %v852_v3, 0.0  ;;  %v712_v5 = vadd.f32 %v1169_v6, %v2222_v15 }
 0x179   :  { %v906_v9 = vadd.f32 %v890_v7, %v874_v8  ;;  %v857_v10 = vadd.f32 %v1249_v35, %v712_v5 }
 0x17b   :  { %923 = vst.msk [vmem:[%s2356_s4 + $0x70] sm:$0xff] %vm908_vm0, %v906_v9  ;;  %v875_v14 = vmax.f32 %v857_v10, 0.0 }
 0x17d   :  { %v907_v16 = vadd.f32 %v891_v12, %v875_v14 }
 0x17f   :  { %924 = vst.msk [vmem:[%s2356_s4 + $0x78] sm:$0xff] %vm908_vm0, %v907_v16 }

// kernel: decoder_forward.4
= control target key start
LH: loop header
LB: loop body
LE: loop exit
PB: predicated region body
PF: predicated region fallthrough
CT: control target
= control target key end

     0   :  { %8 = vsyncpa [#allocation3], 0  ;;  %s2848_s0 = inlined_call_operand.vmem [shape: f32[2,64], index: 0, kind: input, shape index: {}]   ;;  %s2849_s1 = inlined_call_operand.hbm [shape: f32[64,5120], index: 1, kind: input, shape index: {}]   ;;  %s2850_s2 = inlined_call_operand.hbm [shape: f32[1,5120], index: 2, kind: input, shape index: {}]   ;;  %s2851_s3 = inlined_call_operand.vmem [shape: f32[2,5120], index: 3, kind: output, shape index: {}]  }
   0x1   :  { %9 = vsyncpa [#allocation5], 0  ;;  %s2626_s12 = smov [#allocation2]   ;;  %s2578_s16 = scalar_lea.hbm %s2849_s1, 40960 }
   0x2   :  { %s17_s13 = sshll.u32 %s2626_s12, 4  ;;  %p2579_p0 = scmp.ne.s32.totalorder %s2849_s1, %s2578_s16  ;;  %s18_s13 = int_to_ptr.vmem [resolvable:$true] %s17_s13 }
   0x3   :  { %p2582_p1 = scmp.lt.u32.totalorder %s2578_s16, %s2849_s1 }
   0x5   :  { %p2584_p2 = pnand %p2582_p1, %p2579_p0 }
   0x7   :  { %2587 = shalt.err (!%p2584_p2)
}
   0x8   :  { %s2588_s21 = scalar_lea.vmem %s18_s13, 40960  ;;  %p2593_p4 = scmp.lt.s32.totalorder %s18_s13, %s18_s13 }
   0x9   :  { %p2589_p3 = scmp.ne.s32.totalorder %s18_s13, %s2588_s21  ;;  %p2594_p5 = scmp.lt.s32.totalorder %s2588_s21, %s2588_s21 }
   0xb   :  { %p2595_p6 = por %p2594_p5, %p2593_p4 }
   0xd   :  { %p2596_p7 = pnand %p2595_p6, %p2589_p3 }
   0xf   :  { %2599 = shalt.err (!%p2596_p7)
}
  0x10   :  { %s2627_s22 = smov 5120   ;;  %s2628_s23 = smov 320  }
  0x11   :  { %23 = dma.hbm_to_vmem [thread:$0]  %s2849_s1, 40960, %s18_s13, [#allocation3], %s2627_s22, %s2627_s22, %s2628_s23  }
  0x12   :  { %s2629_s26 = smov [#allocation4]   ;;  %s2600_s30 = scalar_lea.hbm %s2850_s2, 640 }
  0x13   :  { %s30_s27 = sshll.u32 %s2629_s26, 4  ;;  %p2601_p8 = scmp.ne.s32.totalorder %s2850_s2, %s2600_s30  ;;  %s31_s27 = int_to_ptr.vmem [resolvable:$true] %s30_s27 }
  0x14   :  { %p2604_p9 = scmp.lt.u32.totalorder %s2600_s30, %s2850_s2 }
  0x16   :  { %p2606_p10 = pnand %p2604_p9, %p2601_p8 }
  0x18   :  { %2609 = shalt.err (!%p2606_p10)
}
  0x19   :  { %s2610_s8 = scalar_lea.vmem %s31_s27, 640  ;;  %p2615_p12 = scmp.lt.s32.totalorder %s31_s27, %s31_s27 }
  0x1a   :  { %p2611_p11 = scmp.ne.s32.totalorder %s31_s27, %s2610_s8  ;;  %p2616_p13 = scmp.lt.s32.totalorder %s2610_s8, %s2610_s8 }
  0x1c   :  { %p2617_p0 = por %p2616_p13, %p2615_p12 }
  0x1e   :  { %p2618_p1 = pnand %p2617_p0, %p2611_p11 }
  0x20   :  { %2621 = shalt.err (!%p2618_p1)
}
  0x21   :  { %33 = dma.hbm_to_vmem [thread:$0]  %s2850_s2, 640, %s31_s27, [#allocation5]  }
  0x22   :  { %2622 = dma.done.wait [#allocation3], 40960  }
  0x23   :  { %2623 = vsyncadd [#allocation3], 4294926336 }
  0x24   :  { %2624 = dma.done.wait [#allocation5], 640  }
  0x25   :  { %2625 = vsyncadd [#allocation5], 4294966656  ;;  %v2630_v0 = vmov 0.0   ;;  %v42_v1 = vld [vmem:[#allocation2 + $0x8] sm:$0xff]  ;;  %v44_v3 = vld [vmem:[#allocation2 + $0x18] sm:$0xff]  ;;  %vm571_vm0 = vcmask 523264  }
  0x26   :  { %639 = vmatprep.mubr.f32.mxu0 %v2630_v0  ;;  %710 = vmatprep.mubr.f32.mxu1 %v2630_v0  ;;  %v82_v2 = vld [vmem:[#allocation2 + $0x148] sm:$0xff]  ;;  %v84_v5 = vld [vmem:[#allocation2 + $0x158] sm:$0xff]  ;;  %v41_v6 = vld [vmem:[#allocation2] sm:$0xff] }
  0x27   :  { %v2251_v4 = vpack.c.bf16 %v82_v2, %v42_v1  ;;  %v81_v7 = vld [vmem:[#allocation2 + $0x140] sm:$0xff]  ;;  %v2267_v8 = vpack.c.bf16 %v84_v5, %v44_v3  ;;  %v43_v10 = vld [vmem:[#allocation2 + $0x10] sm:$0xff]  ;;  %v122_v12 = vld [vmem:[#allocation2 + $0x288] sm:$0xff] }
  0x28   :  { %v2253_v9 = vpack.c.bf16 %v81_v7, %v41_v6  ;;  %v83_v11 = vld [vmem:[#allocation2 + $0x150] sm:$0xff]  ;;  %v162_v14 = vld [vmem:[#allocation2 + $0x3c8] sm:$0xff]  ;;  %v124_v15 = vld [vmem:[#allocation2 + $0x298] sm:$0xff] }
  0x29   :  { %2252 = vmatprep.subr.bf16.mxu0 %v2251_v4  ;;  %v2269_v13 = vpack.c.bf16 %v83_v11, %v43_v10  ;;  %v164_v16 = vld [vmem:[#allocation2 + $0x3d8] sm:$0xff]  ;;  %2268 = vmatprep.subr.bf16.mxu1 %v2267_v8  ;;  %v2255_v17 = vpack.c.bf16 %v162_v14, %v122_v12  ;;  %v121_v19 = vld [vmem:[#allocation2 + $0x280] sm:$0xff]  ;;  %v123_v21 = vld [vmem:[#allocation2 + $0x290] sm:$0xff] }
  0x2a   :  { %2254 = vmatpush1.bf16.msra.mxu0 %v2253_v9  ;;  %v2271_v18 = vpack.c.bf16 %v164_v16, %v124_v15  ;;  %v161_v20 = vld [vmem:[#allocation2 + $0x3c0] sm:$0xff]  ;;  %v163_v23 = vld [vmem:[#allocation2 + $0x3d0] sm:$0xff]  ;;  %v202_v24 = vld [vmem:[#allocation2 + $0x508] sm:$0xff] }
  0x2b   :  { %2270 = vmatpush1.bf16.msra.mxu1 %v2269_v13  ;;  %v2257_v22 = vpack.c.bf16 %v161_v20, %v121_v19  ;;  %v242_v25 = vld [vmem:[#allocation2 + $0x648] sm:$0xff]  ;;  %2256 = vmatprep.subr.bf16.mxu0 %v2255_v17  ;;  %v2273_v26 = vpack.c.bf16 %v163_v23, %v123_v21  ;;  %v204_v28 = vld [vmem:[#allocation2 + $0x518] sm:$0xff]  ;;  %v201_v30 = vld [vmem:[#allocation2 + $0x500] sm:$0xff] }
  0x2c   :  { %2272 = vmatprep.subr.bf16.mxu1 %v2271_v18  ;;  %v2259_v27 = vpack.c.bf16 %v242_v25, %v202_v24  ;;  %v244_v29 = vld [vmem:[#allocation2 + $0x658] sm:$0xff]  ;;  %v241_v32 = vld [vmem:[#allocation2 + $0x640] sm:$0xff]  ;;  %v203_v33 = vld [vmem:[#allocation2 + $0x510] sm:$0xff] }
  0x2d   :  { %v2275_v31 = vpack.c.bf16 %v244_v29, %v204_v28  ;;  %v243_v34 = vld [vmem:[#allocation2 + $0x650] sm:$0xff]  ;;  %v2261_v35 = vpack.c.bf16 %v241_v32, %v201_v30  ;;  %v282_v36 = vld [vmem:[#allocation2 + $0x788] sm:$0xff]  ;;  %v284_v38 = vld [vmem:[#allocation2 + $0x798] sm:$0xff] }
  0x2e   :  { %2258 = vmatpush1.bf16.msra.mxu0 %v2257_v22  ;;  %v322_v37 = vld [vmem:[#allocation2 + $0x8c8] sm:$0xff]  ;;  %v2277_v39 = vpack.c.bf16 %v243_v34, %v203_v33  ;;  %v324_v41 = vld [vmem:[#allocation2 + $0x8d8] sm:$0xff]  ;;  %v281_v42 = vld [vmem:[#allocation2 + $0x780] sm:$0xff] }
  0x2f   :  { %2274 = vmatpush1.bf16.msra.mxu1 %v2273_v26  ;;  %2260 = vmatprep.subr.bf16.mxu0 %v2259_v27  ;;  %v2263_v40 = vpack.c.bf16 %v322_v37, %v282_v36  ;;  %v321_v43 = vld [vmem:[#allocation2 + $0x8c0] sm:$0xff]  ;;  %v2279_v44 = vpack.c.bf16 %v324_v41, %v284_v38  ;;  %v283_v45 = vld [vmem:[#allocation2 + $0x790] sm:$0xff]  ;;  %v46_v47 = vld [vmem:[#allocation2 + $0x28] sm:$0xff] }
  0x30   :  { %2276 = vmatprep.subr.bf16.mxu1 %v2275_v31  ;;  %v323_v46 = vld [vmem:[#allocation2 + $0x8d0] sm:$0xff]  ;;  %v86_v48 = vld [vmem:[#allocation2 + $0x168] sm:$0xff]  ;;  %v48_v49 = vld [vmem:[#allocation2 + $0x38] sm:$0xff]  ;;  %v2265_v50 = vpack.c.bf16 %v321_v43, %v281_v42 }
  0x31   :  { %v88_v51 = vld [vmem:[#allocation2 + $0x178] sm:$0xff]  ;;  %v2281_v52 = vpack.c.bf16 %v323_v46, %v283_v45  ;;  %v2283_v53 = vpack.c.bf16 %v86_v48, %v46_v47  ;;  %v45_v54 = vld [vmem:[#allocation2 + $0x20] sm:$0xff]  ;;  %v47_v56 = vld [vmem:[#allocation2 + $0x30] sm:$0xff] }
  0x32   :  { %2262 = vmatpush1.bf16.msra.mxu0 %v2261_v35  ;;  %v85_v55 = vld [vmem:[#allocation2 + $0x160] sm:$0xff]  ;;  %v2299_v57 = vpack.c.bf16 %v88_v51, %v48_v49  ;;  %v87_v58 = vld [vmem:[#allocation2 + $0x170] sm:$0xff]  ;;  %v126_v59 = vld [vmem:[#allocation2 + $0x2a8] sm:$0xff] }
  0x33   :  { %2278 = vmatpush1.bf16.msra.mxu1 %v2277_v39  ;;  %2264 = vmatprep.subr.bf16.mxu0 %v2263_v40  ;;  %v166_v60 = vld [vmem:[#allocation2 + $0x3e8] sm:$0xff]  ;;  %v128_v61 = vld [vmem:[#allocation2 + $0x2b8] sm:$0xff]  ;;  %v2681_v63 = vld [vmem:[%s2848_s0] sm:$0x3]  ;;  %v2285_v1 = vpack.c.bf16 %v85_v55, %v45_v54  ;;  %v2301_v2 = vpack.c.bf16 %v87_v58, %v47_v56 }
  0x34   :  { %2280 = vmatprep.subr.bf16.mxu1 %v2279_v44  ;;  %v168_v62 = vld [vmem:[#allocation2 + $0x3f8] sm:$0xff]  ;;  %v2287_v3 = vpack.c.bf16 %v166_v60, %v126_v59  ;;  %v125_v4 = vld [vmem:[#allocation2 + $0x2a0] sm:$0xff]  ;;  %v127_v6 = vld [vmem:[#allocation2 + $0x2b0] sm:$0xff] }
  0x35   :  { %v165_v5 = vld [vmem:[#allocation2 + $0x3e0] sm:$0xff]  ;;  %v2303_v7 = vpack.c.bf16 %v168_v62, %v128_v61  ;;  %v167_v8 = vld [vmem:[#allocation2 + $0x3f0] sm:$0xff]  ;;  %v206_v9 = vld [vmem:[#allocation2 + $0x528] sm:$0xff] }
  0x36   :  { %2266 = vmatpush1.bf16.msra.mxu0 %v2265_v50  ;;  %v246_v10 = vld [vmem:[#allocation2 + $0x668] sm:$0xff]  ;;  %v208_v11 = vld [vmem:[#allocation2 + $0x538] sm:$0xff]  ;;  %v2289_v13 = vpack.c.bf16 %v165_v5, %v125_v4  ;;  %v2305_v14 = vpack.c.bf16 %v167_v8, %v127_v6  ;;  %v205_v16 = vld [vmem:[#allocation2 + $0x520] sm:$0xff] }
  0x37   :  { %2282 = vmatpush1.bf16.msra.mxu1 %v2281_v52  ;;  %2284 = vmatprep.subr.bf16.mxu0 %v2283_v53  ;;  %v248_v12 = vld [vmem:[#allocation2 + $0x678] sm:$0xff]  ;;  %v2291_v15 = vpack.c.bf16 %v246_v10, %v206_v9  ;;  %v245_v17 = vld [vmem:[#allocation2 + $0x660] sm:$0xff]  ;;  %v207_v18 = vld [vmem:[#allocation2 + $0x530] sm:$0xff] }
  0x38   :  { %2300 = vmatprep.subr.bf16.mxu1 %v2299_v57  ;;  %v2307_v19 = vpack.c.bf16 %v248_v12, %v208_v11  ;;  %v247_v20 = vld [vmem:[#allocation2 + $0x670] sm:$0xff]  ;;  %v286_v21 = vld [vmem:[#allocation2 + $0x7a8] sm:$0xff]  ;;  %v288_v23 = vld [vmem:[#allocation2 + $0x7b8] sm:$0xff]  ;;  %v2293_v25 = vpack.c.bf16 %v245_v17, %v205_v16 }
  0x39   :  { %2231 = vmatmul.mubr.msk.f32.vlgmr.msra.gmra.mrb[0].mxu0 %vm571_vm0, %v2681_v63  ;;  %v326_v22 = vld [vmem:[#allocation2 + $0x8e8] sm:$0xff]  ;;  %v328_v24 = vld [vmem:[#allocation2 + $0x8f8] sm:$0xff]  ;;  %v2309_v26 = vpack.c.bf16 %v247_v20, %v207_v18  ;;  %v285_v28 = vld [vmem:[#allocation2 + $0x7a0] sm:$0xff] }
  0x3a   :  { %2232 = vmatmul.mubr.msk.f32.vlgmr.msra.gmra.mrb[0].mxu1 %vm571_vm0, %v2681_v63  ;;  %2286 = vmatpush1.bf16.msra.mxu0 %v2285_v1  ;;  %v2295_v27 = vpack.c.bf16 %v326_v22, %v286_v21  ;;  %v325_v29 = vld [vmem:[#allocation2 + $0x8e0] sm:$0xff]  ;;  %v287_v30 = vld [vmem:[#allocation2 + $0x7b0] sm:$0xff]  ;;  %v2311_v31 = vpack.c.bf16 %v328_v24, %v288_v23  ;;  %v50_v33 = vld [vmem:[#allocation2 + $0x48] sm:$0xff] }
  0x3b   :  { %2302 = vmatpush1.bf16.msra.mxu1 %v2301_v2  ;;  %2288 = vmatprep.subr.bf16.mxu0 %v2287_v3  ;;  %v327_v32 = vld [vmem:[#allocation2 + $0x8f0] sm:$0xff]  ;;  %v90_v34 = vld [vmem:[#allocation2 + $0x188] sm:$0xff]  ;;  %v52_v35 = vld [vmem:[#allocation2 + $0x58] sm:$0xff]  ;;  %v2297_v37 = vpack.c.bf16 %v325_v29, %v285_v28 }
  0x3c   :  { %2304 = vmatprep.subr.bf16.mxu1 %v2303_v7  ;;  %781 = vmatprep.mubr.f32.mxu0 %v2630_v0  ;;  %v92_v36 = vld [vmem:[#allocation2 + $0x198] sm:$0xff]  ;;  %v2313_v38 = vpack.c.bf16 %v327_v32, %v287_v30  ;;  %v2315_v39 = vpack.c.bf16 %v90_v34, %v50_v33  ;;  %v49_v40 = vld [vmem:[#allocation2 + $0x40] sm:$0xff]  ;;  %v51_v42 = vld [vmem:[#allocation2 + $0x50] sm:$0xff] }
  0x3d   :  { %852 = vmatprep.mubr.f32.mxu1 %v2630_v0  ;;  %v89_v41 = vld [vmem:[#allocation2 + $0x180] sm:$0xff]  ;;  %v2331_v43 = vpack.c.bf16 %v92_v36, %v52_v35  ;;  %v91_v44 = vld [vmem:[#allocation2 + $0x190] sm:$0xff]  ;;  %v130_v45 = vld [vmem:[#allocation2 + $0x2c8] sm:$0xff] }
  0x3e   :  { %2290 = vmatpush1.bf16.msra.mxu0 %v2289_v13  ;;  %v170_v46 = vld [vmem:[#allocation2 + $0x408] sm:$0xff]  ;;  %v132_v47 = vld [vmem:[#allocation2 + $0x2d8] sm:$0xff]  ;;  %v2317_v49 = vpack.c.bf16 %v89_v41, %v49_v40  ;;  %v2333_v50 = vpack.c.bf16 %v91_v44, %v51_v42  ;;  %v129_v52 = vld [vmem:[#allocation2 + $0x2c0] sm:$0xff] }
  0x3f   :  { %2306 = vmatpush1.bf16.msra.mxu1 %v2305_v14  ;;  %2292 = vmatprep.subr.bf16.mxu0 %v2291_v15  ;;  %v172_v48 = vld [vmem:[#allocation2 + $0x418] sm:$0xff]  ;;  %v2319_v51 = vpack.c.bf16 %v170_v46, %v130_v45  ;;  %v169_v53 = vld [vmem:[#allocation2 + $0x400] sm:$0xff]  ;;  %v131_v54 = vld [vmem:[#allocation2 + $0x2d0] sm:$0xff] }
  0x40   :  { %2308 = vmatprep.subr.bf16.mxu1 %v2307_v19  ;;  %v2335_v55 = vpack.c.bf16 %v172_v48, %v132_v47  ;;  %v171_v56 = vld [vmem:[#allocation2 + $0x410] sm:$0xff]  ;;  %v210_v57 = vld [vmem:[#allocation2 + $0x548] sm:$0xff]  ;;  %v212_v59 = vld [vmem:[#allocation2 + $0x558] sm:$0xff]  ;;  %v2321_v61 = vpack.c.bf16 %v169_v53, %v129_v52 }
  0x41   :  { %v250_v58 = vld [vmem:[#allocation2 + $0x688] sm:$0xff]  ;;  %v252_v60 = vld [vmem:[#allocation2 + $0x698] sm:$0xff]  ;;  %v2337_v62 = vpack.c.bf16 %v171_v56, %v131_v54  ;;  %v209_v2 = vld [vmem:[#allocation2 + $0x540] sm:$0xff] }
  0x42   :  { %2294 = vmatpush1.bf16.msra.mxu0 %v2293_v25  ;;  %v2323_v1 = vpack.c.bf16 %v250_v58, %v210_v57  ;;  %v249_v3 = vld [vmem:[#allocation2 + $0x680] sm:$0xff]  ;;  %v211_v4 = vld [vmem:[#allocation2 + $0x550] sm:$0xff]  ;;  %v2339_v5 = vpack.c.bf16 %v252_v60, %v212_v59  ;;  %v290_v7 = vld [vmem:[#allocation2 + $0x7c8] sm:$0xff] }
  0x43   :  { %2310 = vmatpush1.bf16.msra.mxu1 %v2309_v26  ;;  %2296 = vmatprep.subr.bf16.mxu0 %v2295_v27  ;;  %v251_v6 = vld [vmem:[#allocation2 + $0x690] sm:$0xff]  ;;  %v330_v8 = vld [vmem:[#allocation2 + $0x908] sm:$0xff]  ;;  %v292_v9 = vld [vmem:[#allocation2 + $0x7d8] sm:$0xff]  ;;  %v2325_v11 = vpack.c.bf16 %v249_v3, %v209_v2 }
  0x44   :  { %2312 = vmatprep.subr.bf16.mxu1 %v2311_v31  ;;  %v332_v10 = vld [vmem:[#allocation2 + $0x918] sm:$0xff]  ;;  %v2341_v12 = vpack.c.bf16 %v251_v6, %v211_v4  ;;  %v2327_v13 = vpack.c.bf16 %v330_v8, %v290_v7  ;;  %v289_v14 = vld [vmem:[#allocation2 + $0x7c0] sm:$0xff]  ;;  %v291_v16 = vld [vmem:[#allocation2 + $0x7d0] sm:$0xff] }
  0x45   :  { %v329_v15 = vld [vmem:[#allocation2 + $0x900] sm:$0xff]  ;;  %v2343_v17 = vpack.c.bf16 %v332_v10, %v292_v9  ;;  %v331_v18 = vld [vmem:[#allocation2 + $0x910] sm:$0xff]  ;;  %v54_v19 = vld [vmem:[#allocation2 + $0x68] sm:$0xff] }
  0x46   :  { %2298 = vmatpush1.bf16.msra.mxu0 %v2297_v37  ;;  %v94_v20 = vld [vmem:[#allocation2 + $0x1a8] sm:$0xff]  ;;  %v56_v21 = vld [vmem:[#allocation2 + $0x78] sm:$0xff]  ;;  %v2329_v23 = vpack.c.bf16 %v329_v15, %v289_v14  ;;  %v2345_v24 = vpack.c.bf16 %v331_v18, %v291_v16  ;;  %v53_v26 = vld [vmem:[#allocation2 + $0x60] sm:$0xff] }
  0x47   :  { %2314 = vmatpush1.bf16.msra.mxu1 %v2313_v38  ;;  %2316 = vmatprep.subr.bf16.mxu0 %v2315_v39  ;;  %v96_v22 = vld [vmem:[#allocation2 + $0x1b8] sm:$0xff]  ;;  %v2347_v25 = vpack.c.bf16 %v94_v20, %v54_v19  ;;  %v93_v27 = vld [vmem:[#allocation2 + $0x1a0] sm:$0xff]  ;;  %v55_v28 = vld [vmem:[#allocation2 + $0x70] sm:$0xff] }
  0x48   :  { %2332 = vmatprep.subr.bf16.mxu1 %v2331_v43  ;;  %v2363_v29 = vpack.c.bf16 %v96_v22, %v56_v21  ;;  %v95_v30 = vld [vmem:[#allocation2 + $0x1b0] sm:$0xff]  ;;  %v134_v31 = vld [vmem:[#allocation2 + $0x2e8] sm:$0xff]  ;;  %v136_v33 = vld [vmem:[#allocation2 + $0x2f8] sm:$0xff]  ;;  %v2349_v35 = vpack.c.bf16 %v93_v27, %v53_v26 }
  0x49   :  { %2233 = vmatmul.mubr.msk.f32.vlgmr.msra.gmra.mrb[2].mxu0 %vm571_vm0, %v2681_v63  ;;  %v174_v32 = vld [vmem:[#allocation2 + $0x428] sm:$0xff]  ;;  %v176_v34 = vld [vmem:[#allocation2 + $0x438] sm:$0xff]  ;;  %v2365_v36 = vpack.c.bf16 %v95_v30, %v55_v28  ;;  %v133_v38 = vld [vmem:[#allocation2 + $0x2e0] sm:$0xff] }
  0x4a   :  { %2234 = vmatmul.mubr.msk.f32.vlgmr.msra.gmra.mrb[2].mxu1 %vm571_vm0, %v2681_v63  ;;  %2318 = vmatpush1.bf16.msra.mxu0 %v2317_v49  ;;  %v2351_v37 = vpack.c.bf16 %v174_v32, %v134_v31  ;;  %v173_v39 = vld [vmem:[#allocation2 + $0x420] sm:$0xff]  ;;  %v135_v40 = vld [vmem:[#allocation2 + $0x2f0] sm:$0xff]  ;;  %v2367_v41 = vpack.c.bf16 %v176_v34, %v136_v33  ;;  %v214_v43 = vld [vmem:[#allocation2 + $0x568] sm:$0xff] }
  0x4b   :  { %2334 = vmatpush1.bf16.msra.mxu1 %v2333_v50  ;;  %2320 = vmatprep.subr.bf16.mxu0 %v2319_v51  ;;  %v175_v42 = vld [vmem:[#allocation2 + $0x430] sm:$0xff]  ;;  %v254_v44 = vld [vmem:[#allocation2 + $0x6a8] sm:$0xff]  ;;  %v216_v45 = vld [vmem:[#allocation2 + $0x578] sm:$0xff]  ;;  %v2353_v47 = vpack.c.bf16 %v173_v39, %v133_v38 }
  0x4c   :  { %2336 = vmatprep.subr.bf16.mxu1 %v2335_v55  ;;  %923 = vmatprep.mubr.f32.mxu0 %v2630_v0  ;;  %v256_v46 = vld [vmem:[#allocation2 + $0x6b8] sm:$0xff]  ;;  %v2369_v48 = vpack.c.bf16 %v175_v42, %v135_v40  ;;  %v2355_v49 = vpack.c.bf16 %v254_v44, %v214_v43  ;;  %v213_v50 = vld [vmem:[#allocation2 + $0x560] sm:$0xff]  ;;  %v215_v52 = vld [vmem:[#allocation2 + $0x570] sm:$0xff] }
  0x4d   :  { %994 = vmatprep.mubr.f32.mxu1 %v2630_v0  ;;  %v253_v51 = vld [vmem:[#allocation2 + $0x6a0] sm:$0xff]  ;;  %v2371_v53 = vpack.c.bf16 %v256_v46, %v216_v45  ;;  %v255_v54 = vld [vmem:[#allocation2 + $0x6b0] sm:$0xff]  ;;  %v294_v55 = vld [vmem:[#allocation2 + $0x7e8] sm:$0xff] }
  0x4e   :  { %2322 = vmatpush1.bf16.msra.mxu0 %v2321_v61  ;;  %v334_v56 = vld [vmem:[#allocation2 + $0x928] sm:$0xff]  ;;  %v296_v57 = vld [vmem:[#allocation2 + $0x7f8] sm:$0xff]  ;;  %v2357_v59 = vpack.c.bf16 %v253_v51, %v213_v50  ;;  %v2373_v60 = vpack.c.bf16 %v255_v54, %v215_v52  ;;  %v295_v2 = vld [vmem:[#allocation2 + $0x7f0] sm:$0xff] }
  0x4f   :  { %2338 = vmatpush1.bf16.msra.mxu1 %v2337_v62  ;;  %2324 = vmatprep.subr.bf16.mxu0 %v2323_v1  ;;  %v336_v58 = vld [vmem:[#allocation2 + $0x938] sm:$0xff]  ;;  %v2359_v61 = vpack.c.bf16 %v334_v56, %v294_v55  ;;  %v293_v62 = vld [vmem:[#allocation2 + $0x7e0] sm:$0xff]  ;;  %v335_v4 = vld [vmem:[#allocation2 + $0x930] sm:$0xff] }
  0x50   :  { %2340 = vmatprep.subr.bf16.mxu1 %v2339_v5  ;;  %v333_v1 = vld [vmem:[#allocation2 + $0x920] sm:$0xff]  ;;  %v2375_v3 = vpack.c.bf16 %v336_v58, %v296_v57  ;;  %v58_v5 = vld [vmem:[#allocation2 + $0x88] sm:$0xff]  ;;  %v60_v7 = vld [vmem:[#allocation2 + $0x98] sm:$0xff]  ;;  %v2377_v10 = vpack.c.bf16 %v335_v4, %v295_v2 }
  0x51   :  { %v98_v6 = vld [vmem:[#allocation2 + $0x1c8] sm:$0xff]  ;;  %v100_v8 = vld [vmem:[#allocation2 + $0x1d8] sm:$0xff]  ;;  %v2361_v9 = vpack.c.bf16 %v333_v1, %v293_v62  ;;  %v59_v14 = vld [vmem:[#allocation2 + $0x90] sm:$0xff] }
  0x52   :  { %2326 = vmatpush1.bf16.msra.mxu0 %v2325_v11  ;;  %v2379_v11 = vpack.c.bf16 %v98_v6, %v58_v5  ;;  %v2395_v15 = vpack.c.bf16 %v100_v8, %v60_v7  ;;  %v99_v16 = vld [vmem:[#allocation2 + $0x1d0] sm:$0xff]  ;;  %v178_v18 = vld [vmem:[#allocation2 + $0x448] sm:$0xff]  ;;  %v140_v19 = vld [vmem:[#allocation2 + $0x318] sm:$0xff] }
  0x53   :  { %2342 = vmatpush1.bf16.msra.mxu1 %v2341_v12  ;;  %2328 = vmatprep.subr.bf16.mxu0 %v2327_v13  ;;  %v57_v12 = vld [vmem:[#allocation2 + $0x80] sm:$0xff]  ;;  %v180_v20 = vld [vmem:[#allocation2 + $0x458] sm:$0xff]  ;;  %v2397_v22 = vpack.c.bf16 %v99_v16, %v59_v14  ;;  %v139_v26 = vld [vmem:[#allocation2 + $0x310] sm:$0xff] }
  0x54   :  { %2344 = vmatprep.subr.bf16.mxu1 %v2343_v17  ;;  %v97_v13 = vld [vmem:[#allocation2 + $0x1c0] sm:$0xff]  ;;  %v138_v17 = vld [vmem:[#allocation2 + $0x308] sm:$0xff]  ;;  %v2399_v27 = vpack.c.bf16 %v180_v20, %v140_v19  ;;  %v179_v28 = vld [vmem:[#allocation2 + $0x450] sm:$0xff] }
  0x55   :  { %v2381_v21 = vpack.c.bf16 %v97_v13, %v57_v12  ;;  %v258_v30 = vld [vmem:[#allocation2 + $0x6c8] sm:$0xff]  ;;  %v220_v31 = vld [vmem:[#allocation2 + $0x598] sm:$0xff]  ;;  %v2401_v34 = vpack.c.bf16 %v179_v28, %v139_v26  ;;  %v219_v38 = vld [vmem:[#allocation2 + $0x590] sm:$0xff] }
  0x56   :  { %2330 = vmatpush1.bf16.msra.mxu0 %v2329_v23  ;;  %v2383_v23 = vpack.c.bf16 %v178_v18, %v138_v17  ;;  %v260_v32 = vld [vmem:[#allocation2 + $0x6d8] sm:$0xff]  ;;  %v259_v40 = vld [vmem:[#allocation2 + $0x6d0] sm:$0xff]  ;;  %v338_v42 = vld [vmem:[#allocation2 + $0x948] sm:$0xff] }
  0x57   :  { %2346 = vmatpush1.bf16.msra.mxu1 %v2345_v24  ;;  %2348 = vmatprep.subr.bf16.mxu0 %v2347_v25  ;;  %v137_v24 = vld [vmem:[#allocation2 + $0x300] sm:$0xff]  ;;  %v2403_v39 = vpack.c.bf16 %v260_v32, %v220_v31  ;;  %v300_v43 = vld [vmem:[#allocation2 + $0x818] sm:$0xff]  ;;  %v2405_v46 = vpack.c.bf16 %v259_v40, %v219_v38  ;;  %v299_v50 = vld [vmem:[#allocation2 + $0x810] sm:$0xff] }
  0x58   :  { %2364 = vmatprep.subr.bf16.mxu1 %v2363_v29  ;;  %v177_v25 = vld [vmem:[#allocation2 + $0x440] sm:$0xff]  ;;  %v218_v29 = vld [vmem:[#allocation2 + $0x588] sm:$0xff]  ;;  %v340_v44 = vld [vmem:[#allocation2 + $0x958] sm:$0xff] }
  0x59   :  { %2235 = vmatmul.mubr.msk.f32.vlgmr.msra.gmra.mrb[4].mxu0 %vm571_vm0, %v2681_v63  ;;  %v2385_v33 = vpack.c.bf16 %v177_v25, %v137_v24  ;;  %v2407_v51 = vpack.c.bf16 %v340_v44, %v300_v43  ;;  %v339_v52 = vld [vmem:[#allocation2 + $0x950] sm:$0xff]  ;;  %v102_v54 = vld [vmem:[#allocation2 + $0x1e8] sm:$0xff]  ;;  %v64_v55 = vld [vmem:[#allocation2 + $0xb8] sm:$0xff] }
  0x5a   :  { %2236 = vmatmul.mubr.msk.f32.vlgmr.msra.gmra.mrb[4].mxu1 %vm571_vm0, %v2681_v63  ;;  %2350 = vmatpush1.bf16.msra.mxu0 %v2349_v35  ;;  %v2387_v35 = vpack.c.bf16 %v258_v30, %v218_v29  ;;  %v104_v56 = vld [vmem:[#allocation2 + $0x1f8] sm:$0xff]  ;;  %v2409_v58 = vpack.c.bf16 %v339_v52, %v299_v50  ;;  %v63_v62 = vld [vmem:[#allocation2 + $0xb0] sm:$0xff]  ;;  %v182_v4 = vld [vmem:[#allocation2 + $0x468] sm:$0xff] }
  0x5b   :  { %2366 = vmatpush1.bf16.msra.mxu1 %v2365_v36  ;;  %2352 = vmatprep.subr.bf16.mxu0 %v2351_v37  ;;  %v217_v36 = vld [vmem:[#allocation2 + $0x580] sm:$0xff]  ;;  %v2427_v1 = vpack.c.bf16 %v104_v56, %v64_v55  ;;  %v103_v2 = vld [vmem:[#allocation2 + $0x1f0] sm:$0xff]  ;;  %v144_v5 = vld [vmem:[#allocation2 + $0x338] sm:$0xff] }
  0x5c   :  { %2368 = vmatprep.subr.bf16.mxu1 %v2367_v41  ;;  %1065 = vmatprep.mubr.f32.mxu0 %v2630_v0  ;;  %v257_v37 = vld [vmem:[#allocation2 + $0x6c0] sm:$0xff]  ;;  %v298_v41 = vld [vmem:[#allocation2 + $0x808] sm:$0xff]  ;;  %v184_v6 = vld [vmem:[#allocation2 + $0x478] sm:$0xff]  ;;  %v2429_v8 = vpack.c.bf16 %v103_v2, %v63_v62 }
  0x5d   :  { %1136 = vmatprep.mubr.f32.mxu1 %v2630_v0  ;;  %v2389_v45 = vpack.c.bf16 %v257_v37, %v217_v36  ;;  %v143_v12 = vld [vmem:[#allocation2 + $0x330] sm:$0xff]  ;;  %v2431_v13 = vpack.c.bf16 %v184_v6, %v144_v5  ;;  %v262_v16 = vld [vmem:[#allocation2 + $0x6e8] sm:$0xff]  ;;  %v224_v17 = vld [vmem:[#allocation2 + $0x5b8] sm:$0xff] }
  0x5e   :  { %2354 = vmatpush1.bf16.msra.mxu0 %v2353_v47  ;;  %v2391_v47 = vpack.c.bf16 %v338_v42, %v298_v41  ;;  %v183_v14 = vld [vmem:[#allocation2 + $0x470] sm:$0xff]  ;;  %v264_v18 = vld [vmem:[#allocation2 + $0x6f8] sm:$0xff]  ;;  %v342_v28 = vld [vmem:[#allocation2 + $0x968] sm:$0xff] }
  0x5f   :  { %2370 = vmatpush1.bf16.msra.mxu1 %v2369_v48  ;;  %2356 = vmatprep.subr.bf16.mxu0 %v2355_v49  ;;  %v297_v48 = vld [vmem:[#allocation2 + $0x800] sm:$0xff]  ;;  %v2433_v20 = vpack.c.bf16 %v183_v14, %v143_v12  ;;  %v223_v24 = vld [vmem:[#allocation2 + $0x5b0] sm:$0xff]  ;;  %v2435_v25 = vpack.c.bf16 %v264_v18, %v224_v17  ;;  %v304_v29 = vld [vmem:[#allocation2 + $0x838] sm:$0xff] }
  0x60   :  { %2372 = vmatprep.subr.bf16.mxu1 %v2371_v53  ;;  %v337_v49 = vld [vmem:[#allocation2 + $0x940] sm:$0xff]  ;;  %v62_v53 = vld [vmem:[#allocation2 + $0xa8] sm:$0xff]  ;;  %v263_v26 = vld [vmem:[#allocation2 + $0x6f0] sm:$0xff] }
  0x61   :  { %v2393_v57 = vpack.c.bf16 %v337_v49, %v297_v48  ;;  %v344_v30 = vld [vmem:[#allocation2 + $0x978] sm:$0xff]  ;;  %v2437_v32 = vpack.c.bf16 %v263_v26, %v223_v24  ;;  %v303_v36 = vld [vmem:[#allocation2 + $0x830] sm:$0xff]  ;;  %v106_v40 = vld [vmem:[#allocation2 + $0x208] sm:$0xff] }
  0x62   :  { %2358 = vmatpush1.bf16.msra.mxu0 %v2357_v59  ;;  %v2411_v59 = vpack.c.bf16 %v102_v54, %v62_v53  ;;  %v2439_v37 = vpack.c.bf16 %v344_v30, %v304_v29  ;;  %v343_v38 = vld [vmem:[#allocation2 + $0x970] sm:$0xff]  ;;  %v68_v41 = vld [vmem:[#allocation2 + $0xd8] sm:$0xff]  ;;  %v186_v52 = vld [vmem:[#allocation2 + $0x488] sm:$0xff] }
  0x63   :  { %2374 = vmatpush1.bf16.msra.mxu1 %v2373_v60  ;;  %2360 = vmatprep.subr.bf16.mxu0 %v2359_v61  ;;  %v61_v60 = vld [vmem:[#allocation2 + $0xa0] sm:$0xff]  ;;  %v108_v42 = vld [vmem:[#allocation2 + $0x218] sm:$0xff]  ;;  %v2441_v44 = vpack.c.bf16 %v343_v38, %v303_v36  ;;  %v67_v48 = vld [vmem:[#allocation2 + $0xd0] sm:$0xff] }
  0x64   :  { %2376 = vmatprep.subr.bf16.mxu1 %v2375_v3  ;;  %v101_v61 = vld [vmem:[#allocation2 + $0x1e0] sm:$0xff]  ;;  %v142_v3 = vld [vmem:[#allocation2 + $0x328] sm:$0xff]  ;;  %v2459_v49 = vpack.c.bf16 %v108_v42, %v68_v41  ;;  %v107_v50 = vld [vmem:[#allocation2 + $0x210] sm:$0xff] }
  0x65   :  { %v2413_v7 = vpack.c.bf16 %v101_v61, %v61_v60  ;;  %v148_v53 = vld [vmem:[#allocation2 + $0x358] sm:$0xff]  ;;  %v2461_v56 = vpack.c.bf16 %v107_v50, %v67_v48  ;;  %v147_v60 = vld [vmem:[#allocation2 + $0x350] sm:$0xff]  ;;  %v266_v2 = vld [vmem:[#allocation2 + $0x708] sm:$0xff] }
  0x66   :  { %2362 = vmatpush1.bf16.msra.mxu0 %v2361_v9  ;;  %v2415_v9 = vpack.c.bf16 %v182_v4, %v142_v3  ;;  %v188_v54 = vld [vmem:[#allocation2 + $0x498] sm:$0xff]  ;;  %v187_v62 = vld [vmem:[#allocation2 + $0x490] sm:$0xff]  ;;  %v346_v14 = vld [vmem:[#allocation2 + $0x988] sm:$0xff] }
  0x67   :  { %2378 = vmatpush1.bf16.msra.mxu1 %v2377_v10  ;;  %2380 = vmatprep.subr.bf16.mxu0 %v2379_v11  ;;  %v141_v10 = vld [vmem:[#allocation2 + $0x320] sm:$0xff]  ;;  %v2463_v61 = vpack.c.bf16 %v188_v54, %v148_v53  ;;  %v228_v3 = vld [vmem:[#allocation2 + $0x5d8] sm:$0xff]  ;;  %v2465_v6 = vpack.c.bf16 %v187_v62, %v147_v60  ;;  %v267_v12 = vld [vmem:[#allocation2 + $0x710] sm:$0xff] }
  0x68   :  { %2396 = vmatprep.subr.bf16.mxu1 %v2395_v15  ;;  %v181_v11 = vld [vmem:[#allocation2 + $0x460] sm:$0xff]  ;;  %v222_v15 = vld [vmem:[#allocation2 + $0x5a8] sm:$0xff]  ;;  %v268_v4 = vld [vmem:[#allocation2 + $0x718] sm:$0xff] }
  0x69   :  { %2237 = vmatmul.mubr.msk.f32.vlgmr.msra.gmra.mrb[6].mxu0 %vm571_vm0, %v2681_v63  ;;  %v2417_v19 = vpack.c.bf16 %v181_v11, %v141_v10  ;;  %v227_v10 = vld [vmem:[#allocation2 + $0x5d0] sm:$0xff]  ;;  %v2467_v11 = vpack.c.bf16 %v268_v4, %v228_v3  ;;  %v110_v26 = vld [vmem:[#allocation2 + $0x228] sm:$0xff] }
  0x6a   :  { %2238 = vmatmul.mubr.msk.f32.vlgmr.msra.gmra.mrb[6].mxu1 %vm571_vm0, %v2681_v63  ;;  %2382 = vmatpush1.bf16.msra.mxu0 %v2381_v21  ;;  %v2419_v21 = vpack.c.bf16 %v262_v16, %v222_v15  ;;  %v308_v15 = vld [vmem:[#allocation2 + $0x858] sm:$0xff]  ;;  %v2469_v18 = vpack.c.bf16 %v267_v12, %v227_v10  ;;  %v347_v24 = vld [vmem:[#allocation2 + $0x990] sm:$0xff]  ;;  %v190_v38 = vld [vmem:[#allocation2 + $0x4a8] sm:$0xff] }
  0x6b   :  { %2398 = vmatpush1.bf16.msra.mxu1 %v2397_v22  ;;  %2384 = vmatprep.subr.bf16.mxu0 %v2383_v23  ;;  %v221_v22 = vld [vmem:[#allocation2 + $0x5a0] sm:$0xff]  ;;  %v348_v16 = vld [vmem:[#allocation2 + $0x998] sm:$0xff]  ;;  %v111_v36 = vld [vmem:[#allocation2 + $0x230] sm:$0xff] }
  0x6c   :  { %2400 = vmatprep.subr.bf16.mxu1 %v2399_v27  ;;  %1207 = vmatprep.mubr.f32.mxu0 %v2630_v0  ;;  %v261_v23 = vld [vmem:[#allocation2 + $0x6e0] sm:$0xff]  ;;  %v302_v27 = vld [vmem:[#allocation2 + $0x828] sm:$0xff]  ;;  %v191_v48 = vld [vmem:[#allocation2 + $0x4b0] sm:$0xff] }
  0x6d   :  { %1278 = vmatprep.mubr.f32.mxu1 %v2630_v0  ;;  %v2421_v31 = vpack.c.bf16 %v261_v23, %v221_v22  ;;  %v307_v22 = vld [vmem:[#allocation2 + $0x850] sm:$0xff]  ;;  %v2471_v23 = vpack.c.bf16 %v348_v16, %v308_v15  ;;  %v270_v50 = vld [vmem:[#allocation2 + $0x728] sm:$0xff] }
  0x6e   :  { %2386 = vmatpush1.bf16.msra.mxu0 %v2385_v33  ;;  %v2423_v33 = vpack.c.bf16 %v342_v28, %v302_v27  ;;  %v72_v27 = vld [vmem:[#allocation2 + $0xf8] sm:$0xff]  ;;  %v2473_v30 = vpack.c.bf16 %v347_v24, %v307_v22  ;;  %v271_v60 = vld [vmem:[#allocation2 + $0x730] sm:$0xff]  ;;  %v350_v62 = vld [vmem:[#allocation2 + $0x9a8] sm:$0xff] }
  0x6f   :  { %2402 = vmatpush1.bf16.msra.mxu1 %v2401_v34  ;;  %2388 = vmatprep.subr.bf16.mxu0 %v2387_v35  ;;  %v301_v34 = vld [vmem:[#allocation2 + $0x820] sm:$0xff]  ;;  %v112_v28 = vld [vmem:[#allocation2 + $0x238] sm:$0xff]  ;;  %v351_v10 = vld [vmem:[#allocation2 + $0x9b0] sm:$0xff] }
  0x70   :  { %2404 = vmatprep.subr.bf16.mxu1 %v2403_v39  ;;  %v341_v35 = vld [vmem:[#allocation2 + $0x960] sm:$0xff]  ;;  %v66_v39 = vld [vmem:[#allocation2 + $0xc8] sm:$0xff]  ;;  %v115_v22 = vld [vmem:[#allocation2 + $0x250] sm:$0xff] }
  0x71   :  { %v2425_v43 = vpack.c.bf16 %v341_v35, %v301_v34  ;;  %v71_v34 = vld [vmem:[#allocation2 + $0xf0] sm:$0xff]  ;;  %v2491_v35 = vpack.c.bf16 %v112_v28, %v72_v27  ;;  %v114_v12 = vld [vmem:[#allocation2 + $0x248] sm:$0xff] }
  0x72   :  { %2390 = vmatpush1.bf16.msra.mxu0 %v2389_v45  ;;  %v2443_v45 = vpack.c.bf16 %v106_v40, %v66_v39  ;;  %v152_v39 = vld [vmem:[#allocation2 + $0x378] sm:$0xff]  ;;  %v2493_v42 = vpack.c.bf16 %v111_v36, %v71_v34  ;;  %v194_v24 = vld [vmem:[#allocation2 + $0x4c8] sm:$0xff]  ;;  %v195_v34 = vld [vmem:[#allocation2 + $0x4d0] sm:$0xff] }
  0x73   :  { %2406 = vmatpush1.bf16.msra.mxu1 %v2405_v46  ;;  %2392 = vmatprep.subr.bf16.mxu0 %v2391_v47  ;;  %v65_v46 = vld [vmem:[#allocation2 + $0xc0] sm:$0xff]  ;;  %v192_v40 = vld [vmem:[#allocation2 + $0x4b8] sm:$0xff]  ;;  %v274_v36 = vld [vmem:[#allocation2 + $0x748] sm:$0xff] }
  0x74   :  { %2408 = vmatprep.subr.bf16.mxu1 %v2407_v51  ;;  %v105_v47 = vld [vmem:[#allocation2 + $0x200] sm:$0xff]  ;;  %v146_v51 = vld [vmem:[#allocation2 + $0x348] sm:$0xff] }
  0x75   :  { %v2445_v55 = vpack.c.bf16 %v105_v47, %v65_v46  ;;  %v151_v46 = vld [vmem:[#allocation2 + $0x370] sm:$0xff]  ;;  %v2495_v47 = vpack.c.bf16 %v192_v40, %v152_v39 }
  0x76   :  { %2394 = vmatpush1.bf16.msra.mxu0 %v2393_v57  ;;  %v2447_v57 = vpack.c.bf16 %v186_v52, %v146_v51  ;;  %v232_v51 = vld [vmem:[#allocation2 + $0x5f8] sm:$0xff]  ;;  %v2497_v54 = vpack.c.bf16 %v191_v48, %v151_v46  ;;  %v275_v46 = vld [vmem:[#allocation2 + $0x750] sm:$0xff]  ;;  %v354_v48 = vld [vmem:[#allocation2 + $0x9c8] sm:$0xff] }
  0x77   :  { %2410 = vmatpush1.bf16.msra.mxu1 %v2409_v58  ;;  %2412 = vmatprep.subr.bf16.mxu0 %v2411_v59  ;;  %v145_v58 = vld [vmem:[#allocation2 + $0x340] sm:$0xff]  ;;  %v272_v52 = vld [vmem:[#allocation2 + $0x738] sm:$0xff] }
  0x78   :  { %2428 = vmatprep.subr.bf16.mxu1 %v2427_v1  ;;  %v185_v59 = vld [vmem:[#allocation2 + $0x480] sm:$0xff]  ;;  %v226_v1 = vld [vmem:[#allocation2 + $0x5c8] sm:$0xff] }
  0x79   :  { %2239 = vmatmul.mubr.msk.f32.vlgmr.msra.gmra.mrb[8].mxu0 %vm571_vm0, %v2681_v63  ;;  %v2449_v5 = vpack.c.bf16 %v185_v59, %v145_v58  ;;  %v231_v58 = vld [vmem:[#allocation2 + $0x5f0] sm:$0xff]  ;;  %v2499_v59 = vpack.c.bf16 %v272_v52, %v232_v51 }
  0x7a   :  { %2240 = vmatmul.mubr.msk.f32.vlgmr.msra.gmra.mrb[8].mxu1 %vm571_vm0, %v2681_v63  ;;  %2414 = vmatpush1.bf16.msra.mxu0 %v2413_v7  ;;  %v2451_v7 = vpack.c.bf16 %v266_v2, %v226_v1  ;;  %v312_v1 = vld [vmem:[#allocation2 + $0x878] sm:$0xff]  ;;  %v2501_v4 = vpack.c.bf16 %v271_v60, %v231_v58  ;;  %v78_v58 = vld [vmem:[#allocation2 + $0x128] sm:$0xff] }
  0x7b   :  { %2430 = vmatpush1.bf16.msra.mxu1 %v2429_v8  ;;  %2416 = vmatprep.subr.bf16.mxu0 %v2415_v9  ;;  %v225_v8 = vld [vmem:[#allocation2 + $0x5c0] sm:$0xff]  ;;  %v352_v2 = vld [vmem:[#allocation2 + $0x9b8] sm:$0xff] }
  0x7c   :  { %2432 = vmatprep.subr.bf16.mxu1 %v2431_v13  ;;  %1349 = vmatprep.mubr.f32.mxu0 %v2630_v0  ;;  %v265_v9 = vld [vmem:[#allocation2 + $0x700] sm:$0xff]  ;;  %v306_v13 = vld [vmem:[#allocation2 + $0x848] sm:$0xff]  ;;  %v80_v60 = vld [vmem:[#allocation2 + $0x138] sm:$0xff] }
  0x7d   :  { %1420 = vmatprep.mubr.f32.mxu1 %v2630_v0  ;;  %v2453_v17 = vpack.c.bf16 %v265_v9, %v225_v8  ;;  %v311_v8 = vld [vmem:[#allocation2 + $0x870] sm:$0xff]  ;;  %v2503_v9 = vpack.c.bf16 %v352_v2, %v312_v1 }
  0x7e   :  { %2418 = vmatpush1.bf16.msra.mxu0 %v2417_v19  ;;  %v2455_v19 = vpack.c.bf16 %v346_v14, %v306_v13  ;;  %v76_v13 = vld [vmem:[#allocation2 + $0x118] sm:$0xff]  ;;  %v2505_v16 = vpack.c.bf16 %v351_v10, %v311_v8  ;;  %v158_v8 = vld [vmem:[#allocation2 + $0x3a8] sm:$0xff] }
  0x7f   :  { %2434 = vmatpush1.bf16.msra.mxu1 %v2433_v20  ;;  %2420 = vmatprep.subr.bf16.mxu0 %v2419_v21  ;;  %v305_v20 = vld [vmem:[#allocation2 + $0x840] sm:$0xff]  ;;  %v116_v14 = vld [vmem:[#allocation2 + $0x258] sm:$0xff] }
  0x80   :  { %2436 = vmatprep.subr.bf16.mxu1 %v2435_v25  ;;  %v345_v21 = vld [vmem:[#allocation2 + $0x980] sm:$0xff]  ;;  %v70_v25 = vld [vmem:[#allocation2 + $0xe8] sm:$0xff]  ;;  %v160_v10 = vld [vmem:[#allocation2 + $0x3b8] sm:$0xff] }
  0x81   :  { %v2457_v29 = vpack.c.bf16 %v345_v21, %v305_v20  ;;  %v75_v20 = vld [vmem:[#allocation2 + $0x110] sm:$0xff]  ;;  %v2523_v21 = vpack.c.bf16 %v116_v14, %v76_v13 }
  0x82   :  { %2422 = vmatpush1.bf16.msra.mxu0 %v2421_v31  ;;  %v2475_v31 = vpack.c.bf16 %v110_v26, %v70_v25  ;;  %v156_v25 = vld [vmem:[#allocation2 + $0x398] sm:$0xff]  ;;  %v2525_v28 = vpack.c.bf16 %v115_v22, %v75_v20  ;;  %v238_v20 = vld [vmem:[#allocation2 + $0x628] sm:$0xff]  ;;  %v2577_v22 = vld [vmem:[%s2848_s0] sm:$0x3] }
  0x83   :  { %2438 = vmatpush1.bf16.msra.mxu1 %v2437_v32  ;;  %2424 = vmatprep.subr.bf16.mxu0 %v2423_v33  ;;  %v69_v32 = vld [vmem:[#allocation2 + $0xe0] sm:$0xff]  ;;  %v196_v26 = vld [vmem:[#allocation2 + $0x4d8] sm:$0xff] }
  0x84   :  { %2440 = vmatprep.subr.bf16.mxu1 %v2439_v37  ;;  %v109_v33 = vld [vmem:[#allocation2 + $0x220] sm:$0xff]  ;;  %v150_v37 = vld [vmem:[#allocation2 + $0x368] sm:$0xff] }
  0x85   :  { %v2477_v41 = vpack.c.bf16 %v109_v33, %v69_v32  ;;  %v155_v32 = vld [vmem:[#allocation2 + $0x390] sm:$0xff]  ;;  %v2527_v33 = vpack.c.bf16 %v196_v26, %v156_v25 }
  0x86   :  { %2426 = vmatpush1.bf16.msra.mxu0 %v2425_v43  ;;  %v2479_v43 = vpack.c.bf16 %v190_v38, %v150_v37  ;;  %v236_v37 = vld [vmem:[#allocation2 + $0x618] sm:$0xff]  ;;  %v2529_v40 = vpack.c.bf16 %v195_v34, %v155_v32  ;;  %v279_v32 = vld [vmem:[#allocation2 + $0x770] sm:$0xff]  ;;  %v358_v34 = vld [vmem:[#allocation2 + $0x9e8] sm:$0xff] }
  0x87   :  { %2442 = vmatpush1.bf16.msra.mxu1 %v2441_v44  ;;  %2444 = vmatprep.subr.bf16.mxu0 %v2443_v45  ;;  %v149_v44 = vld [vmem:[#allocation2 + $0x360] sm:$0xff]  ;;  %v276_v38 = vld [vmem:[#allocation2 + $0x758] sm:$0xff] }
  0x88   :  { %2460 = vmatprep.subr.bf16.mxu1 %v2459_v49  ;;  %v189_v45 = vld [vmem:[#allocation2 + $0x4a0] sm:$0xff]  ;;  %v230_v49 = vld [vmem:[#allocation2 + $0x5e8] sm:$0xff] }
  0x89   :  { %2241 = vmatmul.mubr.msk.f32.vlgmr.msra.gmra.mrb[10].mxu0 %vm571_vm0, %v2681_v63  ;;  %v2481_v53 = vpack.c.bf16 %v189_v45, %v149_v44  ;;  %v235_v44 = vld [vmem:[#allocation2 + $0x610] sm:$0xff]  ;;  %v2531_v45 = vpack.c.bf16 %v276_v38, %v236_v37 }
  0x8a   :  { %2242 = vmatmul.mubr.msk.f32.vlgmr.msra.gmra.mrb[10].mxu1 %vm571_vm0, %v2681_v63  ;;  %2446 = vmatpush1.bf16.msra.mxu0 %v2445_v55  ;;  %v2483_v55 = vpack.c.bf16 %v270_v50, %v230_v49  ;;  %v316_v49 = vld [vmem:[#allocation2 + $0x898] sm:$0xff]  ;;  %v2533_v51 = vpack.c.bf16 %v275_v46, %v235_v44  ;;  %v359_v44 = vld [vmem:[#allocation2 + $0x9f0] sm:$0xff] }
  0x8b   :  { %2462 = vmatpush1.bf16.msra.mxu1 %v2461_v56  ;;  %2448 = vmatprep.subr.bf16.mxu0 %v2447_v57  ;;  %v229_v56 = vld [vmem:[#allocation2 + $0x5e0] sm:$0xff]  ;;  %v356_v50 = vld [vmem:[#allocation2 + $0x9d8] sm:$0xff] }
  0x8c   :  { %2464 = vmatprep.subr.bf16.mxu1 %v2463_v61  ;;  %1491 = vmatprep.mubr.f32.mxu0 %v2630_v0  ;;  %v269_v57 = vld [vmem:[#allocation2 + $0x720] sm:$0xff]  ;;  %v310_v61 = vld [vmem:[#allocation2 + $0x868] sm:$0xff] }
  0x8d   :  { %1562 = vmatprep.mubr.f32.mxu1 %v2630_v0  ;;  %v2485_v3 = vpack.c.bf16 %v269_v57, %v229_v56  ;;  %v2535_v56 = vpack.c.bf16 %v356_v50, %v316_v49  ;;  %v355_v57 = vld [vmem:[#allocation2 + $0x9d0] sm:$0xff]  ;;  %v361_v49 = vld [vmem:[#allocation4] sm:$0xff] }
  0x8e   :  { %2450 = vmatpush1.bf16.msra.mxu0 %v2449_v5  ;;  %v2487_v5 = vpack.c.bf16 %v350_v62, %v310_v61  ;;  %v120_v61 = vld [vmem:[#allocation2 + $0x278] sm:$0xff] }
  0x8f   :  { %2466 = vmatpush1.bf16.msra.mxu1 %v2465_v6  ;;  %2452 = vmatprep.subr.bf16.mxu0 %v2451_v7  ;;  %v309_v6 = vld [vmem:[#allocation2 + $0x860] sm:$0xff] }
  0x90   :  { %2468 = vmatprep.subr.bf16.mxu1 %v2467_v11  ;;  %v349_v7 = vld [vmem:[#allocation2 + $0x9a0] sm:$0xff]  ;;  %v74_v11 = vld [vmem:[#allocation2 + $0x108] sm:$0xff] }
  0x91   :  { %v2489_v15 = vpack.c.bf16 %v349_v7, %v309_v6  ;;  %v2555_v6 = vpack.c.bf16 %v120_v61, %v80_v60  ;;  %v119_v7 = vld [vmem:[#allocation2 + $0x270] sm:$0xff] }
  0x92   :  { %2454 = vmatpush1.bf16.msra.mxu0 %v2453_v17  ;;  %v2507_v17 = vpack.c.bf16 %v114_v12, %v74_v11  ;;  %v200_v11 = vld [vmem:[#allocation2 + $0x4f8] sm:$0xff] }
  0x93   :  { %2470 = vmatpush1.bf16.msra.mxu1 %v2469_v18  ;;  %2456 = vmatprep.subr.bf16.mxu0 %v2455_v19  ;;  %v73_v18 = vld [vmem:[#allocation2 + $0x100] sm:$0xff] }
  0x94   :  { %2472 = vmatprep.subr.bf16.mxu1 %v2471_v23  ;;  %v113_v19 = vld [vmem:[#allocation2 + $0x240] sm:$0xff]  ;;  %v154_v23 = vld [vmem:[#allocation2 + $0x388] sm:$0xff] }
  0x95   :  { %v2509_v27 = vpack.c.bf16 %v113_v19, %v73_v18  ;;  %v2559_v18 = vpack.c.bf16 %v200_v11, %v160_v10  ;;  %v199_v19 = vld [vmem:[#allocation2 + $0x4f0] sm:$0xff] }
  0x96   :  { %2458 = vmatpush1.bf16.msra.mxu0 %v2457_v29  ;;  %v2511_v29 = vpack.c.bf16 %v194_v24, %v154_v23  ;;  %v240_v23 = vld [vmem:[#allocation2 + $0x638] sm:$0xff] }
  0x97   :  { %2474 = vmatpush1.bf16.msra.mxu1 %v2473_v30  ;;  %2476 = vmatprep.subr.bf16.mxu0 %v2475_v31  ;;  %v153_v30 = vld [vmem:[#allocation2 + $0x380] sm:$0xff]  ;;  %v280_v24 = vld [vmem:[#allocation2 + $0x778] sm:$0xff] }
  0x98   :  { %2492 = vmatprep.subr.bf16.mxu1 %v2491_v35  ;;  %v193_v31 = vld [vmem:[#allocation2 + $0x4c0] sm:$0xff]  ;;  %v234_v35 = vld [vmem:[#allocation2 + $0x608] sm:$0xff] }
  0x99   :  { %2243 = vmatmul.mubr.msk.f32.vlgmr.msra.gmra.mrb[12].mxu0 %vm571_vm0, %v2681_v63  ;;  %v2513_v39 = vpack.c.bf16 %v193_v31, %v153_v30  ;;  %v239_v30 = vld [vmem:[#allocation2 + $0x630] sm:$0xff]  ;;  %v2563_v31 = vpack.c.bf16 %v280_v24, %v240_v23 }
  0x9a   :  { %2244 = vmatmul.mubr.msk.f32.vlgmr.msra.gmra.mrb[12].mxu1 %vm571_vm0, %v2681_v63  ;;  %2478 = vmatpush1.bf16.msra.mxu0 %v2477_v41  ;;  %v2515_v41 = vpack.c.bf16 %v274_v36, %v234_v35  ;;  %v320_v35 = vld [vmem:[#allocation2 + $0x8b8] sm:$0xff]  ;;  %v2565_v38 = vpack.c.bf16 %v279_v32, %v239_v30  ;;  %v362_v32 = vld [vmem:[#allocation4 + $0x8] sm:$0xff] }
  0x9b   :  { %2494 = vmatpush1.bf16.msra.mxu1 %v2493_v42  ;;  %2480 = vmatprep.subr.bf16.mxu0 %v2479_v43  ;;  %v233_v42 = vld [vmem:[#allocation2 + $0x600] sm:$0xff]  ;;  %v360_v36 = vld [vmem:[#allocation2 + $0x9f8] sm:$0xff] }
  0x9c   :  { %2496 = vmatprep.subr.bf16.mxu1 %v2495_v47  ;;  %1633 = vmatprep.mubr.f32.mxu0 %v2630_v0  ;;  %v273_v43 = vld [vmem:[#allocation2 + $0x740] sm:$0xff]  ;;  %v314_v47 = vld [vmem:[#allocation2 + $0x888] sm:$0xff] }
  0x9d   :  { %1704 = vmatprep.mubr.f32.mxu1 %v2630_v0  ;;  %v2519_v52 = vpack.c.bf16 %v354_v48, %v314_v47 }
  0x9e   :  { %2482 = vmatpush1.bf16.msra.mxu0 %v2481_v53  ;;  %v313_v53 = vld [vmem:[#allocation2 + $0x880] sm:$0xff] }
  0x9f   :  { %2498 = vmatpush1.bf16.msra.mxu1 %v2497_v54  ;;  %2484 = vmatprep.subr.bf16.mxu0 %v2483_v55  ;;  %v353_v54 = vld [vmem:[#allocation2 + $0x9c0] sm:$0xff]  ;;  %v315_v55 = vld [vmem:[#allocation2 + $0x890] sm:$0xff] }
  0xa0   :  { %2500 = vmatprep.subr.bf16.mxu1 %v2499_v59  ;;  %v118_v59 = vld [vmem:[#allocation2 + $0x268] sm:$0xff]  ;;  %v2521_v62 = vpack.c.bf16 %v353_v54, %v313_v53  ;;  %v2537_v1 = vpack.c.bf16 %v355_v57, %v315_v55 }
  0xa1   :  { %v2539_v2 = vpack.c.bf16 %v118_v59, %v78_v58 }
  0xa2   :  { %2486 = vmatpush1.bf16.msra.mxu0 %v2485_v3  ;;  %v77_v3 = vld [vmem:[#allocation2 + $0x120] sm:$0xff] }
  0xa3   :  { %2502 = vmatpush1.bf16.msra.mxu1 %v2501_v4  ;;  %2488 = vmatprep.subr.bf16.mxu0 %v2487_v5  ;;  %v117_v4 = vld [vmem:[#allocation2 + $0x260] sm:$0xff]  ;;  %v79_v5 = vld [vmem:[#allocation2 + $0x130] sm:$0xff] }
  0xa4   :  { %2504 = vmatprep.subr.bf16.mxu1 %v2503_v9  ;;  %v198_v9 = vld [vmem:[#allocation2 + $0x4e8] sm:$0xff]  ;;  %v2541_v12 = vpack.c.bf16 %v117_v4, %v77_v3  ;;  %v2557_v13 = vpack.c.bf16 %v119_v7, %v79_v5 }
  0xa5   :  { %v2543_v14 = vpack.c.bf16 %v198_v9, %v158_v8 }
  0xa6   :  { %2490 = vmatpush1.bf16.msra.mxu0 %v2489_v15  ;;  %v157_v15 = vld [vmem:[#allocation2 + $0x3a0] sm:$0xff] }
  0xa7   :  { %2506 = vmatpush1.bf16.msra.mxu1 %v2505_v16  ;;  %2508 = vmatprep.subr.bf16.mxu0 %v2507_v17  ;;  %v197_v16 = vld [vmem:[#allocation2 + $0x4e0] sm:$0xff]  ;;  %v159_v17 = vld [vmem:[#allocation2 + $0x3b0] sm:$0xff] }
  0xa8   :  { %2524 = vmatprep.subr.bf16.mxu1 %v2523_v21  ;;  %v278_v21 = vld [vmem:[#allocation2 + $0x768] sm:$0xff]  ;;  %v2545_v25 = vpack.c.bf16 %v197_v16, %v157_v15  ;;  %v2561_v26 = vpack.c.bf16 %v199_v19, %v159_v17 }
  0xa9   :  { %2245 = vmatmul.mubr.msk.f32.vlgmr.msra.gmra.mrb[14].mxu0 %vm571_vm0, %v2681_v63 }
  0xaa   :  { %2246 = vmatmul.mubr.msk.f32.vlgmr.msra.gmra.mrb[14].mxu1 %vm571_vm0, %v2681_v63  ;;  %2510 = vmatpush1.bf16.msra.mxu0 %v2509_v27  ;;  %v2517_v63 = vpack.c.bf16 %v273_v43, %v233_v42  ;;  %v2547_v27 = vpack.c.bf16 %v278_v21, %v238_v20  ;;  %v2567_v42 = vpack.c.bf16 %v360_v36, %v320_v35  ;;  %v319_v43 = vld [vmem:[#allocation2 + $0x8b0] sm:$0xff] }
  0xab   :  { %2526 = vmatpush1.bf16.msra.mxu1 %v2525_v28  ;;  %2512 = vmatprep.subr.bf16.mxu0 %v2511_v29  ;;  %v237_v28 = vld [vmem:[#allocation2 + $0x620] sm:$0xff]  ;;  %v2569_v46 = vpack.c.bf16 %v359_v44, %v319_v43 }
  0xac   :  { %2528 = vmatprep.subr.bf16.mxu1 %v2527_v33  ;;  %1775 = vmatprep.mubr.f32.mxu0 %v2630_v0  ;;  %v277_v29 = vld [vmem:[#allocation2 + $0x760] sm:$0xff]  ;;  %v318_v33 = vld [vmem:[#allocation2 + $0x8a8] sm:$0xff] }
  0xad   :  { %1846 = vmatprep.mubr.f32.mxu1 %v2630_v0  ;;  %v2549_v37 = vpack.c.bf16 %v277_v29, %v237_v28 }
  0xae   :  { %2514 = vmatpush1.bf16.msra.mxu0 %v2513_v39  ;;  %v2551_v39 = vpack.c.bf16 %v358_v34, %v318_v33 }
  0xaf   :  { %2530 = vmatpush1.bf16.msra.mxu1 %v2529_v40  ;;  %2516 = vmatprep.subr.bf16.mxu0 %v2515_v41  ;;  %v317_v40 = vld [vmem:[#allocation2 + $0x8a0] sm:$0xff] }
  0xb0   :  { %2532 = vmatprep.subr.bf16.mxu1 %v2531_v45  ;;  %v357_v41 = vld [vmem:[#allocation2 + $0x9e0] sm:$0xff] }
  0xb1   :  { %v2553_v45 = vpack.c.bf16 %v357_v41, %v317_v40 }
  0xb2   :  { %2518 = vmatpush1.bf16.msra.mxu0 %v2517_v63 }
  0xb3   :  { %2534 = vmatpush1.bf16.msra.mxu1 %v2533_v51  ;;  %2520 = vmatprep.subr.bf16.mxu0 %v2519_v52  ;;  %v2631_v51 = vmov 1983009808  }
  0xb4   :  { %2536 = vmatprep.subr.bf16.mxu1 %v2535_v56  ;;  %v2038_v52 = vunpack.c.l.s4 %v2631_v51 }
  0xb6   :  { %2522 = vmatpush1.bf16.msra.mxu0 %v2521_v62  ;;  %v2039_v57 = vunpack.c.0.s8 %v2038_v52 }
  0xb7   :  { %2538 = vmatpush1.bf16.msra.mxu1 %v2537_v1  ;;  %2540 = vmatprep.subr.bf16.mxu0 %v2539_v2 }
  0xb8   :  { %2556 = vmatprep.subr.bf16.mxu1 %v2555_v6 }
  0xb9   :  { %2247 = vmatmul.mubr.msk.f32.vlgmr.msra.gmra.mrb[16].mxu0 %vm571_vm0, %v2577_v22 }
  0xba   :  { %2248 = vmatmul.mubr.msk.f32.vlgmr.msra.gmra.mrb[16].mxu1 %vm571_vm0, %v2577_v22  ;;  %2542 = vmatpush1.bf16.msra.mxu0 %v2541_v12 }
  0xbb   :  { %2558 = vmatpush1.bf16.msra.mxu1 %v2557_v13  ;;  %2544 = vmatprep.subr.bf16.mxu0 %v2543_v14 }
  0xbc   :  { %2560 = vmatprep.subr.bf16.mxu1 %v2559_v18  ;;  %1917 = vmatprep.mubr.f32.mxu0 %v2630_v0 }
  0xbd   :  { %1988 = vmatprep.mubr.f32.mxu1 %v2630_v0  ;;  %v371_v0 = vlaneseq }
  0xbe   :  { %2546 = vmatpush1.bf16.msra.mxu0 %v2545_v25 }
  0xbf   :  { %2562 = vmatpush1.bf16.msra.mxu1 %v2561_v26  ;;  %2548 = vmatprep.subr.bf16.mxu0 %v2547_v27  ;;  %v372_v47 = vshrl.u32 %v371_v0, 7 }
  0xc0   :  { %2564 = vmatprep.subr.bf16.mxu1 %v2563_v31 }
  0xc1   :  { %v2740_v48 = vsub.s32 0, %v372_v47  ;;  %v2742_v50 = vsub.s32 2, %v372_v47  ;;  %v2744_v63 = vsub.s32 1, %v372_v47  ;;  %v2746_v53 = vsub.s32 3, %v372_v47 }
  0xc2   :  { %2550 = vmatpush1.bf16.msra.mxu0 %v2549_v37  ;;  %v2752_v3 = vsub.s32 %v2039_v57, %v372_v47  ;;  %v2756_v11 = vsub.s32 4, %v372_v47  ;;  %v2758_v12 = vsub.s32 6, %v372_v47  ;;  %v2760_v13 = vsub.s32 5, %v372_v47 }
  0xc3   :  { %2566 = vmatpush1.bf16.msra.mxu1 %v2565_v38  ;;  %2552 = vmatprep.subr.bf16.mxu0 %v2551_v39  ;;  %v374_v54 = vrot.slane %v361_v49, %v2740_v48  ;;  %v382_v55 = vrot.slane %v361_v49, %v2742_v50  ;;  %v378_v56 = vrot.slane %v361_v49, %v2744_v63  ;;  %v2765_v14 = vsub.s32 7, %v372_v47 }
  0xc4   :  { %2568 = vmatprep.subr.bf16.mxu1 %v2567_v42  ;;  %v386_v58 = vrot.slane %v361_v49, %v2746_v53  ;;  %v390_v15 = vrot.slane %v361_v49, %v2756_v11  ;;  %v398_v16 = vrot.slane %v361_v49, %v2758_v12  ;;  %v394_v17 = vrot.slane %v361_v49, %v2760_v13 }
  0xc5   :  { %v402_v18 = vrot.slane %v361_v49, %v2765_v14  ;;  %v406_v33 = vrot.slane %v362_v32, %v2740_v48  ;;  %v414_v34 = vrot.slane %v362_v32, %v2742_v50  ;;  %v410_v35 = vrot.slane %v362_v32, %v2744_v63 }
  0xc6   :  { %2554 = vmatpush1.bf16.msra.mxu0 %v2553_v45  ;;  %v418_v36 = vrot.slane %v362_v32, %v2746_v53  ;;  %v422_v51 = vrot.slane %v362_v32, %v2756_v11  ;;  %v430_v52 = vrot.slane %v362_v32, %v2758_v12 }
  0xc7   :  { %2570 = vmatpush1.bf16.msra.mxu1 %v2569_v46 }
  0xc9   :  { %2249 = vmatmul.mubr.msk.f32.vlgmr.msra.gmra.mrb[18].mxu0 %vm571_vm0, %v2577_v22 }
  0xca   :  { %2250 = vmatmul.mubr.msk.f32.vlgmr.msra.gmra.mrb[18].mxu1 %vm571_vm0, %v2577_v22 }
 0x10c   :  { %v641_v59 = vpop.f32.mrb[0].mxu0 }
 0x10d   :  { %v642_v60 = vadd.f32 %v641_v59, %v374_v54  ;;  %v712_v61 = vpop.f32.mrb[0].mxu1  ;;  %v643_v62 = vpop.f32.mrb[1].mxu0  ;;  %v426_v54 = vrot.slane %v362_v32, %v2760_v13 }
 0x10e   :  { %v713_v1 = vadd.f32 %v712_v61, %v382_v55  ;;  %v644_v2 = vadd.f32 %v643_v62, %v378_v56  ;;  %v714_v4 = vpop.f32.mrb[1].mxu1  ;;  %v434_v55 = vrot.slane %v362_v32, %v2765_v14 }
 0x10f   :  { %v715_v5 = vadd.f32 %v714_v4, %v386_v58 }
 0x110   :  { %v2035_v6 = vcombine.low %v642_v60, %v644_v2 }
 0x111   :  { %v2036_v7 = vcombine.low %v713_v1, %v715_v5 }
 0x112   :  { %v2043_v8 = vrot.slane %v2035_v6, %v2752_v3 }
 0x113   :  { %v2050_v9 = vrot.slane %v2036_v7, %v2752_v3 }
 0x115   :  { %v2051_v10 = vcombine.low %v2043_v8, %v2050_v9  ;;  %v363_v8 = vld [vmem:[#allocation4 + $0x10] sm:$0xff] }
 0x116   :  { %v438_v9 = vrot.slane %v363_v8, %v2740_v48  ;;  %v458_v32 = vrot.slane %v363_v8, %v2760_v13 }
 0x117   :  { %2215 = vst [vmem:[%s2851_s3] sm:$0xff] %v2051_v10  ;;  %v446_v10 = vrot.slane %v363_v8, %v2742_v50 }
 0x11c   :  { %v783_v19 = vpop.f32.mrb[2].mxu0 }
 0x11d   :  { %v784_v20 = vadd.f32 %v783_v19, %v390_v15  ;;  %v854_v21 = vpop.f32.mrb[2].mxu1  ;;  %v785_v22 = vpop.f32.mrb[3].mxu0  ;;  %v442_v15 = vrot.slane %v363_v8, %v2744_v63 }
 0x11e   :  { %v855_v23 = vadd.f32 %v854_v21, %v398_v16  ;;  %v786_v24 = vadd.f32 %v785_v22, %v394_v17  ;;  %v856_v25 = vpop.f32.mrb[3].mxu1  ;;  %v450_v16 = vrot.slane %v363_v8, %v2746_v53 }
 0x11f   :  { %v857_v26 = vadd.f32 %v856_v25, %v402_v18 }
 0x120   :  { %v2052_v27 = vcombine.low %v784_v20, %v786_v24 }
 0x121   :  { %v2053_v28 = vcombine.low %v855_v23, %v857_v26 }
 0x122   :  { %v2060_v29 = vrot.slane %v2052_v27, %v2752_v3 }
 0x123   :  { %v2067_v30 = vrot.slane %v2053_v28, %v2752_v3 }
 0x125   :  { %v2068_v31 = vcombine.low %v2060_v29, %v2067_v30  ;;  %v454_v30 = vrot.slane %v363_v8, %v2756_v11 }
 0x127   :  { %2216 = vst [vmem:[%s2851_s3 + $0x8] sm:$0xff] %v2068_v31  ;;  %v462_v31 = vrot.slane %v363_v8, %v2758_v12 }
 0x12c   :  { %v925_v37 = vpop.f32.mrb[4].mxu0 }
 0x12d   :  { %v926_v38 = vadd.f32 %v925_v37, %v406_v33  ;;  %v996_v39 = vpop.f32.mrb[4].mxu1  ;;  %v927_v40 = vpop.f32.mrb[5].mxu0  ;;  %v466_v33 = vrot.slane %v363_v8, %v2765_v14 }
 0x12e   :  { %v997_v41 = vadd.f32 %v996_v39, %v414_v34  ;;  %v928_v42 = vadd.f32 %v927_v40, %v410_v35  ;;  %v998_v43 = vpop.f32.mrb[5].mxu1 }
 0x12f   :  { %v999_v44 = vadd.f32 %v998_v43, %v418_v36 }
 0x130   :  { %v2069_v45 = vcombine.low %v926_v38, %v928_v42 }
 0x131   :  { %v2070_v46 = vcombine.low %v997_v41, %v999_v44 }
 0x132   :  { %v2077_v0 = vrot.slane %v2069_v45, %v2752_v3 }
 0x133   :  { %v2084_v47 = vrot.slane %v2070_v46, %v2752_v3 }
 0x135   :  { %v2085_v49 = vcombine.low %v2077_v0, %v2084_v47  ;;  %v364_v0 = vld [vmem:[#allocation4 + $0x18] sm:$0xff] }
 0x136   :  { %v470_v47 = vrot.slane %v364_v0, %v2740_v48  ;;  %v490_v8 = vrot.slane %v364_v0, %v2760_v13 }
 0x137   :  { %2217 = vst [vmem:[%s2851_s3 + $0x10] sm:$0xff] %v2085_v49  ;;  %v478_v49 = vrot.slane %v364_v0, %v2742_v50 }
 0x13c   :  { %v1067_v56 = vpop.f32.mrb[6].mxu0 }
 0x13d   :  { %v1068_v57 = vadd.f32 %v1067_v56, %v422_v51  ;;  %v1138_v58 = vpop.f32.mrb[6].mxu1  ;;  %v1069_v59 = vpop.f32.mrb[7].mxu0  ;;  %v474_v51 = vrot.slane %v364_v0, %v2744_v63 }
 0x13e   :  { %v1139_v60 = vadd.f32 %v1138_v58, %v430_v52  ;;  %v1070_v61 = vadd.f32 %v1069_v59, %v426_v54  ;;  %v1140_v62 = vpop.f32.mrb[7].mxu1  ;;  %v482_v52 = vrot.slane %v364_v0, %v2746_v53 }
 0x13f   :  { %v1141_v1 = vadd.f32 %v1140_v62, %v434_v55 }
 0x140   :  { %v2086_v2 = vcombine.low %v1068_v57, %v1070_v61 }
 0x141   :  { %v2087_v4 = vcombine.low %v1139_v60, %v1141_v1 }
 0x142   :  { %v2094_v5 = vrot.slane %v2086_v2, %v2752_v3 }
 0x143   :  { %v2101_v6 = vrot.slane %v2087_v4, %v2752_v3 }
 0x145   :  { %v2102_v7 = vcombine.low %v2094_v5, %v2101_v6  ;;  %v486_v6 = vrot.slane %v364_v0, %v2756_v11 }
 0x147   :  { %2218 = vst [vmem:[%s2851_s3 + $0x18] sm:$0xff] %v2102_v7  ;;  %v494_v7 = vrot.slane %v364_v0, %v2758_v12 }
 0x14c   :  { %v1209_v17 = vpop.f32.mrb[8].mxu0 }
 0x14d   :  { %v1210_v18 = vadd.f32 %v1209_v17, %v438_v9  ;;  %v1280_v19 = vpop.f32.mrb[8].mxu1  ;;  %v1211_v20 = vpop.f32.mrb[9].mxu0  ;;  %v498_v9 = vrot.slane %v364_v0, %v2765_v14 }
 0x14e   :  { %v1281_v21 = vadd.f32 %v1280_v19, %v446_v10  ;;  %v1212_v22 = vadd.f32 %v1211_v20, %v442_v15  ;;  %v1282_v23 = vpop.f32.mrb[9].mxu1 }
 0x14f   :  { %v1283_v24 = vadd.f32 %v1282_v23, %v450_v16 }
 0x150   :  { %v2103_v25 = vcombine.low %v1210_v18, %v1212_v22 }
 0x151   :  { %v2104_v26 = vcombine.low %v1281_v21, %v1283_v24 }
 0x152   :  { %v2111_v27 = vrot.slane %v2103_v25, %v2752_v3 }
 0x153   :  { %v2118_v28 = vrot.slane %v2104_v26, %v2752_v3 }
 0x155   :  { %v2119_v29 = vcombine.low %v2111_v27, %v2118_v28  ;;  %v365_v27 = vld [vmem:[#allocation4 + $0x20] sm:$0xff] }
 0x156   :  { %v502_v28 = vrot.slane %v365_v27, %v2740_v48 }
 0x157   :  { %2219 = vst [vmem:[%s2851_s3 + $0x20] sm:$0xff] %v2119_v29  ;;  %v510_v29 = vrot.slane %v365_v27, %v2742_v50  ;;  %v518_v50 = vrot.slane %v365_v27, %v2756_v11 }
 0x15c   :  { %v1351_v34 = vpop.f32.mrb[10].mxu0 }
 0x15d   :  { %v1352_v35 = vadd.f32 %v1351_v34, %v454_v30  ;;  %v1422_v36 = vpop.f32.mrb[10].mxu1  ;;  %v1353_v37 = vpop.f32.mrb[11].mxu0  ;;  %v506_v30 = vrot.slane %v365_v27, %v2744_v63  ;;  %v526_v63 = vrot.slane %v365_v27, %v2758_v12 }
 0x15e   :  { %v1423_v38 = vadd.f32 %v1422_v36, %v462_v31  ;;  %v1354_v39 = vadd.f32 %v1353_v37, %v458_v32  ;;  %v1424_v40 = vpop.f32.mrb[11].mxu1  ;;  %v514_v31 = vrot.slane %v365_v27, %v2746_v53  ;;  %v522_v53 = vrot.slane %v365_v27, %v2760_v13 }
 0x15f   :  { %v1425_v41 = vadd.f32 %v1424_v40, %v466_v33 }
 0x160   :  { %v2120_v42 = vcombine.low %v1352_v35, %v1354_v39 }
 0x161   :  { %v2121_v43 = vcombine.low %v1423_v38, %v1425_v41 }
 0x162   :  { %v2128_v44 = vrot.slane %v2120_v42, %v2752_v3 }
 0x163   :  { %v2135_v45 = vrot.slane %v2121_v43, %v2752_v3 }
 0x165   :  { %v2136_v46 = vcombine.low %v2128_v44, %v2135_v45  ;;  %v530_v44 = vrot.slane %v365_v27, %v2765_v14 }
 0x167   :  { %2220 = vst [vmem:[%s2851_s3 + $0x28] sm:$0xff] %v2136_v46 }
 0x16c   :  { %v1493_v54 = vpop.f32.mrb[12].mxu0 }
 0x16d   :  { %v1494_v55 = vadd.f32 %v1493_v54, %v470_v47  ;;  %v1564_v56 = vpop.f32.mrb[12].mxu1  ;;  %v1495_v57 = vpop.f32.mrb[13].mxu0 }
 0x16e   :  { %v1565_v58 = vadd.f32 %v1564_v56, %v478_v49  ;;  %v1496_v59 = vadd.f32 %v1495_v57, %v474_v51  ;;  %v1566_v60 = vpop.f32.mrb[13].mxu1 }
 0x16f   :  { %v1567_v61 = vadd.f32 %v1566_v60, %v482_v52 }
 0x170   :  { %v2137_v62 = vcombine.low %v1494_v55, %v1496_v59 }
 0x171   :  { %v2138_v1 = vcombine.low %v1565_v58, %v1567_v61 }
 0x172   :  { %v2145_v2 = vrot.slane %v2137_v62, %v2752_v3 }
 0x173   :  { %v2152_v4 = vrot.slane %v2138_v1, %v2752_v3 }
 0x175   :  { %v2153_v5 = vcombine.low %v2145_v2, %v2152_v4 }
 0x177   :  { %2221 = vst [vmem:[%s2851_s3 + $0x30] sm:$0xff] %v2153_v5 }
 0x17c   :  { %v1635_v10 = vpop.f32.mrb[14].mxu0 }
 0x17d   :  { %v1636_v15 = vadd.f32 %v1635_v10, %v486_v6  ;;  %v1706_v16 = vpop.f32.mrb[14].mxu1  ;;  %v1637_v17 = vpop.f32.mrb[15].mxu0 }
 0x17e   :  { %v1707_v18 = vadd.f32 %v1706_v16, %v494_v7  ;;  %v1638_v19 = vadd.f32 %v1637_v17, %v490_v8  ;;  %v1708_v20 = vpop.f32.mrb[15].mxu1 }
 0x17f   :  { %v1709_v21 = vadd.f32 %v1708_v20, %v498_v9 }
 0x180   :  { %v2154_v22 = vcombine.low %v1636_v15, %v1638_v19 }
 0x181   :  { %v2155_v23 = vcombine.low %v1707_v18, %v1709_v21 }
 0x182   :  { %v2162_v24 = vrot.slane %v2154_v22, %v2752_v3 }
 0x183   :  { %v2169_v25 = vrot.slane %v2155_v23, %v2752_v3 }
 0x185   :  { %v2170_v26 = vcombine.low %v2162_v24, %v2169_v25 }
 0x187   :  { %2222 = vst [vmem:[%s2851_s3 + $0x38] sm:$0xff] %v2170_v26 }
 0x18c   :  { %v1777_v32 = vpop.f32.mrb[16].mxu0 }
 0x18d   :  { %v1778_v33 = vadd.f32 %v1777_v32, %v502_v28  ;;  %v1848_v34 = vpop.f32.mrb[16].mxu1  ;;  %v1779_v35 = vpop.f32.mrb[17].mxu0 }
 0x18e   :  { %v1849_v36 = vadd.f32 %v1848_v34, %v510_v29  ;;  %v1780_v37 = vadd.f32 %v1779_v35, %v506_v30  ;;  %v1850_v38 = vpop.f32.mrb[17].mxu1 }
 0x18f   :  { %v1851_v39 = vadd.f32 %v1850_v38, %v514_v31 }
 0x190   :  { %v2171_v40 = vcombine.low %v1778_v33, %v1780_v37 }
 0x191   :  { %v2172_v41 = vcombine.low %v1849_v36, %v1851_v39 }
 0x192   :  { %v2179_v42 = vrot.slane %v2171_v40, %v2752_v3 }
 0x193   :  { %v2186_v48 = vrot.slane %v2172_v41, %v2752_v3 }
 0x195   :  { %v2187_v43 = vcombine.low %v2179_v42, %v2186_v48 }
 0x197   :  { %2223 = vst [vmem:[%s2851_s3 + $0x40] sm:$0xff] %v2187_v43 }
 0x19c   :  { %v1919_v45 = vpop.f32.mrb[18].mxu0 }
 0x19d   :  { %v1920_v46 = vadd.f32 %v1919_v45, %v518_v50  ;;  %v1990_v0 = vpop.f32.mrb[18].mxu1  ;;  %v1921_v47 = vpop.f32.mrb[19].mxu0 }
 0x19e   :  { %v1991_v49 = vadd.f32 %v1990_v0, %v526_v63  ;;  %v1922_v51 = vadd.f32 %v1921_v47, %v522_v53  ;;  %v1992_v52 = vpop.f32.mrb[19].mxu1 }
 0x19f   :  { %v1993_v54 = vadd.f32 %v1992_v52, %v530_v44 }
 0x1a0   :  { %v2188_v55 = vcombine.low %v1920_v46, %v1922_v51 }
 0x1a1   :  { %v2189_v56 = vcombine.low %v1991_v49, %v1993_v54 }
 0x1a2   :  { %v2196_v57 = vrot.slane %v2188_v55, %v2752_v3 }
 0x1a3   :  { %v2203_v11 = vrot.slane %v2189_v56, %v2752_v3 }
 0x1a5   :  { %v2204_v58 = vcombine.low %v2196_v57, %v2203_v11 }
 0x1a7   :  { %2224 = vst [vmem:[%s2851_s3 + $0x48] sm:$0xff] %v2204_v58 }
 0x1a8   :  { %2229 = vsyncpa [#allocation3], 1 }
 0x1a9   :  { %2230 = vsyncpa [#allocation5], 1 }

// kernel: decoder_forward.6
= control target key start
LH: loop header
LB: loop body
LE: loop exit
PB: predicated region body
PF: predicated region fallthrough
CT: control target
= control target key end

     0   :  { %s1291_s15 = smov 0   ;;  %s1806_s0 = inlined_call_operand.vmem [shape: f32[512,512], index: 0, kind: input, shape index: {}]   ;;  %s1807_s1 = inlined_call_operand.vmem [shape: f32[512,8], index: 1, kind: input, shape index: {}]   ;;  %s1808_s2 = inlined_call_operand.vmem [shape: f32[1,8], index: 2, kind: input, shape index: {}]   ;;  %s1809_s3 = inlined_call_operand.vmem [shape: f32[512,8], index: 3, kind: input, shape index: {}]   ;;  %s1810_s4 = inlined_call_operand.vmem [shape: f32[512,8], index: 4, kind: output, shape index: {}]  }
   0x1 LB: > { %s1072_s16 = sadd.s32 4294967295, %s1263_s15   ;;  %p1076_p0 = scmp.ge.s32.totalorder %s1263_s15, 1  ;;  %s1263_s15 = sphi %s1291_s15, %s14_s15  }
   0x2   : > { %p175_p1 = scmp.lt.s32.totalorder %s1263_s15, 3 }
   0x4   : > { %p176_p2 = pnand %p1076_p0, %p175_p1 }
   0x5   : > { %v354_v0 = vld [vmem:[%s1807_s1] sm:$0xff] (!%p176_p2)  ;;  %v355_v1 = vld [vmem:[%s1807_s1 + $0x8] sm:$0xff] (!%p176_p2)  ;;  %v1265_v3 = vmov (!%p176_p2), 0.0|0.0   ;;  %v356_v6 = vld [vmem:[%s1807_s1 + $0x10] sm:$0xff] (!%p176_p2)  ;;  %s1077_s11 = sshll.u32 (!%p176_p2), %s1072_s16, 5  ;;  %vm971_vm0 = vcmask (!%p176_p2), 64512  }
   0x6   : > { %179 = sbr.rel (%p176_p2) target bundleno = 416 (0x1a0), region = 36  ;;  %v386_v2 = vld [vmem:[%s1807_s1 + $0x100] sm:$0xff] (!%p176_p2)  ;;  %1088 = vmatprep.subr.bf16.mxu1 (!%p176_p2), %v1265_v3  ;;  %v1089_v4 = vpack.c.bf16 (!%p176_p2), %v355_v1, %v354_v0  ;;  %1136 = vmatprep.subr.bf16.mxu0 (!%p176_p2), %v1265_v3  ;;  %v387_v5 = vld [vmem:[%s1807_s1 + $0x108] sm:$0xff] (!%p176_p2)  ;;  %v357_v7 = vld [vmem:[%s1807_s1 + $0x18] sm:$0xff] (!%p176_p2)  ;;  %p208_p3 = scmp.lt.s32.totalorder (!%p176_p2), %s1077_s11, 63 }
   0x7   : > { %v1137_v8 = vpack.c.bf16 (!%p176_p2), %v387_v5, %v386_v2  ;;  %v388_v9 = vld [vmem:[%s1807_s1 + $0x110] sm:$0xff] (!%p176_p2)  ;;  %v389_v10 = vld [vmem:[%s1807_s1 + $0x118] sm:$0xff] (!%p176_p2)  ;;  %v1092_v11 = vpack.c.bf16 (!%p176_p2), %v357_v7, %v356_v6  ;;  %v358_v13 = vld [vmem:[%s1807_s1 + $0x20] sm:$0xff] (!%p176_p2) }
   0x8   : > { %1090 = vmatpush1.bf16.msra.mxu1 (!%p176_p2), %v1089_v4  ;;  %v1140_v12 = vpack.c.bf16 (!%p176_p2), %v389_v10, %v388_v9  ;;  %v359_v14 = vld [vmem:[%s1807_s1 + $0x28] sm:$0xff] (!%p176_p2)  ;;  %v390_v15 = vld [vmem:[%s1807_s1 + $0x120] sm:$0xff] (!%p176_p2)  ;;  %v360_v19 = vld [vmem:[%s1807_s1 + $0x30] sm:$0xff] (!%p176_p2) }
   0x9   : > { %1138 = vmatpush1.bf16.msra.mxu0 (!%p176_p2), %v1137_v8  ;;  %1091 = vmatprep.subr.bf16.mxu1 (!%p176_p2), %v1265_v3  ;;  %v391_v16 = vld [vmem:[%s1807_s1 + $0x128] sm:$0xff] (!%p176_p2)  ;;  %v1095_v17 = vpack.c.bf16 (!%p176_p2), %v359_v14, %v358_v13  ;;  %v361_v20 = vld [vmem:[%s1807_s1 + $0x38] sm:$0xff] (!%p176_p2)  ;;  %v392_v21 = vld [vmem:[%s1807_s1 + $0x130] sm:$0xff] (!%p176_p2) }
   0xa   : > { %1139 = vmatprep.subr.bf16.mxu0 (!%p176_p2), %v1265_v3  ;;  %v1143_v18 = vpack.c.bf16 (!%p176_p2), %v391_v16, %v390_v15  ;;  %v393_v22 = vld [vmem:[%s1807_s1 + $0x138] sm:$0xff] (!%p176_p2)  ;;  %v1098_v23 = vpack.c.bf16 (!%p176_p2), %v361_v20, %v360_v19  ;;  %v362_v25 = vld [vmem:[%s1807_s1 + $0x40] sm:$0xff] (!%p176_p2)  ;;  %v363_v26 = vld [vmem:[%s1807_s1 + $0x48] sm:$0xff] (!%p176_p2) }
   0xb   : > { %v1146_v24 = vpack.c.bf16 (!%p176_p2), %v393_v22, %v392_v21  ;;  %v394_v27 = vld [vmem:[%s1807_s1 + $0x140] sm:$0xff] (!%p176_p2)  ;;  %v395_v28 = vld [vmem:[%s1807_s1 + $0x148] sm:$0xff] (!%p176_p2)  ;;  %v1101_v29 = vpack.c.bf16 (!%p176_p2), %v363_v26, %v362_v25  ;;  %v364_v31 = vld [vmem:[%s1807_s1 + $0x50] sm:$0xff] (!%p176_p2) }
   0xc   : > { %1093 = vmatpush1.bf16.msra.mxu1 (!%p176_p2), %v1092_v11  ;;  %v1149_v30 = vpack.c.bf16 (!%p176_p2), %v395_v28, %v394_v27  ;;  %v365_v32 = vld [vmem:[%s1807_s1 + $0x58] sm:$0xff] (!%p176_p2)  ;;  %v396_v33 = vld [vmem:[%s1807_s1 + $0x150] sm:$0xff] (!%p176_p2)  ;;  %v366_v37 = vld [vmem:[%s1807_s1 + $0x60] sm:$0xff] (!%p176_p2) }
   0xd   : > { %1141 = vmatpush1.bf16.msra.mxu0 %v1140_v12  ;;  %1094 = vmatprep.subr.bf16.mxu1 %v1265_v3  ;;  %s1812_s11 = smov (!%p208_p3, %s1077_s11), 63  ;;  %v397_v34 = vld [vmem:[%s1807_s1 + $0x158] sm:$0xff]  ;;  %v1104_v35 = vpack.c.bf16 %v365_v32, %v364_v31  ;;  %v367_v38 = vld [vmem:[%s1807_s1 + $0x68] sm:$0xff]  ;;  %v398_v39 = vld [vmem:[%s1807_s1 + $0x160] sm:$0xff] }
   0xe   : > { %1142 = vmatprep.subr.bf16.mxu0 %v1265_v3  ;;  %s1087_s7 = sshll.u32 %s1812_s11, 5  ;;  %v1152_v36 = vpack.c.bf16 %v397_v34, %v396_v33  ;;  %v399_v40 = vld [vmem:[%s1807_s1 + $0x168] sm:$0xff]  ;;  %v1107_v43 = vpack.c.bf16 %v367_v38, %v366_v37  ;;  %v368_v45 = vld [vmem:[%s1807_s1 + $0x70] sm:$0xff]  ;;  %v369_v46 = vld [vmem:[%s1807_s1 + $0x78] sm:$0xff]  ;;  %s1081_s8 = sshll.u32 %s1812_s11, 3 }
   0xf   : > { %s1387_s20 = scalar_lea.vmem %s1806_s0, %s1087_s7  ;;  %v1155_v44 = vpack.c.bf16 %v399_v40, %v398_v39  ;;  %v400_v47 = vld [vmem:[%s1807_s1 + $0x170] sm:$0xff]  ;;  %v401_v48 = vld [vmem:[%s1807_s1 + $0x178] sm:$0xff]  ;;  %v1110_v49 = vpack.c.bf16 %v369_v46, %v368_v45  ;;  %v370_v51 = vld [vmem:[%s1807_s1 + $0x80] sm:$0xff]  ;;  %s1669_s12 = scalar_lea.vmem %s1809_s3, %s1081_s8 }
  0x10   : > { %1096 = vmatpush1.bf16.msra.mxu1 %v1095_v17  ;;  %v227_v41 = vld [vmem:[%s1387_s20 + $0x8] sm:$0xff]  ;;  %v229_v42 = vld [vmem:[%s1387_s20 + $0x18] sm:$0xff]  ;;  %v1158_v50 = vpack.c.bf16 %v401_v48, %v400_v47  ;;  %v402_v53 = vld [vmem:[%s1807_s1 + $0x180] sm:$0xff]  ;;  %s1676_s13 = scalar_lea.vmem %s1810_s4, %s1081_s8 }
  0x11   : > { %1144 = vmatpush1.bf16.msra.mxu0 %v1143_v18  ;;  %1097 = vmatprep.subr.bf16.mxu1 %v1265_v3  ;;  %v371_v52 = vld [vmem:[%s1807_s1 + $0x88] sm:$0xff]  ;;  %v372_v57 = vld [vmem:[%s1807_s1 + $0x90] sm:$0xff]  ;;  %v373_v58 = vld [vmem:[%s1807_s1 + $0x98] sm:$0xff] }
  0x12   : > { %1145 = vmatprep.subr.bf16.mxu0 %v1265_v3  ;;  %489 = vmatprep.mubr.f32.mxu1 %v227_v41  ;;  %v403_v54 = vld [vmem:[%s1807_s1 + $0x188] sm:$0xff]  ;;  %v1113_v55 = vpack.c.bf16 %v371_v52, %v370_v51  ;;  %v404_v59 = vld [vmem:[%s1807_s1 + $0x190] sm:$0xff]  ;;  %v405_v60 = vld [vmem:[%s1807_s1 + $0x198] sm:$0xff]  ;;  %v1116_v61 = vpack.c.bf16 %v373_v58, %v372_v57 }
  0x13   : > { %714 = vmatprep.mubr.f32.mxu0 %v229_v42  ;;  %v1161_v56 = vpack.c.bf16 %v403_v54, %v402_v53  ;;  %v1164_v62 = vpack.c.bf16 %v405_v60, %v404_v59  ;;  %v374_v63 = vld [vmem:[%s1807_s1 + $0xa0] sm:$0xff]  ;;  %v375_v0 = vld [vmem:[%s1807_s1 + $0xa8] sm:$0xff]  ;;  %v376_v6 = vld [vmem:[%s1807_s1 + $0xb0] sm:$0xff] }
  0x14   : > { %1099 = vmatpush1.bf16.msra.mxu1 %v1098_v23  ;;  %v406_v1 = vld [vmem:[%s1807_s1 + $0x1a0] sm:$0xff]  ;;  %v407_v2 = vld [vmem:[%s1807_s1 + $0x1a8] sm:$0xff]  ;;  %v1119_v4 = vpack.c.bf16 %v375_v0, %v374_v63  ;;  %v377_v7 = vld [vmem:[%s1807_s1 + $0xb8] sm:$0xff] }
  0x15   : > { %1147 = vmatpush1.bf16.msra.mxu0 %v1146_v24  ;;  %1100 = vmatprep.subr.bf16.mxu1 %v1265_v3  ;;  %v1167_v5 = vpack.c.bf16 %v407_v2, %v406_v1  ;;  %v408_v8 = vld [vmem:[%s1807_s1 + $0x1b0] sm:$0xff]  ;;  %v409_v9 = vld [vmem:[%s1807_s1 + $0x1b8] sm:$0xff]  ;;  %v1122_v10 = vpack.c.bf16 %v377_v7, %v376_v6  ;;  %v378_v12 = vld [vmem:[%s1807_s1 + $0xc0] sm:$0xff] }
  0x16   : > { %1148 = vmatprep.subr.bf16.mxu0 %v1265_v3  ;;  %v1170_v11 = vpack.c.bf16 %v409_v9, %v408_v8  ;;  %v379_v13 = vld [vmem:[%s1807_s1 + $0xc8] sm:$0xff]  ;;  %v410_v14 = vld [vmem:[%s1807_s1 + $0x1c0] sm:$0xff]  ;;  %v380_v18 = vld [vmem:[%s1807_s1 + $0xd0] sm:$0xff] }
  0x17   : > { %v411_v15 = vld [vmem:[%s1807_s1 + $0x1c8] sm:$0xff]  ;;  %v1125_v16 = vpack.c.bf16 %v379_v13, %v378_v12  ;;  %v381_v19 = vld [vmem:[%s1807_s1 + $0xd8] sm:$0xff]  ;;  %v412_v20 = vld [vmem:[%s1807_s1 + $0x1d0] sm:$0xff] }
  0x18   : > { %1102 = vmatpush1.bf16.msra.mxu1 %v1101_v29  ;;  %v1173_v17 = vpack.c.bf16 %v411_v15, %v410_v14  ;;  %v413_v21 = vld [vmem:[%s1807_s1 + $0x1d8] sm:$0xff]  ;;  %v1128_v22 = vpack.c.bf16 %v381_v19, %v380_v18  ;;  %v382_v24 = vld [vmem:[%s1807_s1 + $0xe0] sm:$0xff]  ;;  %v383_v25 = vld [vmem:[%s1807_s1 + $0xe8] sm:$0xff] }
  0x19   : > { %1150 = vmatpush1.bf16.msra.mxu0 %v1149_v30  ;;  %1103 = vmatprep.subr.bf16.mxu1 %v1265_v3  ;;  %v1176_v23 = vpack.c.bf16 %v413_v21, %v412_v20  ;;  %v414_v26 = vld [vmem:[%s1807_s1 + $0x1e0] sm:$0xff]  ;;  %v415_v27 = vld [vmem:[%s1807_s1 + $0x1e8] sm:$0xff]  ;;  %v1131_v28 = vpack.c.bf16 %v383_v25, %v382_v24  ;;  %v384_v30 = vld [vmem:[%s1807_s1 + $0xf0] sm:$0xff] }
  0x1a   : > { %1151 = vmatprep.subr.bf16.mxu0 %v1265_v3  ;;  %v1179_v29 = vpack.c.bf16 %v415_v27, %v414_v26  ;;  %v385_v31 = vld [vmem:[%s1807_s1 + $0xf8] sm:$0xff]  ;;  %v416_v32 = vld [vmem:[%s1807_s1 + $0x1f0] sm:$0xff]  ;;  %v231_v38 = vld [vmem:[%s1387_s20 + $0x28] sm:$0xff] }
  0x1b   : > { %v417_v33 = vld [vmem:[%s1807_s1 + $0x1f8] sm:$0xff]  ;;  %v1134_v34 = vpack.c.bf16 %v385_v31, %v384_v30  ;;  %v228_v37 = vld [vmem:[%s1387_s20 + $0x10] sm:$0xff]  ;;  %v230_v40 = vld [vmem:[%s1387_s20 + $0x20] sm:$0xff] }
  0x1c   : > { %1105 = vmatpush1.bf16.msra.mxu1 %v1104_v35  ;;  %v1182_v35 = vpack.c.bf16 %v417_v33, %v416_v32  ;;  %v233_v39 = vld [vmem:[%s1387_s20 + $0x38] sm:$0xff]  ;;  %v232_v41 = vld [vmem:[%s1387_s20 + $0x30] sm:$0xff]  ;;  %v235_v42 = vld [vmem:[%s1387_s20 + $0x48] sm:$0xff] }
  0x1d   : > { %1153 = vmatpush1.bf16.msra.mxu0 %v1152_v36  ;;  %1106 = vmatprep.subr.bf16.mxu1 %v1265_v3  ;;  %v226_v36 = vld [vmem:[%s1387_s20] sm:$0xff]  ;;  %v239_v45 = vld [vmem:[%s1387_s20 + $0x68] sm:$0xff]  ;;  %v241_v46 = vld [vmem:[%s1387_s20 + $0x78] sm:$0xff] }
  0x1e   : > { %1154 = vmatprep.subr.bf16.mxu0 %v1265_v3  ;;  %v238_v47 = vld [vmem:[%s1387_s20 + $0x60] sm:$0xff]  ;;  %v240_v48 = vld [vmem:[%s1387_s20 + $0x70] sm:$0xff]  ;;  %v247_v53 = vld [vmem:[%s1387_s20 + $0xa8] sm:$0xff] }
  0x1f   : > { %v242_v51 = vld [vmem:[%s1387_s20 + $0x80] sm:$0xff]  ;;  %v244_v52 = vld [vmem:[%s1387_s20 + $0x90] sm:$0xff]  ;;  %v249_v54 = vld [vmem:[%s1387_s20 + $0xb8] sm:$0xff] }
  0x20   : > { %1108 = vmatpush1.bf16.msra.mxu1 %v1107_v43  ;;  %v234_v43 = vld [vmem:[%s1387_s20 + $0x40] sm:$0xff]  ;;  %v251_v57 = vld [vmem:[%s1387_s20 + $0xc8] sm:$0xff]  ;;  %v253_v58 = vld [vmem:[%s1387_s20 + $0xd8] sm:$0xff] }
  0x21   : > { %1156 = vmatpush1.bf16.msra.mxu0 %v1155_v44  ;;  %1109 = vmatprep.subr.bf16.mxu1 %v1265_v3  ;;  %v236_v44 = vld [vmem:[%s1387_s20 + $0x50] sm:$0xff]  ;;  %v250_v59 = vld [vmem:[%s1387_s20 + $0xc0] sm:$0xff]  ;;  %v259_v1 = vld [vmem:[%s1387_s20 + $0x108] sm:$0xff] }
  0x22   : > { %1157 = vmatprep.subr.bf16.mxu0 %v1265_v3  ;;  %v252_v60 = vld [vmem:[%s1387_s20 + $0xd0] sm:$0xff]  ;;  %v254_v63 = vld [vmem:[%s1387_s20 + $0xe0] sm:$0xff]  ;;  %v261_v2 = vld [vmem:[%s1387_s20 + $0x118] sm:$0xff] }
  0x23   : > { %v256_v0 = vld [vmem:[%s1387_s20 + $0xf0] sm:$0xff]  ;;  %v263_v6 = vld [vmem:[%s1387_s20 + $0x128] sm:$0xff]  ;;  %v265_v7 = vld [vmem:[%s1387_s20 + $0x138] sm:$0xff] }
  0x24   : > { %1111 = vmatpush1.bf16.msra.mxu1 %v1110_v49  ;;  %v243_v49 = vld [vmem:[%s1387_s20 + $0x88] sm:$0xff]  ;;  %v262_v8 = vld [vmem:[%s1387_s20 + $0x120] sm:$0xff]  ;;  %v264_v9 = vld [vmem:[%s1387_s20 + $0x130] sm:$0xff] }
  0x25   : > { %1159 = vmatpush1.bf16.msra.mxu0 %v1158_v50  ;;  %1112 = vmatprep.subr.bf16.mxu1 %v1265_v3  ;;  %v245_v50 = vld [vmem:[%s1387_s20 + $0x98] sm:$0xff]  ;;  %v266_v12 = vld [vmem:[%s1387_s20 + $0x140] sm:$0xff]  ;;  %v268_v13 = vld [vmem:[%s1387_s20 + $0x150] sm:$0xff] }
  0x26   : > { %1160 = vmatprep.subr.bf16.mxu0 %v1265_v3  ;;  %v271_v14 = vld [vmem:[%s1387_s20 + $0x168] sm:$0xff]  ;;  %v273_v15 = vld [vmem:[%s1387_s20 + $0x178] sm:$0xff]  ;;  %v274_v20 = vld [vmem:[%s1387_s20 + $0x180] sm:$0xff] }
  0x27   : > { %v275_v18 = vld [vmem:[%s1387_s20 + $0x188] sm:$0xff]  ;;  %v277_v19 = vld [vmem:[%s1387_s20 + $0x198] sm:$0xff]  ;;  %v276_v21 = vld [vmem:[%s1387_s20 + $0x190] sm:$0xff] }
  0x28   : > { %1114 = vmatpush1.bf16.msra.mxu1 %v1113_v55  ;;  %v246_v55 = vld [vmem:[%s1387_s20 + $0xa0] sm:$0xff]  ;;  %v280_v25 = vld [vmem:[%s1387_s20 + $0x1b0] sm:$0xff]  ;;  %v283_v26 = vld [vmem:[%s1387_s20 + $0x1c8] sm:$0xff] }
  0x29   : > { %1162 = vmatpush1.bf16.msra.mxu0 %v1161_v56  ;;  %1115 = vmatprep.subr.bf16.mxu1 %v1265_v3  ;;  %v248_v56 = vld [vmem:[%s1387_s20 + $0xb0] sm:$0xff]  ;;  %v278_v24 = vld [vmem:[%s1387_s20 + $0x1a0] sm:$0xff]  ;;  %v285_v27 = vld [vmem:[%s1387_s20 + $0x1d8] sm:$0xff] }
  0x2a   : > { %1163 = vmatprep.subr.bf16.mxu0 %v1265_v3  ;;  %v287_v30 = vld [vmem:[%s1387_s20 + $0x1e8] sm:$0xff]  ;;  %v289_v31 = vld [vmem:[%s1387_s20 + $0x1f8] sm:$0xff]  ;;  %v286_v32 = vld [vmem:[%s1387_s20 + $0x1e0] sm:$0xff] }
  0x2b   : > { %v288_v33 = vld [vmem:[%s1387_s20 + $0x1f0] sm:$0xff] }
  0x2c   : > { %1117 = vmatpush1.bf16.msra.mxu1 %v1116_v61  ;;  %v255_v61 = vld [vmem:[%s1387_s20 + $0xe8] sm:$0xff] }
  0x2d   : > { %1165 = vmatpush1.bf16.msra.mxu0 %v1164_v62  ;;  %1118 = vmatprep.subr.bf16.mxu1 %v1265_v3  ;;  %v257_v62 = vld [vmem:[%s1387_s20 + $0xf8] sm:$0xff] }
  0x2e   : > { %1166 = vmatprep.subr.bf16.mxu0 %v1265_v3 }
  0x30   : > { %1120 = vmatpush1.bf16.msra.mxu1 %v1119_v4  ;;  %v258_v4 = vld [vmem:[%s1387_s20 + $0x100] sm:$0xff] }
  0x31   : > { %1168 = vmatpush1.bf16.msra.mxu0 %v1167_v5  ;;  %1121 = vmatprep.subr.bf16.mxu1 %v1265_v3  ;;  %v260_v5 = vld [vmem:[%s1387_s20 + $0x110] sm:$0xff] }
  0x32   : > { %1169 = vmatprep.subr.bf16.mxu0 %v1265_v3 }
  0x34   : > { %1123 = vmatpush1.bf16.msra.mxu1 %v1122_v10  ;;  %v267_v10 = vld [vmem:[%s1387_s20 + $0x148] sm:$0xff] }
  0x35   : > { %1171 = vmatpush1.bf16.msra.mxu0 %v1170_v11  ;;  %1124 = vmatprep.subr.bf16.mxu1 %v1265_v3  ;;  %v269_v11 = vld [vmem:[%s1387_s20 + $0x158] sm:$0xff] }
  0x36   : > { %1172 = vmatprep.subr.bf16.mxu0 %v1265_v3 }
  0x38   : > { %1126 = vmatpush1.bf16.msra.mxu1 %v1125_v16  ;;  %v270_v16 = vld [vmem:[%s1387_s20 + $0x160] sm:$0xff] }
  0x39   : > { %1174 = vmatpush1.bf16.msra.mxu0 %v1173_v17  ;;  %1127 = vmatprep.subr.bf16.mxu1 %v1265_v3  ;;  %v272_v17 = vld [vmem:[%s1387_s20 + $0x170] sm:$0xff] }
  0x3a   : > { %1175 = vmatprep.subr.bf16.mxu0 %v1265_v3 }
  0x3c   : > { %1129 = vmatpush1.bf16.msra.mxu1 %v1128_v22  ;;  %v279_v22 = vld [vmem:[%s1387_s20 + $0x1a8] sm:$0xff] }
  0x3d   : > { %1177 = vmatpush1.bf16.msra.mxu0 %v1176_v23  ;;  %1130 = vmatprep.subr.bf16.mxu1 %v1265_v3  ;;  %v281_v23 = vld [vmem:[%s1387_s20 + $0x1b8] sm:$0xff] }
  0x3e   : > { %1178 = vmatprep.subr.bf16.mxu0 %v1265_v3 }
  0x40   : > { %1132 = vmatpush1.bf16.msra.mxu1 %v1131_v28  ;;  %v282_v28 = vld [vmem:[%s1387_s20 + $0x1c0] sm:$0xff] }
  0x41   : > { %1180 = vmatpush1.bf16.msra.mxu0 %v1179_v29  ;;  %1133 = vmatprep.subr.bf16.mxu1 %v1265_v3  ;;  %v284_v29 = vld [vmem:[%s1387_s20 + $0x1d0] sm:$0xff] }
  0x42   : > { %1181 = vmatprep.subr.bf16.mxu0 %v1265_v3  ;;  %v237_v3 = vld [vmem:[%s1387_s20 + $0x58] sm:$0xff] }
  0x44   : > { %1135 = vmatpush1.bf16.msra.mxu1 %v1134_v34  ;;  %v291_v34 = vld [vmem:[%s1387_s20 + $0x208] sm:$0xff] }
  0x45   : > { %1183 = vmatpush1.bf16.msra.mxu0 %v1182_v35  ;;  %v293_v35 = vld [vmem:[%s1387_s20 + $0x218] sm:$0xff] }
  0x47   : > { %490 = vmatmul.mubr.f32.vlgmr.msra.gmra.mrb[0].mxu1 %v226_v36  ;;  %v290_v36 = vld [vmem:[%s1387_s20 + $0x200] sm:$0xff] }
  0x48   : > { %715 = vmatmul.mubr.f32.vlgmr.msra.gmra.mrb[0].mxu0 %v228_v37  ;;  %494 = vmatprep.mubr.f32.mxu1 %v231_v38  ;;  %v292_v37 = vld [vmem:[%s1387_s20 + $0x210] sm:$0xff]  ;;  %v295_v38 = vld [vmem:[%s1387_s20 + $0x228] sm:$0xff] }
  0x49   : > { %719 = vmatprep.mubr.f32.mxu0 %v233_v39  ;;  %v297_v39 = vld [vmem:[%s1387_s20 + $0x238] sm:$0xff] }
  0x4b   : > { %495 = vmatmul.mubr.f32.gmra.mrb[2].mxu1 %v230_v40  ;;  %v294_v40 = vld [vmem:[%s1387_s20 + $0x220] sm:$0xff] }
  0x4c   : > { %720 = vmatmul.mubr.f32.gmra.mrb[2].mxu0 %v232_v41  ;;  %499 = vmatprep.mubr.f32.mxu1 %v235_v42  ;;  %v296_v41 = vld [vmem:[%s1387_s20 + $0x230] sm:$0xff]  ;;  %v299_v42 = vld [vmem:[%s1387_s20 + $0x248] sm:$0xff] }
  0x4d   : > { %724 = vmatprep.mubr.f32.mxu0 %v237_v3  ;;  %v301_v3 = vld [vmem:[%s1387_s20 + $0x258] sm:$0xff] }
  0x4f   : > { %500 = vmatmul.mubr.f32.gmra.mrb[4].mxu1 %v234_v43  ;;  %v298_v43 = vld [vmem:[%s1387_s20 + $0x240] sm:$0xff] }
  0x50   : > { %725 = vmatmul.mubr.f32.gmra.mrb[4].mxu0 %v236_v44  ;;  %504 = vmatprep.mubr.f32.mxu1 %v239_v45  ;;  %v300_v44 = vld [vmem:[%s1387_s20 + $0x250] sm:$0xff]  ;;  %v303_v45 = vld [vmem:[%s1387_s20 + $0x268] sm:$0xff] }
  0x51   : > { %729 = vmatprep.mubr.f32.mxu0 %v241_v46  ;;  %v305_v46 = vld [vmem:[%s1387_s20 + $0x278] sm:$0xff] }
  0x53   : > { %505 = vmatmul.mubr.f32.gmra.mrb[6].mxu1 %v238_v47  ;;  %v302_v47 = vld [vmem:[%s1387_s20 + $0x260] sm:$0xff] }
  0x54   : > { %730 = vmatmul.mubr.f32.gmra.mrb[6].mxu0 %v240_v48  ;;  %509 = vmatprep.mubr.f32.mxu1 %v243_v49  ;;  %v304_v48 = vld [vmem:[%s1387_s20 + $0x270] sm:$0xff]  ;;  %v307_v49 = vld [vmem:[%s1387_s20 + $0x288] sm:$0xff] }
  0x55   : > { %734 = vmatprep.mubr.f32.mxu0 %v245_v50  ;;  %v309_v50 = vld [vmem:[%s1387_s20 + $0x298] sm:$0xff] }
  0x57   : > { %510 = vmatmul.mubr.f32.gmra.mrb[8].mxu1 %v242_v51  ;;  %v306_v51 = vld [vmem:[%s1387_s20 + $0x280] sm:$0xff] }
  0x58   : > { %735 = vmatmul.mubr.f32.gmra.mrb[8].mxu0 %v244_v52  ;;  %514 = vmatprep.mubr.f32.mxu1 %v247_v53  ;;  %v308_v52 = vld [vmem:[%s1387_s20 + $0x290] sm:$0xff]  ;;  %v311_v53 = vld [vmem:[%s1387_s20 + $0x2a8] sm:$0xff] }
  0x59   : > { %739 = vmatprep.mubr.f32.mxu0 %v249_v54  ;;  %v313_v54 = vld [vmem:[%s1387_s20 + $0x2b8] sm:$0xff] }
  0x5b   : > { %515 = vmatmul.mubr.f32.gmra.mrb[10].mxu1 %v246_v55  ;;  %v310_v55 = vld [vmem:[%s1387_s20 + $0x2a0] sm:$0xff] }
  0x5c   : > { %740 = vmatmul.mubr.f32.gmra.mrb[10].mxu0 %v248_v56  ;;  %519 = vmatprep.mubr.f32.mxu1 %v251_v57  ;;  %v312_v56 = vld [vmem:[%s1387_s20 + $0x2b0] sm:$0xff]  ;;  %v315_v57 = vld [vmem:[%s1387_s20 + $0x2c8] sm:$0xff] }
  0x5d   : > { %744 = vmatprep.mubr.f32.mxu0 %v253_v58  ;;  %v317_v58 = vld [vmem:[%s1387_s20 + $0x2d8] sm:$0xff] }
  0x5f   : > { %520 = vmatmul.mubr.f32.gmra.mrb[12].mxu1 %v250_v59  ;;  %v314_v59 = vld [vmem:[%s1387_s20 + $0x2c0] sm:$0xff] }
  0x60   : > { %745 = vmatmul.mubr.f32.gmra.mrb[12].mxu0 %v252_v60  ;;  %524 = vmatprep.mubr.f32.mxu1 %v255_v61  ;;  %v316_v60 = vld [vmem:[%s1387_s20 + $0x2d0] sm:$0xff]  ;;  %v319_v61 = vld [vmem:[%s1387_s20 + $0x2e8] sm:$0xff] }
  0x61   : > { %749 = vmatprep.mubr.f32.mxu0 %v257_v62  ;;  %v321_v62 = vld [vmem:[%s1387_s20 + $0x2f8] sm:$0xff] }
  0x63   : > { %525 = vmatmul.mubr.f32.gmra.mrb[14].mxu1 %v254_v63  ;;  %v318_v63 = vld [vmem:[%s1387_s20 + $0x2e0] sm:$0xff] }
  0x64   : > { %750 = vmatmul.mubr.f32.gmra.mrb[14].mxu0 %v256_v0  ;;  %529 = vmatprep.mubr.f32.mxu1 %v259_v1  ;;  %v320_v0 = vld [vmem:[%s1387_s20 + $0x2f0] sm:$0xff]  ;;  %v323_v1 = vld [vmem:[%s1387_s20 + $0x308] sm:$0xff] }
  0x65   : > { %754 = vmatprep.mubr.f32.mxu0 %v261_v2  ;;  %v325_v2 = vld [vmem:[%s1387_s20 + $0x318] sm:$0xff] }
  0x67   : > { %530 = vmatmul.mubr.f32.gmra.mrb[16].mxu1 %v258_v4  ;;  %v322_v4 = vld [vmem:[%s1387_s20 + $0x300] sm:$0xff] }
  0x68   : > { %755 = vmatmul.mubr.f32.gmra.mrb[16].mxu0 %v260_v5  ;;  %534 = vmatprep.mubr.f32.mxu1 %v263_v6  ;;  %v324_v5 = vld [vmem:[%s1387_s20 + $0x310] sm:$0xff]  ;;  %v327_v6 = vld [vmem:[%s1387_s20 + $0x328] sm:$0xff] }
  0x69   : > { %759 = vmatprep.mubr.f32.mxu0 %v265_v7  ;;  %v329_v7 = vld [vmem:[%s1387_s20 + $0x338] sm:$0xff] }
  0x6b   : > { %535 = vmatmul.mubr.f32.gmra.mrb[18].mxu1 %v262_v8  ;;  %v326_v8 = vld [vmem:[%s1387_s20 + $0x320] sm:$0xff] }
  0x6c   : > { %760 = vmatmul.mubr.f32.gmra.mrb[18].mxu0 %v264_v9  ;;  %539 = vmatprep.mubr.f32.mxu1 %v267_v10  ;;  %v328_v9 = vld [vmem:[%s1387_s20 + $0x330] sm:$0xff]  ;;  %v331_v10 = vld [vmem:[%s1387_s20 + $0x348] sm:$0xff] }
  0x6d   : > { %764 = vmatprep.mubr.f32.mxu0 %v269_v11  ;;  %v333_v11 = vld [vmem:[%s1387_s20 + $0x358] sm:$0xff] }
  0x6f   : > { %540 = vmatmul.mubr.f32.gmra.mrb[20].mxu1 %v266_v12  ;;  %v330_v12 = vld [vmem:[%s1387_s20 + $0x340] sm:$0xff] }
  0x70   : > { %765 = vmatmul.mubr.f32.gmra.mrb[20].mxu0 %v268_v13  ;;  %544 = vmatprep.mubr.f32.mxu1 %v271_v14  ;;  %v332_v13 = vld [vmem:[%s1387_s20 + $0x350] sm:$0xff]  ;;  %v335_v14 = vld [vmem:[%s1387_s20 + $0x368] sm:$0xff] }
  0x71   : > { %769 = vmatprep.mubr.f32.mxu0 %v273_v15  ;;  %v337_v15 = vld [vmem:[%s1387_s20 + $0x378] sm:$0xff] }
  0x73   : > { %545 = vmatmul.mubr.f32.gmra.mrb[22].mxu1 %v270_v16  ;;  %v334_v16 = vld [vmem:[%s1387_s20 + $0x360] sm:$0xff] }
  0x74   : > { %770 = vmatmul.mubr.f32.gmra.mrb[22].mxu0 %v272_v17  ;;  %549 = vmatprep.mubr.f32.mxu1 %v275_v18  ;;  %v336_v17 = vld [vmem:[%s1387_s20 + $0x370] sm:$0xff]  ;;  %v339_v18 = vld [vmem:[%s1387_s20 + $0x388] sm:$0xff] }
  0x75   : > { %774 = vmatprep.mubr.f32.mxu0 %v277_v19  ;;  %v341_v19 = vld [vmem:[%s1387_s20 + $0x398] sm:$0xff] }
  0x77   : > { %550 = vmatmul.mubr.f32.gmra.mrb[24].mxu1 %v274_v20  ;;  %v338_v20 = vld [vmem:[%s1387_s20 + $0x380] sm:$0xff] }
  0x78   : > { %775 = vmatmul.mubr.f32.gmra.mrb[24].mxu0 %v276_v21  ;;  %554 = vmatprep.mubr.f32.mxu1 %v279_v22  ;;  %v340_v21 = vld [vmem:[%s1387_s20 + $0x390] sm:$0xff]  ;;  %v343_v22 = vld [vmem:[%s1387_s20 + $0x3a8] sm:$0xff] }
  0x79   : > { %779 = vmatprep.mubr.f32.mxu0 %v281_v23  ;;  %v345_v23 = vld [vmem:[%s1387_s20 + $0x3b8] sm:$0xff] }
  0x7b   : > { %555 = vmatmul.mubr.f32.gmra.mrb[26].mxu1 %v278_v24  ;;  %v342_v24 = vld [vmem:[%s1387_s20 + $0x3a0] sm:$0xff] }
  0x7c   : > { %780 = vmatmul.mubr.f32.gmra.mrb[26].mxu0 %v280_v25  ;;  %559 = vmatprep.mubr.f32.mxu1 %v283_v26  ;;  %v344_v25 = vld [vmem:[%s1387_s20 + $0x3b0] sm:$0xff]  ;;  %v347_v26 = vld [vmem:[%s1387_s20 + $0x3c8] sm:$0xff] }
  0x7d   : > { %784 = vmatprep.mubr.f32.mxu0 %v285_v27  ;;  %v349_v27 = vld [vmem:[%s1387_s20 + $0x3d8] sm:$0xff] }
  0x7f   : > { %560 = vmatmul.mubr.f32.gmra.mrb[28].mxu1 %v282_v28  ;;  %v346_v28 = vld [vmem:[%s1387_s20 + $0x3c0] sm:$0xff] }
  0x80   : > { %785 = vmatmul.mubr.f32.gmra.mrb[28].mxu0 %v284_v29  ;;  %564 = vmatprep.mubr.f32.mxu1 %v287_v30  ;;  %v348_v29 = vld [vmem:[%s1387_s20 + $0x3d0] sm:$0xff]  ;;  %v351_v30 = vld [vmem:[%s1387_s20 + $0x3e8] sm:$0xff] }
  0x81   : > { %789 = vmatprep.mubr.f32.mxu0 %v289_v31  ;;  %v353_v31 = vld [vmem:[%s1387_s20 + $0x3f8] sm:$0xff] }
  0x83   : > { %565 = vmatmul.mubr.f32.gmra.mrb[30].mxu1 %v286_v32  ;;  %v350_v32 = vld [vmem:[%s1387_s20 + $0x3e0] sm:$0xff] }
  0x84   : > { %790 = vmatmul.mubr.f32.gmra.mrb[30].mxu0 %v288_v33  ;;  %569 = vmatprep.mubr.f32.mxu1 %v291_v34  ;;  %v352_v33 = vld [vmem:[%s1387_s20 + $0x3f0] sm:$0xff]  ;;  %v1662_v34 = vld [vmem:[%s1808_s2] ss:$0 sm:$0xff] }
  0x85   : > { %794 = vmatprep.mubr.f32.mxu0 %v293_v35 }
  0x87   : > { %570 = vmatmul.mubr.f32.gmra.mrb[32].mxu1 %v290_v36 }
  0x88   : > { %795 = vmatmul.mubr.f32.gmra.mrb[32].mxu0 %v292_v37  ;;  %574 = vmatprep.mubr.f32.mxu1 %v295_v38 }
  0x89   : > { %799 = vmatprep.mubr.f32.mxu0 %v297_v39 }
  0x8b   : > { %575 = vmatmul.mubr.f32.gmra.mrb[34].mxu1 %v294_v40 }
  0x8c   : > { %800 = vmatmul.mubr.f32.gmra.mrb[34].mxu0 %v296_v41  ;;  %579 = vmatprep.mubr.f32.mxu1 %v299_v42  ;;  %v907_v41 = vld [vmem:[%s1669_s12] sm:$0xff] }
  0x8d   : > { %804 = vmatprep.mubr.f32.mxu0 %v301_v3 }
  0x8f   : > { %580 = vmatmul.mubr.f32.gmra.mrb[36].mxu1 %v298_v43 }
  0x90   : > { %805 = vmatmul.mubr.f32.gmra.mrb[36].mxu0 %v300_v44  ;;  %584 = vmatprep.mubr.f32.mxu1 %v303_v45 }
  0x91   : > { %809 = vmatprep.mubr.f32.mxu0 %v305_v46 }
  0x93   : > { %585 = vmatmul.mubr.f32.gmra.mrb[38].mxu1 %v302_v47 }
  0x94   : > { %810 = vmatmul.mubr.f32.gmra.mrb[38].mxu0 %v304_v48  ;;  %589 = vmatprep.mubr.f32.mxu1 %v307_v49  ;;  %v908_v49 = vld [vmem:[%s1669_s12 + $0x8] sm:$0xff] }
  0x95   : > { %814 = vmatprep.mubr.f32.mxu0 %v309_v50 }
  0x97   : > { %590 = vmatmul.mubr.f32.gmra.mrb[40].mxu1 %v306_v51 }
  0x98   : > { %815 = vmatmul.mubr.f32.gmra.mrb[40].mxu0 %v308_v52  ;;  %594 = vmatprep.mubr.f32.mxu1 %v311_v53 }
  0x99   : > { %819 = vmatprep.mubr.f32.mxu0 %v313_v54 }
  0x9b   : > { %595 = vmatmul.mubr.f32.gmra.mrb[42].mxu1 %v310_v55 }
  0x9c   : > { %820 = vmatmul.mubr.f32.gmra.mrb[42].mxu0 %v312_v56  ;;  %599 = vmatprep.mubr.f32.mxu1 %v315_v57 }
  0x9d   : > { %824 = vmatprep.mubr.f32.mxu0 %v317_v58  ;;  %v909_v58 = vld [vmem:[%s1669_s12 + $0x10] sm:$0xff] }
  0x9f   : > { %600 = vmatmul.mubr.f32.gmra.mrb[44].mxu1 %v314_v59 }
  0xa0   : > { %825 = vmatmul.mubr.f32.gmra.mrb[44].mxu0 %v316_v60  ;;  %604 = vmatprep.mubr.f32.mxu1 %v319_v61 }
  0xa1   : > { %829 = vmatprep.mubr.f32.mxu0 %v321_v62 }
  0xa3   : > { %605 = vmatmul.mubr.f32.gmra.mrb[46].mxu1 %v318_v63 }
  0xa4   : > { %830 = vmatmul.mubr.f32.gmra.mrb[46].mxu0 %v320_v0  ;;  %609 = vmatprep.mubr.f32.mxu1 %v323_v1 }
  0xa5   : > { %834 = vmatprep.mubr.f32.mxu0 %v325_v2 }
  0xa7   : > { %610 = vmatmul.mubr.f32.gmra.mrb[48].mxu1 %v322_v4  ;;  %v910_v4 = vld [vmem:[%s1669_s12 + $0x18] sm:$0xff] }
  0xa8   : > { %835 = vmatmul.mubr.f32.gmra.mrb[48].mxu0 %v324_v5  ;;  %614 = vmatprep.mubr.f32.mxu1 %v327_v6 }
  0xa9   : > { %839 = vmatprep.mubr.f32.mxu0 %v329_v7 }
  0xab   : > { %615 = vmatmul.mubr.f32.gmra.mrb[50].mxu1 %v326_v8 }
  0xac   : > { %840 = vmatmul.mubr.f32.gmra.mrb[50].mxu0 %v328_v9  ;;  %619 = vmatprep.mubr.f32.mxu1 %v331_v10 }
  0xad   : > { %844 = vmatprep.mubr.f32.mxu0 %v333_v11 }
  0xaf   : > { %620 = vmatmul.mubr.f32.gmra.mrb[52].mxu1 %v330_v12 }
  0xb0   : > { %845 = vmatmul.mubr.f32.gmra.mrb[52].mxu0 %v332_v13  ;;  %624 = vmatprep.mubr.f32.mxu1 %v335_v14  ;;  %v911_v13 = vld [vmem:[%s1669_s12 + $0x20] sm:$0xff] }
  0xb1   : > { %849 = vmatprep.mubr.f32.mxu0 %v337_v15 }
  0xb3   : > { %625 = vmatmul.mubr.f32.gmra.mrb[54].mxu1 %v334_v16 }
  0xb4   : > { %850 = vmatmul.mubr.f32.gmra.mrb[54].mxu0 %v336_v17  ;;  %629 = vmatprep.mubr.f32.mxu1 %v339_v18 }
  0xb5   : > { %854 = vmatprep.mubr.f32.mxu0 %v341_v19 }
  0xb7   : > { %630 = vmatmul.mubr.f32.gmra.mrb[56].mxu1 %v338_v20 }
  0xb8   : > { %855 = vmatmul.mubr.f32.gmra.mrb[56].mxu0 %v340_v21  ;;  %634 = vmatprep.mubr.f32.mxu1 %v343_v22  ;;  %v912_v22 = vld [vmem:[%s1669_s12 + $0x28] sm:$0xff] }
  0xb9   : > { %859 = vmatprep.mubr.f32.mxu0 %v345_v23 }
  0xbb   : > { %635 = vmatmul.mubr.f32.gmra.mrb[58].mxu1 %v342_v24 }
  0xbc   : > { %860 = vmatmul.mubr.f32.gmra.mrb[58].mxu0 %v344_v25  ;;  %639 = vmatprep.mubr.f32.mxu1 %v347_v26 }
  0xbd   : > { %864 = vmatprep.mubr.f32.mxu0 %v349_v27 }
  0xbf   : > { %640 = vmatmul.mubr.f32.gmra.mrb[60].mxu1 %v346_v28 }
  0xc0   : > { %865 = vmatmul.mubr.f32.gmra.mrb[60].mxu0 %v348_v29  ;;  %644 = vmatprep.mubr.f32.mxu1 %v351_v30 }
  0xc1   : > { %869 = vmatprep.mubr.f32.mxu0 %v353_v31  ;;  %v913_v31 = vld [vmem:[%s1669_s12 + $0x30] sm:$0xff] }
  0xc3   : > { %645 = vmatmul.mubr.f32.gmra.mrb[62].mxu1 %v350_v32 }
  0xc4   : > { %870 = vmatmul.mubr.f32.gmra.mrb[62].mxu0 %v352_v33 }
 0x11a   : > { %v491_v35 = vpop.f32.mrb[0].mxu1 }
 0x11b   : > { %v492_v36 = vadd.f32 %v1662_v34, %v491_v35  ;;  %v493_v37 = vpop.f32.mrb[1].mxu1  ;;  %v716_v38 = vpop.f32.mrb[0].mxu0 }
 0x11c   : > { %v718_v39 = vpop.f32.mrb[1].mxu0 }
 0x11d   : > { %v717_v40 = vadd.f32 %v716_v38, %v492_v36 }
 0x11e   : > { %v496_v42 = vpop.f32.mrb[2].mxu1 }
 0x11f   : > { %v875_v3 = vmax.f32 %v717_v40, 0.0  ;;  %v497_v43 = vadd.f32 %v1662_v34, %v496_v42  ;;  %v498_v44 = vpop.f32.mrb[3].mxu1  ;;  %v721_v45 = vpop.f32.mrb[2].mxu0 }
 0x120   : > { %v723_v46 = vpop.f32.mrb[3].mxu0 }
 0x121   : > { %v939_v47 = vadd.f32 %v907_v41, %v875_v3  ;;  %v722_v48 = vadd.f32 %v721_v45, %v497_v43  ;;  %v914_v41 = vld [vmem:[%s1669_s12 + $0x38] sm:$0xff] }
 0x122   : > { %v501_v50 = vpop.f32.mrb[4].mxu1 }
 0x123   : > { %972 = vst.msk [vmem:[%s1676_s13] sm:$0xff] %vm971_vm0, %v939_v47  ;;  %v876_v51 = vmax.f32 %v722_v48, 0.0  ;;  %v502_v52 = vadd.f32 %v1662_v34, %v501_v50  ;;  %v503_v53 = vpop.f32.mrb[5].mxu1  ;;  %v726_v54 = vpop.f32.mrb[4].mxu0 }
 0x124   : > { %v728_v55 = vpop.f32.mrb[5].mxu0 }
 0x125   : > { %v940_v56 = vadd.f32 %v908_v49, %v876_v51  ;;  %v727_v57 = vadd.f32 %v726_v54, %v502_v52  ;;  %v915_v49 = vld [vmem:[%s1669_s12 + $0x40] sm:$0xff] }
 0x126   : > { %v506_v59 = vpop.f32.mrb[6].mxu1 }
 0x127   : > { %973 = vst.msk [vmem:[%s1676_s13 + $0x8] sm:$0xff] %vm971_vm0, %v940_v56  ;;  %v877_v60 = vmax.f32 %v727_v57, 0.0  ;;  %v507_v61 = vadd.f32 %v1662_v34, %v506_v59  ;;  %v508_v62 = vpop.f32.mrb[7].mxu1  ;;  %v731_v63 = vpop.f32.mrb[6].mxu0 }
 0x128   : > { %v733_v0 = vpop.f32.mrb[7].mxu0 }
 0x129   : > { %v941_v1 = vadd.f32 %v909_v58, %v877_v60  ;;  %v732_v2 = vadd.f32 %v731_v63, %v507_v61  ;;  %v916_v58 = vld [vmem:[%s1669_s12 + $0x48] sm:$0xff] }
 0x12a   : > { %v511_v5 = vpop.f32.mrb[8].mxu1 }
 0x12b   : > { %974 = vst.msk [vmem:[%s1676_s13 + $0x10] sm:$0xff] %vm971_vm0, %v941_v1  ;;  %v878_v6 = vmax.f32 %v732_v2, 0.0  ;;  %v512_v7 = vadd.f32 %v1662_v34, %v511_v5  ;;  %v513_v8 = vpop.f32.mrb[9].mxu1  ;;  %v736_v9 = vpop.f32.mrb[8].mxu0 }
 0x12c   : > { %v738_v10 = vpop.f32.mrb[9].mxu0 }
 0x12d   : > { %v942_v11 = vadd.f32 %v910_v4, %v878_v6  ;;  %v737_v12 = vadd.f32 %v736_v9, %v512_v7  ;;  %v917_v4 = vld [vmem:[%s1669_s12 + $0x50] sm:$0xff] }
 0x12e   : > { %v516_v14 = vpop.f32.mrb[10].mxu1 }
 0x12f   : > { %975 = vst.msk [vmem:[%s1676_s13 + $0x18] sm:$0xff] %vm971_vm0, %v942_v11  ;;  %v879_v15 = vmax.f32 %v737_v12, 0.0  ;;  %v517_v16 = vadd.f32 %v1662_v34, %v516_v14  ;;  %v518_v17 = vpop.f32.mrb[11].mxu1  ;;  %v741_v18 = vpop.f32.mrb[10].mxu0 }
 0x130   : > { %v743_v19 = vpop.f32.mrb[11].mxu0 }
 0x131   : > { %v943_v20 = vadd.f32 %v911_v13, %v879_v15  ;;  %v742_v21 = vadd.f32 %v741_v18, %v517_v16  ;;  %v918_v13 = vld [vmem:[%s1669_s12 + $0x58] sm:$0xff] }
 0x132   : > { %v521_v23 = vpop.f32.mrb[12].mxu1 }
 0x133   : > { %976 = vst.msk [vmem:[%s1676_s13 + $0x20] sm:$0xff] %vm971_vm0, %v943_v20  ;;  %v880_v24 = vmax.f32 %v742_v21, 0.0  ;;  %v522_v25 = vadd.f32 %v1662_v34, %v521_v23  ;;  %v523_v26 = vpop.f32.mrb[13].mxu1  ;;  %v746_v27 = vpop.f32.mrb[12].mxu0 }
 0x134   : > { %v748_v28 = vpop.f32.mrb[13].mxu0 }
 0x135   : > { %v944_v29 = vadd.f32 %v912_v22, %v880_v24  ;;  %v747_v30 = vadd.f32 %v746_v27, %v522_v25  ;;  %v919_v22 = vld [vmem:[%s1669_s12 + $0x60] sm:$0xff] }
 0x136   : > { %v526_v32 = vpop.f32.mrb[14].mxu1 }
 0x137   : > { %977 = vst.msk [vmem:[%s1676_s13 + $0x28] sm:$0xff] %vm971_vm0, %v944_v29  ;;  %v881_v33 = vmax.f32 %v747_v30, 0.0  ;;  %v527_v35 = vadd.f32 %v1662_v34, %v526_v32  ;;  %v528_v36 = vpop.f32.mrb[15].mxu1  ;;  %v751_v37 = vpop.f32.mrb[14].mxu0 }
 0x138   : > { %v753_v38 = vpop.f32.mrb[15].mxu0 }
 0x139   : > { %v945_v39 = vadd.f32 %v913_v31, %v881_v33  ;;  %v752_v40 = vadd.f32 %v751_v37, %v527_v35  ;;  %v920_v31 = vld [vmem:[%s1669_s12 + $0x68] sm:$0xff] }
 0x13a   : > { %v531_v42 = vpop.f32.mrb[16].mxu1 }
 0x13b   : > { %978 = vst.msk [vmem:[%s1676_s13 + $0x30] sm:$0xff] %vm971_vm0, %v945_v39  ;;  %v882_v3 = vmax.f32 %v752_v40, 0.0  ;;  %v532_v43 = vadd.f32 %v1662_v34, %v531_v42  ;;  %v533_v44 = vpop.f32.mrb[17].mxu1  ;;  %v756_v45 = vpop.f32.mrb[16].mxu0 }
 0x13c   : > { %v758_v46 = vpop.f32.mrb[17].mxu0 }
 0x13d   : > { %v946_v47 = vadd.f32 %v914_v41, %v882_v3  ;;  %v757_v48 = vadd.f32 %v756_v45, %v532_v43  ;;  %v921_v41 = vld [vmem:[%s1669_s12 + $0x70] sm:$0xff] }
 0x13e   : > { %v536_v50 = vpop.f32.mrb[18].mxu1 }
 0x13f   : > { %979 = vst.msk [vmem:[%s1676_s13 + $0x38] sm:$0xff] %vm971_vm0, %v946_v47  ;;  %v883_v51 = vmax.f32 %v757_v48, 0.0  ;;  %v537_v52 = vadd.f32 %v1662_v34, %v536_v50  ;;  %v538_v53 = vpop.f32.mrb[19].mxu1  ;;  %v761_v54 = vpop.f32.mrb[18].mxu0 }
 0x140   : > { %v763_v55 = vpop.f32.mrb[19].mxu0 }
 0x141   : > { %v947_v56 = vadd.f32 %v915_v49, %v883_v51  ;;  %v762_v57 = vadd.f32 %v761_v54, %v537_v52  ;;  %v922_v49 = vld [vmem:[%s1669_s12 + $0x78] sm:$0xff] }
 0x142   : > { %v541_v59 = vpop.f32.mrb[20].mxu1 }
 0x143   : > { %980 = vst.msk [vmem:[%s1676_s13 + $0x40] sm:$0xff] %vm971_vm0, %v947_v56  ;;  %v884_v60 = vmax.f32 %v762_v57, 0.0  ;;  %v542_v61 = vadd.f32 %v1662_v34, %v541_v59  ;;  %v543_v62 = vpop.f32.mrb[21].mxu1  ;;  %v766_v63 = vpop.f32.mrb[20].mxu0 }
 0x144   : > { %v768_v0 = vpop.f32.mrb[21].mxu0 }
 0x145   : > { %v948_v1 = vadd.f32 %v916_v58, %v884_v60  ;;  %v767_v2 = vadd.f32 %v766_v63, %v542_v61  ;;  %v923_v58 = vld [vmem:[%s1669_s12 + $0x80] sm:$0xff] }
 0x146   : > { %v546_v5 = vpop.f32.mrb[22].mxu1 }
 0x147   : > { %981 = vst.msk [vmem:[%s1676_s13 + $0x48] sm:$0xff] %vm971_vm0, %v948_v1  ;;  %v885_v6 = vmax.f32 %v767_v2, 0.0  ;;  %v547_v7 = vadd.f32 %v1662_v34, %v546_v5  ;;  %v548_v8 = vpop.f32.mrb[23].mxu1  ;;  %v771_v9 = vpop.f32.mrb[22].mxu0 }
 0x148   : > { %v773_v10 = vpop.f32.mrb[23].mxu0 }
 0x149   : > { %v949_v11 = vadd.f32 %v917_v4, %v885_v6  ;;  %v772_v12 = vadd.f32 %v771_v9, %v547_v7  ;;  %v924_v4 = vld [vmem:[%s1669_s12 + $0x88] sm:$0xff] }
 0x14a   : > { %v551_v14 = vpop.f32.mrb[24].mxu1 }
 0x14b   : > { %982 = vst.msk [vmem:[%s1676_s13 + $0x50] sm:$0xff] %vm971_vm0, %v949_v11  ;;  %v886_v15 = vmax.f32 %v772_v12, 0.0  ;;  %v552_v16 = vadd.f32 %v1662_v34, %v551_v14  ;;  %v553_v17 = vpop.f32.mrb[25].mxu1  ;;  %v776_v18 = vpop.f32.mrb[24].mxu0 }
 0x14c   : > { %v778_v19 = vpop.f32.mrb[25].mxu0 }
 0x14d   : > { %v950_v20 = vadd.f32 %v918_v13, %v886_v15  ;;  %v777_v21 = vadd.f32 %v776_v18, %v552_v16  ;;  %v925_v13 = vld [vmem:[%s1669_s12 + $0x90] sm:$0xff] }
 0x14e   : > { %v556_v23 = vpop.f32.mrb[26].mxu1 }
 0x14f   : > { %983 = vst.msk [vmem:[%s1676_s13 + $0x58] sm:$0xff] %vm971_vm0, %v950_v20  ;;  %v887_v24 = vmax.f32 %v777_v21, 0.0  ;;  %v557_v25 = vadd.f32 %v1662_v34, %v556_v23  ;;  %v558_v26 = vpop.f32.mrb[27].mxu1  ;;  %v781_v27 = vpop.f32.mrb[26].mxu0 }
 0x150   : > { %v783_v28 = vpop.f32.mrb[27].mxu0 }
 0x151   : > { %v951_v29 = vadd.f32 %v919_v22, %v887_v24  ;;  %v782_v30 = vadd.f32 %v781_v27, %v557_v25  ;;  %v926_v22 = vld [vmem:[%s1669_s12 + $0x98] sm:$0xff] }
 0x152   : > { %v561_v32 = vpop.f32.mrb[28].mxu1 }
 0x153   : > { %984 = vst.msk [vmem:[%s1676_s13 + $0x60] sm:$0xff] %vm971_vm0, %v951_v29  ;;  %v888_v33 = vmax.f32 %v782_v30, 0.0  ;;  %v562_v35 = vadd.f32 %v1662_v34, %v561_v32  ;;  %v563_v36 = vpop.f32.mrb[29].mxu1  ;;  %v786_v37 = vpop.f32.mrb[28].mxu0 }
 0x154   : > { %v788_v38 = vpop.f32.mrb[29].mxu0 }
 0x155   : > { %v952_v39 = vadd.f32 %v920_v31, %v888_v33  ;;  %v787_v40 = vadd.f32 %v786_v37, %v562_v35  ;;  %v927_v31 = vld [vmem:[%s1669_s12 + $0xa0] sm:$0xff] }
 0x156   : > { %v566_v42 = vpop.f32.mrb[30].mxu1 }
 0x157   : > { %985 = vst.msk [vmem:[%s1676_s13 + $0x68] sm:$0xff] %vm971_vm0, %v952_v39  ;;  %v889_v3 = vmax.f32 %v787_v40, 0.0  ;;  %v567_v43 = vadd.f32 %v1662_v34, %v566_v42  ;;  %v568_v44 = vpop.f32.mrb[31].mxu1  ;;  %v791_v45 = vpop.f32.mrb[30].mxu0 }
 0x158   : > { %v793_v46 = vpop.f32.mrb[31].mxu0 }
 0x159   : > { %v953_v47 = vadd.f32 %v921_v41, %v889_v3  ;;  %v792_v48 = vadd.f32 %v791_v45, %v567_v43  ;;  %v928_v41 = vld [vmem:[%s1669_s12 + $0xa8] sm:$0xff] }
 0x15a   : > { %v571_v50 = vpop.f32.mrb[32].mxu1 }
 0x15b   : > { %986 = vst.msk [vmem:[%s1676_s13 + $0x70] sm:$0xff] %vm971_vm0, %v953_v47  ;;  %v890_v51 = vmax.f32 %v792_v48, 0.0  ;;  %v572_v52 = vadd.f32 %v1662_v34, %v571_v50  ;;  %v573_v53 = vpop.f32.mrb[33].mxu1  ;;  %v796_v54 = vpop.f32.mrb[32].mxu0 }
 0x15c   : > { %v798_v55 = vpop.f32.mrb[33].mxu0 }
 0x15d   : > { %v954_v56 = vadd.f32 %v922_v49, %v890_v51  ;;  %v797_v57 = vadd.f32 %v796_v54, %v572_v52  ;;  %v929_v49 = vld [vmem:[%s1669_s12 + $0xb0] sm:$0xff] }
 0x15e   : > { %v576_v59 = vpop.f32.mrb[34].mxu1 }
 0x15f   : > { %987 = vst.msk [vmem:[%s1676_s13 + $0x78] sm:$0xff] %vm971_vm0, %v954_v56  ;;  %v891_v60 = vmax.f32 %v797_v57, 0.0  ;;  %v577_v61 = vadd.f32 %v1662_v34, %v576_v59  ;;  %v578_v62 = vpop.f32.mrb[35].mxu1  ;;  %v801_v63 = vpop.f32.mrb[34].mxu0 }
 0x160   : > { %v803_v0 = vpop.f32.mrb[35].mxu0 }
 0x161   : > { %v955_v1 = vadd.f32 %v923_v58, %v891_v60  ;;  %v802_v2 = vadd.f32 %v801_v63, %v577_v61  ;;  %v930_v58 = vld [vmem:[%s1669_s12 + $0xb8] sm:$0xff] }
 0x162   : > { %v581_v5 = vpop.f32.mrb[36].mxu1 }
 0x163   : > { %988 = vst.msk [vmem:[%s1676_s13 + $0x80] sm:$0xff] %vm971_vm0, %v955_v1  ;;  %v892_v6 = vmax.f32 %v802_v2, 0.0  ;;  %v582_v7 = vadd.f32 %v1662_v34, %v581_v5  ;;  %v583_v8 = vpop.f32.mrb[37].mxu1  ;;  %v806_v9 = vpop.f32.mrb[36].mxu0 }
 0x164   : > { %v808_v10 = vpop.f32.mrb[37].mxu0 }
 0x165   : > { %v956_v11 = vadd.f32 %v924_v4, %v892_v6  ;;  %v807_v12 = vadd.f32 %v806_v9, %v582_v7  ;;  %v931_v4 = vld [vmem:[%s1669_s12 + $0xc0] sm:$0xff] }
 0x166   : > { %v586_v14 = vpop.f32.mrb[38].mxu1 }
 0x167   : > { %989 = vst.msk [vmem:[%s1676_s13 + $0x88] sm:$0xff] %vm971_vm0, %v956_v11  ;;  %v893_v15 = vmax.f32 %v807_v12, 0.0  ;;  %v587_v16 = vadd.f32 %v1662_v34, %v586_v14  ;;  %v588_v17 = vpop.f32.mrb[39].mxu1  ;;  %v811_v18 = vpop.f32.mrb[38].mxu0 }
 0x168   : > { %v813_v19 = vpop.f32.mrb[39].mxu0 }
 0x169   : > { %v957_v20 = vadd.f32 %v925_v13, %v893_v15  ;;  %v812_v21 = vadd.f32 %v811_v18, %v587_v16  ;;  %v932_v13 = vld [vmem:[%s1669_s12 + $0xc8] sm:$0xff] }
 0x16a   : > { %v591_v23 = vpop.f32.mrb[40].mxu1 }
 0x16b   : > { %990 = vst.msk [vmem:[%s1676_s13 + $0x90] sm:$0xff] %vm971_vm0, %v957_v20  ;;  %v894_v24 = vmax.f32 %v812_v21, 0.0  ;;  %v592_v25 = vadd.f32 %v1662_v34, %v591_v23  ;;  %v593_v26 = vpop.f32.mrb[41].mxu1  ;;  %v816_v27 = vpop.f32.mrb[40].mxu0 }
 0x16c   : > { %v818_v28 = vpop.f32.mrb[41].mxu0 }
 0x16d   : > { %v958_v29 = vadd.f32 %v926_v22, %v894_v24  ;;  %v817_v30 = vadd.f32 %v816_v27, %v592_v25  ;;  %v933_v22 = vld [vmem:[%s1669_s12 + $0xd0] sm:$0xff] }
 0x16e   : > { %v596_v32 = vpop.f32.mrb[42].mxu1 }
 0x16f   : > { %991 = vst.msk [vmem:[%s1676_s13 + $0x98] sm:$0xff] %vm971_vm0, %v958_v29  ;;  %v895_v33 = vmax.f32 %v817_v30, 0.0  ;;  %v597_v35 = vadd.f32 %v1662_v34, %v596_v32  ;;  %v598_v36 = vpop.f32.mrb[43].mxu1  ;;  %v821_v37 = vpop.f32.mrb[42].mxu0 }
 0x170   : > { %v823_v38 = vpop.f32.mrb[43].mxu0 }
 0x171   : > { %v959_v39 = vadd.f32 %v927_v31, %v895_v33  ;;  %v822_v40 = vadd.f32 %v821_v37, %v597_v35  ;;  %v934_v31 = vld [vmem:[%s1669_s12 + $0xd8] sm:$0xff] }
 0x172   : > { %v601_v42 = vpop.f32.mrb[44].mxu1 }
 0x173   : > { %992 = vst.msk [vmem:[%s1676_s13 + $0xa0] sm:$0xff] %vm971_vm0, %v959_v39  ;;  %v896_v3 = vmax.f32 %v822_v40, 0.0  ;;  %v602_v43 = vadd.f32 %v1662_v34, %v601_v42  ;;  %v603_v44 = vpop.f32.mrb[45].mxu1  ;;  %v826_v45 = vpop.f32.mrb[44].mxu0 }
 0x174   : > { %v828_v46 = vpop.f32.mrb[45].mxu0 }
 0x175   : > { %v960_v47 = vadd.f32 %v928_v41, %v896_v3  ;;  %v827_v48 = vadd.f32 %v826_v45, %v602_v43  ;;  %v935_v41 = vld [vmem:[%s1669_s12 + $0xe0] sm:$0xff] }
 0x176   : > { %v606_v50 = vpop.f32.mrb[46].mxu1 }
 0x177   : > { %993 = vst.msk [vmem:[%s1676_s13 + $0xa8] sm:$0xff] %vm971_vm0, %v960_v47  ;;  %v897_v51 = vmax.f32 %v827_v48, 0.0  ;;  %v607_v52 = vadd.f32 %v1662_v34, %v606_v50  ;;  %v608_v53 = vpop.f32.mrb[47].mxu1  ;;  %v831_v54 = vpop.f32.mrb[46].mxu0 }
 0x178   : > { %v833_v55 = vpop.f32.mrb[47].mxu0 }
 0x179   : > { %v961_v56 = vadd.f32 %v929_v49, %v897_v51  ;;  %v832_v57 = vadd.f32 %v831_v54, %v607_v52  ;;  %v936_v49 = vld [vmem:[%s1669_s12 + $0xe8] sm:$0xff] }
 0x17a   : > { %v611_v59 = vpop.f32.mrb[48].mxu1 }
 0x17b   : > { %994 = vst.msk [vmem:[%s1676_s13 + $0xb0] sm:$0xff] %vm971_vm0, %v961_v56  ;;  %v898_v60 = vmax.f32 %v832_v57, 0.0  ;;  %v612_v61 = vadd.f32 %v1662_v34, %v611_v59  ;;  %v613_v62 = vpop.f32.mrb[49].mxu1  ;;  %v836_v63 = vpop.f32.mrb[48].mxu0 }
 0x17c   : > { %v838_v0 = vpop.f32.mrb[49].mxu0 }
 0x17d   : > { %v962_v1 = vadd.f32 %v930_v58, %v898_v60  ;;  %v837_v2 = vadd.f32 %v836_v63, %v612_v61  ;;  %v937_v58 = vld [vmem:[%s1669_s12 + $0xf0] sm:$0xff] }
 0x17e   : > { %v616_v5 = vpop.f32.mrb[50].mxu1 }
 0x17f   : > { %995 = vst.msk [vmem:[%s1676_s13 + $0xb8] sm:$0xff] %vm971_vm0, %v962_v1  ;;  %v899_v6 = vmax.f32 %v837_v2, 0.0  ;;  %v617_v7 = vadd.f32 %v1662_v34, %v616_v5  ;;  %v618_v8 = vpop.f32.mrb[51].mxu1  ;;  %v841_v9 = vpop.f32.mrb[50].mxu0 }
 0x180   : > { %v843_v10 = vpop.f32.mrb[51].mxu0 }
 0x181   : > { %v963_v11 = vadd.f32 %v931_v4, %v899_v6  ;;  %v842_v12 = vadd.f32 %v841_v9, %v617_v7  ;;  %v938_v4 = vld [vmem:[%s1669_s12 + $0xf8] sm:$0xff] }
 0x182   : > { %v621_v14 = vpop.f32.mrb[52].mxu1 }
 0x183   : > { %996 = vst.msk [vmem:[%s1676_s13 + $0xc0] sm:$0xff] %vm971_vm0, %v963_v11  ;;  %v900_v15 = vmax.f32 %v842_v12, 0.0  ;;  %v622_v16 = vadd.f32 %v1662_v34, %v621_v14  ;;  %v623_v17 = vpop.f32.mrb[53].mxu1  ;;  %v846_v18 = vpop.f32.mrb[52].mxu0 }
 0x184   : > { %v848_v19 = vpop.f32.mrb[53].mxu0 }
 0x185   : > { %v964_v20 = vadd.f32 %v932_v13, %v900_v15  ;;  %v847_v21 = vadd.f32 %v846_v18, %v622_v16 }
 0x186   : > { %v626_v23 = vpop.f32.mrb[54].mxu1 }
 0x187   : > { %997 = vst.msk [vmem:[%s1676_s13 + $0xc8] sm:$0xff] %vm971_vm0, %v964_v20  ;;  %v901_v24 = vmax.f32 %v847_v21, 0.0  ;;  %v627_v25 = vadd.f32 %v1662_v34, %v626_v23  ;;  %v628_v26 = vpop.f32.mrb[55].mxu1  ;;  %v851_v27 = vpop.f32.mrb[54].mxu0 }
 0x188   : > { %v853_v28 = vpop.f32.mrb[55].mxu0 }
 0x189   : > { %v965_v29 = vadd.f32 %v933_v22, %v901_v24  ;;  %v852_v30 = vadd.f32 %v851_v27, %v627_v25 }
 0x18a   : > { %v631_v32 = vpop.f32.mrb[56].mxu1 }
 0x18b   : > { %998 = vst.msk [vmem:[%s1676_s13 + $0xd0] sm:$0xff] %vm971_vm0, %v965_v29  ;;  %v902_v33 = vmax.f32 %v852_v30, 0.0  ;;  %v632_v35 = vadd.f32 %v1662_v34, %v631_v32  ;;  %v633_v36 = vpop.f32.mrb[57].mxu1  ;;  %v856_v37 = vpop.f32.mrb[56].mxu0 }
 0x18c   : > { %v858_v38 = vpop.f32.mrb[57].mxu0 }
 0x18d   : > { %v966_v39 = vadd.f32 %v934_v31, %v902_v33  ;;  %v857_v40 = vadd.f32 %v856_v37, %v632_v35 }
 0x18e   : > { %v636_v42 = vpop.f32.mrb[58].mxu1 }
 0x18f   : > { %999 = vst.msk [vmem:[%s1676_s13 + $0xd8] sm:$0xff] %vm971_vm0, %v966_v39  ;;  %v903_v3 = vmax.f32 %v857_v40, 0.0  ;;  %v637_v43 = vadd.f32 %v1662_v34, %v636_v42  ;;  %v638_v44 = vpop.f32.mrb[59].mxu1  ;;  %v861_v45 = vpop.f32.mrb[58].mxu0 }
 0x190   : > { %v863_v46 = vpop.f32.mrb[59].mxu0 }
 0x191   : > { %v967_v47 = vadd.f32 %v935_v41, %v903_v3  ;;  %v862_v48 = vadd.f32 %v861_v45, %v637_v43 }
 0x192   : > { %v641_v50 = vpop.f32.mrb[60].mxu1 }
 0x193   : > { %1000 = vst.msk [vmem:[%s1676_s13 + $0xe0] sm:$0xff] %vm971_vm0, %v967_v47  ;;  %v904_v51 = vmax.f32 %v862_v48, 0.0  ;;  %v642_v52 = vadd.f32 %v1662_v34, %v641_v50  ;;  %v643_v53 = vpop.f32.mrb[61].mxu1  ;;  %v866_v54 = vpop.f32.mrb[60].mxu0 }
 0x194   : > { %v868_v55 = vpop.f32.mrb[61].mxu0 }
 0x195   : > { %v968_v56 = vadd.f32 %v936_v49, %v904_v51  ;;  %v867_v57 = vadd.f32 %v866_v54, %v642_v52 }
 0x196   : > { %v646_v59 = vpop.f32.mrb[62].mxu1 }
 0x197   : > { %1001 = vst.msk [vmem:[%s1676_s13 + $0xe8] sm:$0xff] %vm971_vm0, %v968_v56  ;;  %v905_v60 = vmax.f32 %v867_v57, 0.0  ;;  %v647_v61 = vadd.f32 %v1662_v34, %v646_v59  ;;  %v648_v62 = vpop.f32.mrb[63].mxu1  ;;  %v871_v63 = vpop.f32.mrb[62].mxu0 }
 0x198   : > { %v873_v0 = vpop.f32.mrb[63].mxu0 }
 0x199   : > { %v969_v1 = vadd.f32 %v937_v58, %v905_v60  ;;  %v872_v2 = vadd.f32 %v871_v63, %v647_v61 }
 0x19b   : > { %1002 = vst.msk [vmem:[%s1676_s13 + $0xf0] sm:$0xff] %vm971_vm0, %v969_v1  ;;  %v906_v5 = vmax.f32 %v872_v2, 0.0 }
 0x19d   : > { %v970_v6 = vadd.f32 %v938_v4, %v906_v5 }
 0x19f   : > { %1003 = vst.msk [vmem:[%s1676_s13 + $0xf8] sm:$0xff] %vm971_vm0, %v970_v6 }
 0x1a0 PF: > { %s14_s15 = sadd.s32 1, %s1263_s15  }
 0x1a1   : > { %p11_p4 = scmp.ge.s32.totalorder %s14_s15, 4  }
 0x1a3   :  { %13 = sbr.rel (!%p11_p4) target bundleno = 1 (0x1), region = 69 }

// kernel: decoder_forward.7
= control target key start
LH: loop header
LB: loop body
LE: loop exit
PB: predicated region body
PF: predicated region fallthrough
CT: control target
= control target key end

     0   :  { %s2064_s12 = smov 0   ;;  %s2662_s0 = inlined_call_operand.vmem [shape: f32[2048,128], index: 0, kind: input, shape index: {}]   ;;  %s2663_s1 = inlined_call_operand.vmem [shape: f32[128,3], index: 1, kind: input, shape index: {}]   ;;  %s2664_s2 = inlined_call_operand.vmem [shape: f32[1,3], index: 2, kind: input, shape index: {}]   ;;  %s2665_s3 = inlined_call_operand.vmem [shape: f32[2048,3], index: 3, kind: output, shape index: {}]  }
   0x1 LB: > { %s1343_s13 = sadd.s32 4294967295, %s2042_s12   ;;  %p1347_p0 = scmp.ge.s32.totalorder %s2042_s12, 1  ;;  %s2042_s12 = sphi %s2064_s12, %s13_s12  }
   0x2   : > { %p138_p1 = scmp.lt.s32.totalorder %s2042_s12, 3 }
   0x4   : > { %p139_p2 = pnand %p1347_p0, %p138_p1 }
   0x5   : > { %v302_v0 = vld [vmem:[%s2663_s1] sm:$0xff] (!%p139_p2)  ;;  %v303_v1 = vld [vmem:[%s2663_s1 + $0x8] sm:$0xff] (!%p139_p2)  ;;  %v304_v2 = vld [vmem:[%s2663_s1 + $0x10] sm:$0xff] (!%p139_p2)  ;;  %s1348_s20 = sshll.u32 (!%p139_p2), %s1343_s13, 7  ;;  %vm1158_vm0 = vcmask (!%p139_p2), 23552  }
   0x6   : > { %142 = sbr.rel (%p139_p2) target bundleno = 394 (0x18a), region = 32  ;;  %v1723_v3 = vpack.c.bf16 (!%p139_p2), %v303_v1, %v302_v0  ;;  %v305_v4 = vld [vmem:[%s2663_s1 + $0x18] sm:$0xff] (!%p139_p2)  ;;  %p163_p3 = scmp.lt.s32.totalorder (!%p139_p2), %s1348_s20, 255  ;;  %v306_v6 = vld [vmem:[%s2663_s1 + $0x20] sm:$0xff] (!%p139_p2)  ;;  %v307_v7 = vld [vmem:[%s2663_s1 + $0x28] sm:$0xff] (!%p139_p2) }
   0x7   : > { %v1727_v5 = vpack.c.bf16 (!%p139_p2), %v305_v4, %v304_v2  ;;  %v1731_v8 = vpack.c.bf16 (!%p139_p2), %v307_v7, %v306_v6  ;;  %v308_v9 = vld [vmem:[%s2663_s1 + $0x30] sm:$0xff] (!%p139_p2)  ;;  %v309_v10 = vld [vmem:[%s2663_s1 + $0x38] sm:$0xff] (!%p139_p2)  ;;  %v310_v14 = vld [vmem:[%s2663_s1 + $0x40] sm:$0xff] (!%p139_p2) }
   0x8   : > { %1724 = vmatprep.subr.bf16.mxu0 (!%p139_p2), %v1723_v3  ;;  %1755 = vmatprep.subr.bf16.mxu1 (!%p139_p2), %v1723_v3  ;;  %v1735_v13 = vpack.c.bf16 (!%p139_p2), %v309_v10, %v308_v9  ;;  %v311_v15 = vld [vmem:[%s2663_s1 + $0x48] sm:$0xff] (!%p139_p2)  ;;  %v312_v17 = vld [vmem:[%s2663_s1 + $0x50] sm:$0xff] (!%p139_p2)  ;;  %v313_v18 = vld [vmem:[%s2663_s1 + $0x58] sm:$0xff] (!%p139_p2) }
   0x9   : > { %1726 = vmatpush3.bf16.msra.mxu0 (!%p139_p2), %v1723_v3  ;;  %1763 = vmatpush3.bf16.msra.mxu1 (!%p139_p2), %v1723_v3  ;;  %v1739_v16 = vpack.c.bf16 (!%p139_p2), %v311_v15, %v310_v14  ;;  %v1743_v19 = vpack.c.bf16 (!%p139_p2), %v313_v18, %v312_v17  ;;  %v314_v20 = vld [vmem:[%s2663_s1 + $0x60] sm:$0xff] (!%p139_p2)  ;;  %v315_v21 = vld [vmem:[%s2663_s1 + $0x68] sm:$0xff] (!%p139_p2)  ;;  %v316_v23 = vld [vmem:[%s2663_s1 + $0x70] sm:$0xff] (!%p139_p2) }
   0xa   : > { %1728 = vmatprep.subr.bf16.mxu0 (!%p139_p2), %v1727_v5  ;;  %1756 = vmatprep.subr.bf16.mxu1 (!%p139_p2), %v1727_v5  ;;  %v1747_v22 = vpack.c.bf16 (!%p139_p2), %v315_v21, %v314_v20  ;;  %v317_v24 = vld [vmem:[%s2663_s1 + $0x78] sm:$0xff] (!%p139_p2) }
   0xb   : > { %v1751_v25 = vpack.c.bf16 (!%p139_p2), %v317_v24, %v316_v23 }
   0xd   : > { %s2667_s20 = smov (!%p163_p3, %s1348_s20), 255  ;;  %1730 = vmatpush3.bf16.msra.mxu0 %v1727_v5  ;;  %1764 = vmatpush3.bf16.msra.mxu1 %v1727_v5 }
   0xe   : > { %s1349_s27 = sshll.u32 %s2667_s20, 3  ;;  %1732 = vmatprep.subr.bf16.mxu0 %v1731_v8  ;;  %1757 = vmatprep.subr.bf16.mxu1 %v1731_v8 }
   0xf   : > { %s2104_s7 = scalar_lea.vmem %s2662_s0, %s1349_s27  ;;  %s2280_s4 = scalar_lea.vmem %s2665_s3, %s1349_s27 }
  0x10   : > { %v174_v11 = vld [vmem:[%s2104_s7] sm:$0xff]  ;;  %v175_v26 = vld [vmem:[%s2104_s7 + $0x8] sm:$0xff]  ;;  %v176_v28 = vld [vmem:[%s2104_s7 + $0x10] sm:$0xff] }
  0x11   : > { %v238_v12 = vld [vmem:[%s2104_s7 + $0x200] sm:$0xff]  ;;  %1531 = vmatprep.mubr.f32.mxu0 %v174_v11  ;;  %1734 = vmatpush3.bf16.msra.mxu0 %v1731_v8  ;;  %v239_v27 = vld [vmem:[%s2104_s7 + $0x208] sm:$0xff]  ;;  %v240_v29 = vld [vmem:[%s2104_s7 + $0x210] sm:$0xff] }
  0x12   : > { %1627 = vmatprep.mubr.f32.mxu1 %v238_v12  ;;  %1765 = vmatpush3.bf16.msra.mxu1 %v1731_v8  ;;  %v177_v30 = vld [vmem:[%s2104_s7 + $0x18] sm:$0xff]  ;;  %v178_v32 = vld [vmem:[%s2104_s7 + $0x20] sm:$0xff]  ;;  %v179_v34 = vld [vmem:[%s2104_s7 + $0x28] sm:$0xff] }
  0x13   : > { %1736 = vmatprep.subr.bf16.mxu0 %v1735_v13  ;;  %1758 = vmatprep.subr.bf16.mxu1 %v1735_v13  ;;  %v241_v31 = vld [vmem:[%s2104_s7 + $0x218] sm:$0xff]  ;;  %v242_v33 = vld [vmem:[%s2104_s7 + $0x220] sm:$0xff]  ;;  %v243_v35 = vld [vmem:[%s2104_s7 + $0x228] sm:$0xff] }
  0x14   : > { %v180_v36 = vld [vmem:[%s2104_s7 + $0x30] sm:$0xff]  ;;  %v181_v38 = vld [vmem:[%s2104_s7 + $0x38] sm:$0xff]  ;;  %v182_v40 = vld [vmem:[%s2104_s7 + $0x40] sm:$0xff] }
  0x15   : > { %1738 = vmatpush3.bf16.msra.mxu0 %v1735_v13  ;;  %v244_v37 = vld [vmem:[%s2104_s7 + $0x230] sm:$0xff]  ;;  %v245_v39 = vld [vmem:[%s2104_s7 + $0x238] sm:$0xff]  ;;  %v246_v41 = vld [vmem:[%s2104_s7 + $0x240] sm:$0xff] }
  0x16   : > { %1766 = vmatpush3.bf16.msra.mxu1 %v1735_v13  ;;  %1740 = vmatprep.subr.bf16.mxu0 %v1739_v16  ;;  %v183_v42 = vld [vmem:[%s2104_s7 + $0x48] sm:$0xff]  ;;  %v184_v44 = vld [vmem:[%s2104_s7 + $0x50] sm:$0xff]  ;;  %v185_v46 = vld [vmem:[%s2104_s7 + $0x58] sm:$0xff] }
  0x17   : > { %1759 = vmatprep.subr.bf16.mxu1 %v1739_v16  ;;  %v247_v43 = vld [vmem:[%s2104_s7 + $0x248] sm:$0xff]  ;;  %v248_v45 = vld [vmem:[%s2104_s7 + $0x250] sm:$0xff]  ;;  %v249_v47 = vld [vmem:[%s2104_s7 + $0x258] sm:$0xff] }
  0x18   : > { %v186_v48 = vld [vmem:[%s2104_s7 + $0x60] sm:$0xff]  ;;  %v187_v50 = vld [vmem:[%s2104_s7 + $0x68] sm:$0xff]  ;;  %v188_v52 = vld [vmem:[%s2104_s7 + $0x70] sm:$0xff] }
  0x19   : > { %1742 = vmatpush3.bf16.msra.mxu0 %v1739_v16  ;;  %v250_v49 = vld [vmem:[%s2104_s7 + $0x260] sm:$0xff]  ;;  %v251_v51 = vld [vmem:[%s2104_s7 + $0x268] sm:$0xff]  ;;  %v252_v53 = vld [vmem:[%s2104_s7 + $0x270] sm:$0xff] }
  0x1a   : > { %1767 = vmatpush3.bf16.msra.mxu1 %v1739_v16  ;;  %1744 = vmatprep.subr.bf16.mxu0 %v1743_v19  ;;  %v189_v54 = vld [vmem:[%s2104_s7 + $0x78] sm:$0xff]  ;;  %v190_v56 = vld [vmem:[%s2104_s7 + $0x80] sm:$0xff]  ;;  %v191_v58 = vld [vmem:[%s2104_s7 + $0x88] sm:$0xff] }
  0x1b   : > { %1760 = vmatprep.subr.bf16.mxu1 %v1743_v19  ;;  %v253_v55 = vld [vmem:[%s2104_s7 + $0x278] sm:$0xff]  ;;  %v254_v57 = vld [vmem:[%s2104_s7 + $0x280] sm:$0xff]  ;;  %v255_v59 = vld [vmem:[%s2104_s7 + $0x288] sm:$0xff] }
  0x1c   : > { %v192_v60 = vld [vmem:[%s2104_s7 + $0x90] sm:$0xff]  ;;  %v193_v62 = vld [vmem:[%s2104_s7 + $0x98] sm:$0xff]  ;;  %v194_v0 = vld [vmem:[%s2104_s7 + $0xa0] sm:$0xff] }
  0x1d   : > { %1746 = vmatpush3.bf16.msra.mxu0 %v1743_v19  ;;  %v256_v61 = vld [vmem:[%s2104_s7 + $0x290] sm:$0xff]  ;;  %v257_v63 = vld [vmem:[%s2104_s7 + $0x298] sm:$0xff]  ;;  %v258_v1 = vld [vmem:[%s2104_s7 + $0x2a0] sm:$0xff] }
  0x1e   : > { %1768 = vmatpush3.bf16.msra.mxu1 %v1743_v19  ;;  %1748 = vmatprep.subr.bf16.mxu0 %v1747_v22  ;;  %v195_v2 = vld [vmem:[%s2104_s7 + $0xa8] sm:$0xff]  ;;  %v196_v4 = vld [vmem:[%s2104_s7 + $0xb0] sm:$0xff]  ;;  %v197_v6 = vld [vmem:[%s2104_s7 + $0xb8] sm:$0xff] }
  0x1f   : > { %1761 = vmatprep.subr.bf16.mxu1 %v1747_v22  ;;  %v259_v3 = vld [vmem:[%s2104_s7 + $0x2a8] sm:$0xff]  ;;  %v260_v5 = vld [vmem:[%s2104_s7 + $0x2b0] sm:$0xff]  ;;  %v261_v7 = vld [vmem:[%s2104_s7 + $0x2b8] sm:$0xff] }
  0x20   : > { %v198_v8 = vld [vmem:[%s2104_s7 + $0xc0] sm:$0xff]  ;;  %v199_v10 = vld [vmem:[%s2104_s7 + $0xc8] sm:$0xff]  ;;  %v200_v12 = vld [vmem:[%s2104_s7 + $0xd0] sm:$0xff] }
  0x21   : > { %1750 = vmatpush3.bf16.msra.mxu0 %v1747_v22  ;;  %v262_v9 = vld [vmem:[%s2104_s7 + $0x2c0] sm:$0xff]  ;;  %v263_v11 = vld [vmem:[%s2104_s7 + $0x2c8] sm:$0xff]  ;;  %v264_v13 = vld [vmem:[%s2104_s7 + $0x2d0] sm:$0xff] }
  0x22   : > { %1769 = vmatpush3.bf16.msra.mxu1 %v1747_v22  ;;  %1752 = vmatprep.subr.bf16.mxu0 %v1751_v25  ;;  %v201_v14 = vld [vmem:[%s2104_s7 + $0xd8] sm:$0xff]  ;;  %v202_v16 = vld [vmem:[%s2104_s7 + $0xe0] sm:$0xff]  ;;  %v203_v18 = vld [vmem:[%s2104_s7 + $0xe8] sm:$0xff] }
  0x23   : > { %1762 = vmatprep.subr.bf16.mxu1 %v1751_v25  ;;  %v265_v15 = vld [vmem:[%s2104_s7 + $0x2d8] sm:$0xff]  ;;  %v266_v17 = vld [vmem:[%s2104_s7 + $0x2e0] sm:$0xff]  ;;  %v267_v19 = vld [vmem:[%s2104_s7 + $0x2e8] sm:$0xff] }
  0x24   : > { %v204_v20 = vld [vmem:[%s2104_s7 + $0xf0] sm:$0xff]  ;;  %v205_v22 = vld [vmem:[%s2104_s7 + $0xf8] sm:$0xff]  ;;  %v206_v24 = vld [vmem:[%s2104_s7 + $0x100] sm:$0xff] }
  0x25   : > { %1754 = vmatpush3.bf16.msra.mxu0 %v1751_v25  ;;  %v268_v21 = vld [vmem:[%s2104_s7 + $0x2f0] sm:$0xff]  ;;  %v269_v23 = vld [vmem:[%s2104_s7 + $0x2f8] sm:$0xff] }
  0x26   : > { %1770 = vmatpush3.bf16.msra.mxu1 %v1751_v25  ;;  %v270_v25 = vld [vmem:[%s2104_s7 + $0x300] sm:$0xff] }
  0x28   : > { %1532 = vmatmul.mubr.f32.vlgmr.msra.gmra.mrb[0].mxu0 %v175_v26  ;;  %v207_v26 = vld [vmem:[%s2104_s7 + $0x108] sm:$0xff] }
  0x29   : > { %1628 = vmatmul.mubr.f32.vlgmr.msra.gmra.mrb[0].mxu1 %v239_v27  ;;  %1534 = vmatprep.mubr.f32.mxu0 %v176_v28  ;;  %v271_v27 = vld [vmem:[%s2104_s7 + $0x308] sm:$0xff]  ;;  %v208_v28 = vld [vmem:[%s2104_s7 + $0x110] sm:$0xff] }
  0x2a   : > { %1630 = vmatprep.mubr.f32.mxu1 %v240_v29  ;;  %v272_v29 = vld [vmem:[%s2104_s7 + $0x310] sm:$0xff] }
  0x2c   : > { %1535 = vmatmul.mubr.f32.gmra.mrb[2].mxu0 %v177_v30  ;;  %v209_v30 = vld [vmem:[%s2104_s7 + $0x118] sm:$0xff] }
  0x2d   : > { %1631 = vmatmul.mubr.f32.gmra.mrb[2].mxu1 %v241_v31  ;;  %1537 = vmatprep.mubr.f32.mxu0 %v178_v32  ;;  %v273_v31 = vld [vmem:[%s2104_s7 + $0x318] sm:$0xff]  ;;  %v210_v32 = vld [vmem:[%s2104_s7 + $0x120] sm:$0xff] }
  0x2e   : > { %1633 = vmatprep.mubr.f32.mxu1 %v242_v33  ;;  %v274_v33 = vld [vmem:[%s2104_s7 + $0x320] sm:$0xff] }
  0x30   : > { %1538 = vmatmul.mubr.f32.gmra.mrb[4].mxu0 %v179_v34  ;;  %v211_v34 = vld [vmem:[%s2104_s7 + $0x128] sm:$0xff] }
  0x31   : > { %1634 = vmatmul.mubr.f32.gmra.mrb[4].mxu1 %v243_v35  ;;  %1540 = vmatprep.mubr.f32.mxu0 %v180_v36  ;;  %v275_v35 = vld [vmem:[%s2104_s7 + $0x328] sm:$0xff]  ;;  %v212_v36 = vld [vmem:[%s2104_s7 + $0x130] sm:$0xff] }
  0x32   : > { %1636 = vmatprep.mubr.f32.mxu1 %v244_v37  ;;  %v276_v37 = vld [vmem:[%s2104_s7 + $0x330] sm:$0xff] }
  0x34   : > { %1541 = vmatmul.mubr.f32.gmra.mrb[6].mxu0 %v181_v38  ;;  %v213_v38 = vld [vmem:[%s2104_s7 + $0x138] sm:$0xff] }
  0x35   : > { %1637 = vmatmul.mubr.f32.gmra.mrb[6].mxu1 %v245_v39  ;;  %1543 = vmatprep.mubr.f32.mxu0 %v182_v40  ;;  %v277_v39 = vld [vmem:[%s2104_s7 + $0x338] sm:$0xff]  ;;  %v214_v40 = vld [vmem:[%s2104_s7 + $0x140] sm:$0xff] }
  0x36   : > { %1639 = vmatprep.mubr.f32.mxu1 %v246_v41  ;;  %v278_v41 = vld [vmem:[%s2104_s7 + $0x340] sm:$0xff] }
  0x38   : > { %1544 = vmatmul.mubr.f32.gmra.mrb[8].mxu0 %v183_v42  ;;  %v215_v42 = vld [vmem:[%s2104_s7 + $0x148] sm:$0xff] }
  0x39   : > { %1640 = vmatmul.mubr.f32.gmra.mrb[8].mxu1 %v247_v43  ;;  %1546 = vmatprep.mubr.f32.mxu0 %v184_v44  ;;  %v279_v43 = vld [vmem:[%s2104_s7 + $0x348] sm:$0xff]  ;;  %v216_v44 = vld [vmem:[%s2104_s7 + $0x150] sm:$0xff] }
  0x3a   : > { %1642 = vmatprep.mubr.f32.mxu1 %v248_v45  ;;  %v280_v45 = vld [vmem:[%s2104_s7 + $0x350] sm:$0xff] }
  0x3c   : > { %1547 = vmatmul.mubr.f32.gmra.mrb[10].mxu0 %v185_v46  ;;  %v217_v46 = vld [vmem:[%s2104_s7 + $0x158] sm:$0xff] }
  0x3d   : > { %1643 = vmatmul.mubr.f32.gmra.mrb[10].mxu1 %v249_v47  ;;  %1549 = vmatprep.mubr.f32.mxu0 %v186_v48  ;;  %v281_v47 = vld [vmem:[%s2104_s7 + $0x358] sm:$0xff]  ;;  %v218_v48 = vld [vmem:[%s2104_s7 + $0x160] sm:$0xff] }
  0x3e   : > { %1645 = vmatprep.mubr.f32.mxu1 %v250_v49  ;;  %v282_v49 = vld [vmem:[%s2104_s7 + $0x360] sm:$0xff] }
  0x40   : > { %1550 = vmatmul.mubr.f32.gmra.mrb[12].mxu0 %v187_v50  ;;  %v219_v50 = vld [vmem:[%s2104_s7 + $0x168] sm:$0xff] }
  0x41   : > { %1646 = vmatmul.mubr.f32.gmra.mrb[12].mxu1 %v251_v51  ;;  %1552 = vmatprep.mubr.f32.mxu0 %v188_v52  ;;  %v283_v51 = vld [vmem:[%s2104_s7 + $0x368] sm:$0xff]  ;;  %v220_v52 = vld [vmem:[%s2104_s7 + $0x170] sm:$0xff] }
  0x42   : > { %1648 = vmatprep.mubr.f32.mxu1 %v252_v53  ;;  %v284_v53 = vld [vmem:[%s2104_s7 + $0x370] sm:$0xff] }
  0x44   : > { %1553 = vmatmul.mubr.f32.gmra.mrb[14].mxu0 %v189_v54  ;;  %v221_v54 = vld [vmem:[%s2104_s7 + $0x178] sm:$0xff] }
  0x45   : > { %1649 = vmatmul.mubr.f32.gmra.mrb[14].mxu1 %v253_v55  ;;  %1555 = vmatprep.mubr.f32.mxu0 %v190_v56  ;;  %v285_v55 = vld [vmem:[%s2104_s7 + $0x378] sm:$0xff]  ;;  %v222_v56 = vld [vmem:[%s2104_s7 + $0x180] sm:$0xff] }
  0x46   : > { %1651 = vmatprep.mubr.f32.mxu1 %v254_v57  ;;  %v286_v57 = vld [vmem:[%s2104_s7 + $0x380] sm:$0xff] }
  0x48   : > { %1556 = vmatmul.mubr.f32.gmra.mrb[16].mxu0 %v191_v58  ;;  %v223_v58 = vld [vmem:[%s2104_s7 + $0x188] sm:$0xff] }
  0x49   : > { %1652 = vmatmul.mubr.f32.gmra.mrb[16].mxu1 %v255_v59  ;;  %1558 = vmatprep.mubr.f32.mxu0 %v192_v60  ;;  %v287_v59 = vld [vmem:[%s2104_s7 + $0x388] sm:$0xff]  ;;  %v224_v60 = vld [vmem:[%s2104_s7 + $0x190] sm:$0xff] }
  0x4a   : > { %1654 = vmatprep.mubr.f32.mxu1 %v256_v61  ;;  %v288_v61 = vld [vmem:[%s2104_s7 + $0x390] sm:$0xff] }
  0x4c   : > { %1559 = vmatmul.mubr.f32.gmra.mrb[18].mxu0 %v193_v62  ;;  %v225_v62 = vld [vmem:[%s2104_s7 + $0x198] sm:$0xff] }
  0x4d   : > { %1655 = vmatmul.mubr.f32.gmra.mrb[18].mxu1 %v257_v63  ;;  %1561 = vmatprep.mubr.f32.mxu0 %v194_v0  ;;  %v289_v63 = vld [vmem:[%s2104_s7 + $0x398] sm:$0xff]  ;;  %v226_v0 = vld [vmem:[%s2104_s7 + $0x1a0] sm:$0xff] }
  0x4e   : > { %1657 = vmatprep.mubr.f32.mxu1 %v258_v1  ;;  %v290_v1 = vld [vmem:[%s2104_s7 + $0x3a0] sm:$0xff] }
  0x50   : > { %1562 = vmatmul.mubr.f32.gmra.mrb[20].mxu0 %v195_v2  ;;  %v227_v2 = vld [vmem:[%s2104_s7 + $0x1a8] sm:$0xff] }
  0x51   : > { %1658 = vmatmul.mubr.f32.gmra.mrb[20].mxu1 %v259_v3  ;;  %1564 = vmatprep.mubr.f32.mxu0 %v196_v4  ;;  %v291_v3 = vld [vmem:[%s2104_s7 + $0x3a8] sm:$0xff]  ;;  %v228_v4 = vld [vmem:[%s2104_s7 + $0x1b0] sm:$0xff] }
  0x52   : > { %1660 = vmatprep.mubr.f32.mxu1 %v260_v5  ;;  %v292_v5 = vld [vmem:[%s2104_s7 + $0x3b0] sm:$0xff] }
  0x54   : > { %1565 = vmatmul.mubr.f32.gmra.mrb[22].mxu0 %v197_v6  ;;  %v229_v6 = vld [vmem:[%s2104_s7 + $0x1b8] sm:$0xff] }
  0x55   : > { %1661 = vmatmul.mubr.f32.gmra.mrb[22].mxu1 %v261_v7  ;;  %1567 = vmatprep.mubr.f32.mxu0 %v198_v8  ;;  %v293_v7 = vld [vmem:[%s2104_s7 + $0x3b8] sm:$0xff]  ;;  %v230_v8 = vld [vmem:[%s2104_s7 + $0x1c0] sm:$0xff] }
  0x56   : > { %1663 = vmatprep.mubr.f32.mxu1 %v262_v9  ;;  %v294_v9 = vld [vmem:[%s2104_s7 + $0x3c0] sm:$0xff] }
  0x58   : > { %1568 = vmatmul.mubr.f32.gmra.mrb[24].mxu0 %v199_v10  ;;  %v231_v10 = vld [vmem:[%s2104_s7 + $0x1c8] sm:$0xff] }
  0x59   : > { %1664 = vmatmul.mubr.f32.gmra.mrb[24].mxu1 %v263_v11  ;;  %1570 = vmatprep.mubr.f32.mxu0 %v200_v12  ;;  %v295_v11 = vld [vmem:[%s2104_s7 + $0x3c8] sm:$0xff]  ;;  %v232_v12 = vld [vmem:[%s2104_s7 + $0x1d0] sm:$0xff] }
  0x5a   : > { %1666 = vmatprep.mubr.f32.mxu1 %v264_v13  ;;  %v296_v13 = vld [vmem:[%s2104_s7 + $0x3d0] sm:$0xff] }
  0x5c   : > { %1571 = vmatmul.mubr.f32.gmra.mrb[26].mxu0 %v201_v14  ;;  %v233_v14 = vld [vmem:[%s2104_s7 + $0x1d8] sm:$0xff] }
  0x5d   : > { %1667 = vmatmul.mubr.f32.gmra.mrb[26].mxu1 %v265_v15  ;;  %1573 = vmatprep.mubr.f32.mxu0 %v202_v16  ;;  %v297_v15 = vld [vmem:[%s2104_s7 + $0x3d8] sm:$0xff]  ;;  %v234_v16 = vld [vmem:[%s2104_s7 + $0x1e0] sm:$0xff] }
  0x5e   : > { %1669 = vmatprep.mubr.f32.mxu1 %v266_v17  ;;  %v298_v17 = vld [vmem:[%s2104_s7 + $0x3e0] sm:$0xff] }
  0x60   : > { %1574 = vmatmul.mubr.f32.gmra.mrb[28].mxu0 %v203_v18  ;;  %v235_v18 = vld [vmem:[%s2104_s7 + $0x1e8] sm:$0xff] }
  0x61   : > { %1670 = vmatmul.mubr.f32.gmra.mrb[28].mxu1 %v267_v19  ;;  %1576 = vmatprep.mubr.f32.mxu0 %v204_v20  ;;  %v299_v19 = vld [vmem:[%s2104_s7 + $0x3e8] sm:$0xff]  ;;  %v236_v20 = vld [vmem:[%s2104_s7 + $0x1f0] sm:$0xff] }
  0x62   : > { %1672 = vmatprep.mubr.f32.mxu1 %v268_v21  ;;  %v300_v21 = vld [vmem:[%s2104_s7 + $0x3f0] sm:$0xff] }
  0x64   : > { %1577 = vmatmul.mubr.f32.gmra.mrb[30].mxu0 %v205_v22  ;;  %v237_v22 = vld [vmem:[%s2104_s7 + $0x1f8] sm:$0xff] }
  0x65   : > { %1673 = vmatmul.mubr.f32.gmra.mrb[30].mxu1 %v269_v23  ;;  %1579 = vmatprep.mubr.f32.mxu0 %v206_v24  ;;  %v301_v23 = vld [vmem:[%s2104_s7 + $0x3f8] sm:$0xff]  ;;  %v2261_v24 = vld [vmem:[%s2664_s2] ss:$0 sm:$0xff] }
  0x66   : > { %1675 = vmatprep.mubr.f32.mxu1 %v270_v25 }
  0x68   : > { %1580 = vmatmul.mubr.f32.gmra.mrb[32].mxu0 %v207_v26 }
  0x69   : > { %1676 = vmatmul.mubr.f32.gmra.mrb[32].mxu1 %v271_v27  ;;  %1582 = vmatprep.mubr.f32.mxu0 %v208_v28 }
  0x6a   : > { %1678 = vmatprep.mubr.f32.mxu1 %v272_v29 }
  0x6c   : > { %1583 = vmatmul.mubr.f32.gmra.mrb[34].mxu0 %v209_v30 }
  0x6d   : > { %1679 = vmatmul.mubr.f32.gmra.mrb[34].mxu1 %v273_v31  ;;  %1585 = vmatprep.mubr.f32.mxu0 %v210_v32 }
  0x6e   : > { %1681 = vmatprep.mubr.f32.mxu1 %v274_v33 }
  0x70   : > { %1586 = vmatmul.mubr.f32.gmra.mrb[36].mxu0 %v211_v34 }
  0x71   : > { %1682 = vmatmul.mubr.f32.gmra.mrb[36].mxu1 %v275_v35  ;;  %1588 = vmatprep.mubr.f32.mxu0 %v212_v36 }
  0x72   : > { %1684 = vmatprep.mubr.f32.mxu1 %v276_v37 }
  0x74   : > { %1589 = vmatmul.mubr.f32.gmra.mrb[38].mxu0 %v213_v38 }
  0x75   : > { %1685 = vmatmul.mubr.f32.gmra.mrb[38].mxu1 %v277_v39  ;;  %1591 = vmatprep.mubr.f32.mxu0 %v214_v40 }
  0x76   : > { %1687 = vmatprep.mubr.f32.mxu1 %v278_v41 }
  0x78   : > { %1592 = vmatmul.mubr.f32.gmra.mrb[40].mxu0 %v215_v42 }
  0x79   : > { %1688 = vmatmul.mubr.f32.gmra.mrb[40].mxu1 %v279_v43  ;;  %1594 = vmatprep.mubr.f32.mxu0 %v216_v44 }
  0x7a   : > { %1690 = vmatprep.mubr.f32.mxu1 %v280_v45 }
  0x7c   : > { %1595 = vmatmul.mubr.f32.gmra.mrb[42].mxu0 %v217_v46 }
  0x7d   : > { %1691 = vmatmul.mubr.f32.gmra.mrb[42].mxu1 %v281_v47  ;;  %1597 = vmatprep.mubr.f32.mxu0 %v218_v48 }
  0x7e   : > { %1693 = vmatprep.mubr.f32.mxu1 %v282_v49 }
  0x80   : > { %1598 = vmatmul.mubr.f32.gmra.mrb[44].mxu0 %v219_v50 }
  0x81   : > { %1694 = vmatmul.mubr.f32.gmra.mrb[44].mxu1 %v283_v51  ;;  %1600 = vmatprep.mubr.f32.mxu0 %v220_v52 }
  0x82   : > { %1696 = vmatprep.mubr.f32.mxu1 %v284_v53 }
  0x84   : > { %1601 = vmatmul.mubr.f32.gmra.mrb[46].mxu0 %v221_v54 }
  0x85   : > { %1697 = vmatmul.mubr.f32.gmra.mrb[46].mxu1 %v285_v55  ;;  %1603 = vmatprep.mubr.f32.mxu0 %v222_v56 }
  0x86   : > { %1699 = vmatprep.mubr.f32.mxu1 %v286_v57 }
  0x88   : > { %1604 = vmatmul.mubr.f32.gmra.mrb[48].mxu0 %v223_v58 }
  0x89   : > { %1700 = vmatmul.mubr.f32.gmra.mrb[48].mxu1 %v287_v59  ;;  %1606 = vmatprep.mubr.f32.mxu0 %v224_v60 }
  0x8a   : > { %1702 = vmatprep.mubr.f32.mxu1 %v288_v61 }
  0x8c   : > { %1607 = vmatmul.mubr.f32.gmra.mrb[50].mxu0 %v225_v62 }
  0x8d   : > { %1703 = vmatmul.mubr.f32.gmra.mrb[50].mxu1 %v289_v63  ;;  %1609 = vmatprep.mubr.f32.mxu0 %v226_v0 }
  0x8e   : > { %1705 = vmatprep.mubr.f32.mxu1 %v290_v1 }
  0x90   : > { %1610 = vmatmul.mubr.f32.gmra.mrb[52].mxu0 %v227_v2 }
  0x91   : > { %1706 = vmatmul.mubr.f32.gmra.mrb[52].mxu1 %v291_v3  ;;  %1612 = vmatprep.mubr.f32.mxu0 %v228_v4 }
  0x92   : > { %1708 = vmatprep.mubr.f32.mxu1 %v292_v5 }
  0x94   : > { %1613 = vmatmul.mubr.f32.gmra.mrb[54].mxu0 %v229_v6 }
  0x95   : > { %1709 = vmatmul.mubr.f32.gmra.mrb[54].mxu1 %v293_v7  ;;  %1615 = vmatprep.mubr.f32.mxu0 %v230_v8 }
  0x96   : > { %1711 = vmatprep.mubr.f32.mxu1 %v294_v9 }
  0x98   : > { %1616 = vmatmul.mubr.f32.gmra.mrb[56].mxu0 %v231_v10 }
  0x99   : > { %1712 = vmatmul.mubr.f32.gmra.mrb[56].mxu1 %v295_v11  ;;  %1618 = vmatprep.mubr.f32.mxu0 %v232_v12 }
  0x9a   : > { %1714 = vmatprep.mubr.f32.mxu1 %v296_v13 }
  0x9c   : > { %1619 = vmatmul.mubr.f32.gmra.mrb[58].mxu0 %v233_v14 }
  0x9d   : > { %1715 = vmatmul.mubr.f32.gmra.mrb[58].mxu1 %v297_v15  ;;  %1621 = vmatprep.mubr.f32.mxu0 %v234_v16 }
  0x9e   : > { %1717 = vmatprep.mubr.f32.mxu1 %v298_v17 }
  0xa0   : > { %1622 = vmatmul.mubr.f32.gmra.mrb[60].mxu0 %v235_v18 }
  0xa1   : > { %1718 = vmatmul.mubr.f32.gmra.mrb[60].mxu1 %v299_v19  ;;  %1624 = vmatprep.mubr.f32.mxu0 %v236_v20 }
  0xa2   : > { %1720 = vmatprep.mubr.f32.mxu1 %v300_v21 }
  0xa4   : > { %1625 = vmatmul.mubr.f32.gmra.mrb[62].mxu0 %v237_v22 }
  0xa5   : > { %1721 = vmatmul.mubr.f32.gmra.mrb[62].mxu1 %v301_v23 }
  0xfb   : > { %v1533_v25 = vpop.f32.mrb[0].mxu0 }
  0xfc   : > { %v1629_v26 = vpop.f32.mrb[0].mxu1  ;;  %v397_v27 = vadd.f32 %v1533_v25, %v2261_v24  ;;  %v391_v29 = vpop.f32.mrb[1].mxu0 }
  0xfd   : > { %v717_v28 = vadd.f32 %v1629_v26, %v2261_v24  ;;  %v711_v30 = vpop.f32.mrb[1].mxu1  ;;  %v392_v31 = vadd.f32 %v2261_v24, %v391_v29 }
  0xfe   : > { %v712_v32 = vadd.f32 %v2261_v24, %v711_v30  ;;  %1779 = vtanh.f32 %v397_v27 }
  0xff   : > { %1781 = vtanh.f32 %v717_v28  ;;  %v1536_v33 = vpop.f32.mrb[2].mxu0 }
 0x100   : > { %v1632_v34 = vpop.f32.mrb[2].mxu1  ;;  %1783 = vtanh.f32 %v392_v31  ;;  %v407_v35 = vadd.f32 %v1536_v33, %v2261_v24  ;;  %v401_v37 = vpop.f32.mrb[3].mxu0 }
 0x101   : > { %v727_v36 = vadd.f32 %v1632_v34, %v2261_v24  ;;  %v721_v38 = vpop.f32.mrb[3].mxu1  ;;  %1785 = vtanh.f32 %v712_v32  ;;  %v402_v39 = vadd.f32 %v2261_v24, %v401_v37 }
 0x102   : > { %v722_v40 = vadd.f32 %v2261_v24, %v721_v38  ;;  %1787 = vtanh.f32 %v407_v35 }
 0x103   : > { %1789 = vtanh.f32 %v727_v36  ;;  %v1539_v41 = vpop.f32.mrb[4].mxu0 }
 0x104   : > { %v1635_v42 = vpop.f32.mrb[4].mxu1  ;;  %1791 = vtanh.f32 %v402_v39  ;;  %v417_v43 = vadd.f32 %v1539_v41, %v2261_v24  ;;  %v411_v45 = vpop.f32.mrb[5].mxu0 }
 0x105   : > { %v737_v44 = vadd.f32 %v1635_v42, %v2261_v24  ;;  %v731_v46 = vpop.f32.mrb[5].mxu1  ;;  %1793 = vtanh.f32 %v722_v40  ;;  %v412_v47 = vadd.f32 %v2261_v24, %v411_v45 }
 0x106   : > { %v732_v48 = vadd.f32 %v2261_v24, %v731_v46  ;;  %1795 = vtanh.f32 %v417_v43 }
 0x107   : > { %1797 = vtanh.f32 %v737_v44  ;;  %v1542_v49 = vpop.f32.mrb[6].mxu0 }
 0x108   : > { %v1638_v50 = vpop.f32.mrb[6].mxu1  ;;  %v1780_v51 = vpop.eup %1779  ;;  %1799 = vtanh.f32 %v412_v47  ;;  %v427_v52 = vadd.f32 %v1542_v49, %v2261_v24 }
 0x109   : > { %v747_v53 = vadd.f32 %v1638_v50, %v2261_v24  ;;  %v421_v54 = vpop.f32.mrb[7].mxu0  ;;  %v741_v55 = vpop.f32.mrb[7].mxu1  ;;  %1160 = vst.msk [vmem:[%s2280_s4 + $0x8] sm:$0xff] %vm1158_vm0, %v1780_v51  ;;  %1801 = vtanh.f32 %v732_v48 }
 0x10a   : > { %v1782_v56 = vpop.eup %1781  ;;  %v422_v57 = vadd.f32 %v2261_v24, %v421_v54  ;;  %v742_v58 = vadd.f32 %v2261_v24, %v741_v55  ;;  %1803 = vtanh.f32 %v427_v52 }
 0x10b   : > { %v1784_v59 = vpop.eup %1783  ;;  %1224 = vst.msk [vmem:[%s2280_s4 + $0x208] sm:$0xff] %vm1158_vm0, %v1782_v56  ;;  %1805 = vtanh.f32 %v747_v53  ;;  %v1545_v61 = vpop.f32.mrb[8].mxu0 }
 0x10c   : > { %v1786_v60 = vpop.eup %1785  ;;  %1159 = vst.msk [vmem:[%s2280_s4] sm:$0xff] %vm1158_vm0, %v1784_v59  ;;  %v1641_v62 = vpop.f32.mrb[8].mxu1  ;;  %1807 = vtanh.f32 %v422_v57  ;;  %v437_v0 = vadd.f32 %v1545_v61, %v2261_v24 }
 0x10d   : > { %v1788_v63 = vpop.eup %1787  ;;  %1223 = vst.msk [vmem:[%s2280_s4 + $0x200] sm:$0xff] %vm1158_vm0, %v1786_v60  ;;  %v757_v1 = vadd.f32 %v1641_v62, %v2261_v24  ;;  %v431_v2 = vpop.f32.mrb[9].mxu0  ;;  %1809 = vtanh.f32 %v742_v58 }
 0x10e   : > { %v751_v3 = vpop.f32.mrb[9].mxu1  ;;  %v1790_v4 = vpop.eup %1789  ;;  %1162 = vst.msk [vmem:[%s2280_s4 + $0x18] sm:$0xff] %vm1158_vm0, %v1788_v63  ;;  %v432_v5 = vadd.f32 %v2261_v24, %v431_v2  ;;  %1811 = vtanh.f32 %v437_v0 }
 0x10f   : > { %v752_v6 = vadd.f32 %v2261_v24, %v751_v3  ;;  %v1792_v7 = vpop.eup %1791  ;;  %1226 = vst.msk [vmem:[%s2280_s4 + $0x218] sm:$0xff] %vm1158_vm0, %v1790_v4  ;;  %1813 = vtanh.f32 %v757_v1  ;;  %v1548_v9 = vpop.f32.mrb[10].mxu0 }
 0x110   : > { %v1794_v8 = vpop.eup %1793  ;;  %1161 = vst.msk [vmem:[%s2280_s4 + $0x10] sm:$0xff] %vm1158_vm0, %v1792_v7  ;;  %v1644_v10 = vpop.f32.mrb[10].mxu1  ;;  %1815 = vtanh.f32 %v432_v5  ;;  %v447_v12 = vadd.f32 %v1548_v9, %v2261_v24 }
 0x111   : > { %v1796_v11 = vpop.eup %1795  ;;  %1225 = vst.msk [vmem:[%s2280_s4 + $0x210] sm:$0xff] %vm1158_vm0, %v1794_v8  ;;  %v767_v13 = vadd.f32 %v1644_v10, %v2261_v24  ;;  %v441_v14 = vpop.f32.mrb[11].mxu0  ;;  %1817 = vtanh.f32 %v752_v6 }
 0x112   : > { %v761_v15 = vpop.f32.mrb[11].mxu1  ;;  %v1798_v16 = vpop.eup %1797  ;;  %1164 = vst.msk [vmem:[%s2280_s4 + $0x28] sm:$0xff] %vm1158_vm0, %v1796_v11  ;;  %v442_v17 = vadd.f32 %v2261_v24, %v441_v14  ;;  %1819 = vtanh.f32 %v447_v12 }
 0x113   : > { %v762_v18 = vadd.f32 %v2261_v24, %v761_v15  ;;  %v1800_v19 = vpop.eup %1799  ;;  %1228 = vst.msk [vmem:[%s2280_s4 + $0x228] sm:$0xff] %vm1158_vm0, %v1798_v16  ;;  %1821 = vtanh.f32 %v767_v13  ;;  %v1551_v21 = vpop.f32.mrb[12].mxu0 }
 0x114   : > { %v1802_v20 = vpop.eup %1801  ;;  %1163 = vst.msk [vmem:[%s2280_s4 + $0x20] sm:$0xff] %vm1158_vm0, %v1800_v19  ;;  %v1647_v22 = vpop.f32.mrb[12].mxu1  ;;  %1823 = vtanh.f32 %v442_v17  ;;  %v457_v25 = vadd.f32 %v1551_v21, %v2261_v24 }
 0x115   : > { %v1804_v23 = vpop.eup %1803  ;;  %1227 = vst.msk [vmem:[%s2280_s4 + $0x220] sm:$0xff] %vm1158_vm0, %v1802_v20  ;;  %v777_v26 = vadd.f32 %v1647_v22, %v2261_v24  ;;  %v451_v27 = vpop.f32.mrb[13].mxu0  ;;  %1825 = vtanh.f32 %v762_v18 }
 0x116   : > { %v771_v28 = vpop.f32.mrb[13].mxu1  ;;  %v1806_v29 = vpop.eup %1805  ;;  %1166 = vst.msk [vmem:[%s2280_s4 + $0x38] sm:$0xff] %vm1158_vm0, %v1804_v23  ;;  %v452_v30 = vadd.f32 %v2261_v24, %v451_v27  ;;  %1827 = vtanh.f32 %v457_v25 }
 0x117   : > { %v772_v31 = vadd.f32 %v2261_v24, %v771_v28  ;;  %v1808_v32 = vpop.eup %1807  ;;  %1230 = vst.msk [vmem:[%s2280_s4 + $0x238] sm:$0xff] %vm1158_vm0, %v1806_v29  ;;  %1829 = vtanh.f32 %v777_v26  ;;  %v1554_v34 = vpop.f32.mrb[14].mxu0 }
 0x118   : > { %v1810_v33 = vpop.eup %1809  ;;  %1165 = vst.msk [vmem:[%s2280_s4 + $0x30] sm:$0xff] %vm1158_vm0, %v1808_v32  ;;  %v1650_v35 = vpop.f32.mrb[14].mxu1  ;;  %1831 = vtanh.f32 %v452_v30  ;;  %v467_v37 = vadd.f32 %v1554_v34, %v2261_v24 }
 0x119   : > { %v1812_v36 = vpop.eup %1811  ;;  %1229 = vst.msk [vmem:[%s2280_s4 + $0x230] sm:$0xff] %vm1158_vm0, %v1810_v33  ;;  %v787_v38 = vadd.f32 %v1650_v35, %v2261_v24  ;;  %v461_v39 = vpop.f32.mrb[15].mxu0  ;;  %1833 = vtanh.f32 %v772_v31 }
 0x11a   : > { %v781_v40 = vpop.f32.mrb[15].mxu1  ;;  %v1814_v41 = vpop.eup %1813  ;;  %1168 = vst.msk [vmem:[%s2280_s4 + $0x48] sm:$0xff] %vm1158_vm0, %v1812_v36  ;;  %v462_v42 = vadd.f32 %v2261_v24, %v461_v39  ;;  %1835 = vtanh.f32 %v467_v37 }
 0x11b   : > { %v782_v43 = vadd.f32 %v2261_v24, %v781_v40  ;;  %v1816_v44 = vpop.eup %1815  ;;  %1232 = vst.msk [vmem:[%s2280_s4 + $0x248] sm:$0xff] %vm1158_vm0, %v1814_v41  ;;  %1837 = vtanh.f32 %v787_v38  ;;  %v1557_v46 = vpop.f32.mrb[16].mxu0 }
 0x11c   : > { %v1818_v45 = vpop.eup %1817  ;;  %1167 = vst.msk [vmem:[%s2280_s4 + $0x40] sm:$0xff] %vm1158_vm0, %v1816_v44  ;;  %v1653_v47 = vpop.f32.mrb[16].mxu1  ;;  %1839 = vtanh.f32 %v462_v42  ;;  %v477_v49 = vadd.f32 %v1557_v46, %v2261_v24 }
 0x11d   : > { %v1820_v48 = vpop.eup %1819  ;;  %1231 = vst.msk [vmem:[%s2280_s4 + $0x240] sm:$0xff] %vm1158_vm0, %v1818_v45  ;;  %v797_v50 = vadd.f32 %v1653_v47, %v2261_v24  ;;  %v471_v51 = vpop.f32.mrb[17].mxu0  ;;  %1841 = vtanh.f32 %v782_v43 }
 0x11e   : > { %v791_v52 = vpop.f32.mrb[17].mxu1  ;;  %v1822_v53 = vpop.eup %1821  ;;  %1170 = vst.msk [vmem:[%s2280_s4 + $0x58] sm:$0xff] %vm1158_vm0, %v1820_v48  ;;  %v472_v54 = vadd.f32 %v2261_v24, %v471_v51  ;;  %1843 = vtanh.f32 %v477_v49 }
 0x11f   : > { %v792_v55 = vadd.f32 %v2261_v24, %v791_v52  ;;  %v1824_v56 = vpop.eup %1823  ;;  %1234 = vst.msk [vmem:[%s2280_s4 + $0x258] sm:$0xff] %vm1158_vm0, %v1822_v53  ;;  %1845 = vtanh.f32 %v797_v50  ;;  %v1560_v58 = vpop.f32.mrb[18].mxu0 }
 0x120   : > { %v1826_v57 = vpop.eup %1825  ;;  %1169 = vst.msk [vmem:[%s2280_s4 + $0x50] sm:$0xff] %vm1158_vm0, %v1824_v56  ;;  %v1656_v59 = vpop.f32.mrb[18].mxu1  ;;  %1847 = vtanh.f32 %v472_v54  ;;  %v487_v61 = vadd.f32 %v1560_v58, %v2261_v24 }
 0x121   : > { %v1828_v60 = vpop.eup %1827  ;;  %1233 = vst.msk [vmem:[%s2280_s4 + $0x250] sm:$0xff] %vm1158_vm0, %v1826_v57  ;;  %v807_v62 = vadd.f32 %v1656_v59, %v2261_v24  ;;  %v481_v63 = vpop.f32.mrb[19].mxu0  ;;  %1849 = vtanh.f32 %v792_v55 }
 0x122   : > { %v801_v0 = vpop.f32.mrb[19].mxu1  ;;  %v1830_v1 = vpop.eup %1829  ;;  %1172 = vst.msk [vmem:[%s2280_s4 + $0x68] sm:$0xff] %vm1158_vm0, %v1828_v60  ;;  %v482_v2 = vadd.f32 %v2261_v24, %v481_v63  ;;  %1851 = vtanh.f32 %v487_v61 }
 0x123   : > { %v802_v3 = vadd.f32 %v2261_v24, %v801_v0  ;;  %v1832_v4 = vpop.eup %1831  ;;  %1236 = vst.msk [vmem:[%s2280_s4 + $0x268] sm:$0xff] %vm1158_vm0, %v1830_v1  ;;  %1853 = vtanh.f32 %v807_v62  ;;  %v1563_v6 = vpop.f32.mrb[20].mxu0 }
 0x124   : > { %v1834_v5 = vpop.eup %1833  ;;  %1171 = vst.msk [vmem:[%s2280_s4 + $0x60] sm:$0xff] %vm1158_vm0, %v1832_v4  ;;  %v1659_v7 = vpop.f32.mrb[20].mxu1  ;;  %1855 = vtanh.f32 %v482_v2  ;;  %v497_v9 = vadd.f32 %v1563_v6, %v2261_v24 }
 0x125   : > { %v1836_v8 = vpop.eup %1835  ;;  %1235 = vst.msk [vmem:[%s2280_s4 + $0x260] sm:$0xff] %vm1158_vm0, %v1834_v5  ;;  %v817_v10 = vadd.f32 %v1659_v7, %v2261_v24  ;;  %v491_v11 = vpop.f32.mrb[21].mxu0  ;;  %1857 = vtanh.f32 %v802_v3 }
 0x126   : > { %v811_v12 = vpop.f32.mrb[21].mxu1  ;;  %v1838_v13 = vpop.eup %1837  ;;  %1174 = vst.msk [vmem:[%s2280_s4 + $0x78] sm:$0xff] %vm1158_vm0, %v1836_v8  ;;  %v492_v14 = vadd.f32 %v2261_v24, %v491_v11  ;;  %1859 = vtanh.f32 %v497_v9 }
 0x127   : > { %v812_v15 = vadd.f32 %v2261_v24, %v811_v12  ;;  %v1840_v16 = vpop.eup %1839  ;;  %1238 = vst.msk [vmem:[%s2280_s4 + $0x278] sm:$0xff] %vm1158_vm0, %v1838_v13  ;;  %1861 = vtanh.f32 %v817_v10  ;;  %v1566_v18 = vpop.f32.mrb[22].mxu0 }
 0x128   : > { %v1842_v17 = vpop.eup %1841  ;;  %1173 = vst.msk [vmem:[%s2280_s4 + $0x70] sm:$0xff] %vm1158_vm0, %v1840_v16  ;;  %v1662_v19 = vpop.f32.mrb[22].mxu1  ;;  %1863 = vtanh.f32 %v492_v14  ;;  %v507_v21 = vadd.f32 %v1566_v18, %v2261_v24 }
 0x129   : > { %v1844_v20 = vpop.eup %1843  ;;  %1237 = vst.msk [vmem:[%s2280_s4 + $0x270] sm:$0xff] %vm1158_vm0, %v1842_v17  ;;  %v827_v22 = vadd.f32 %v1662_v19, %v2261_v24  ;;  %v501_v23 = vpop.f32.mrb[23].mxu0  ;;  %1865 = vtanh.f32 %v812_v15 }
 0x12a   : > { %v821_v25 = vpop.f32.mrb[23].mxu1  ;;  %v1846_v26 = vpop.eup %1845  ;;  %1176 = vst.msk [vmem:[%s2280_s4 + $0x88] sm:$0xff] %vm1158_vm0, %v1844_v20  ;;  %v502_v27 = vadd.f32 %v2261_v24, %v501_v23  ;;  %1867 = vtanh.f32 %v507_v21 }
 0x12b   : > { %v822_v28 = vadd.f32 %v2261_v24, %v821_v25  ;;  %v1848_v29 = vpop.eup %1847  ;;  %1240 = vst.msk [vmem:[%s2280_s4 + $0x288] sm:$0xff] %vm1158_vm0, %v1846_v26  ;;  %1869 = vtanh.f32 %v827_v22  ;;  %v1569_v31 = vpop.f32.mrb[24].mxu0 }
 0x12c   : > { %v1850_v30 = vpop.eup %1849  ;;  %1175 = vst.msk [vmem:[%s2280_s4 + $0x80] sm:$0xff] %vm1158_vm0, %v1848_v29  ;;  %v1665_v32 = vpop.f32.mrb[24].mxu1  ;;  %1871 = vtanh.f32 %v502_v27  ;;  %v517_v34 = vadd.f32 %v1569_v31, %v2261_v24 }
 0x12d   : > { %v1852_v33 = vpop.eup %1851  ;;  %1239 = vst.msk [vmem:[%s2280_s4 + $0x280] sm:$0xff] %vm1158_vm0, %v1850_v30  ;;  %v837_v35 = vadd.f32 %v1665_v32, %v2261_v24  ;;  %v511_v36 = vpop.f32.mrb[25].mxu0  ;;  %1873 = vtanh.f32 %v822_v28 }
 0x12e   : > { %v831_v37 = vpop.f32.mrb[25].mxu1  ;;  %v1854_v38 = vpop.eup %1853  ;;  %1178 = vst.msk [vmem:[%s2280_s4 + $0x98] sm:$0xff] %vm1158_vm0, %v1852_v33  ;;  %v512_v39 = vadd.f32 %v2261_v24, %v511_v36  ;;  %1875 = vtanh.f32 %v517_v34 }
 0x12f   : > { %v832_v40 = vadd.f32 %v2261_v24, %v831_v37  ;;  %v1856_v41 = vpop.eup %1855  ;;  %1242 = vst.msk [vmem:[%s2280_s4 + $0x298] sm:$0xff] %vm1158_vm0, %v1854_v38  ;;  %1877 = vtanh.f32 %v837_v35  ;;  %v1572_v43 = vpop.f32.mrb[26].mxu0 }
 0x130   : > { %v1858_v42 = vpop.eup %1857  ;;  %1177 = vst.msk [vmem:[%s2280_s4 + $0x90] sm:$0xff] %vm1158_vm0, %v1856_v41  ;;  %v1668_v44 = vpop.f32.mrb[26].mxu1  ;;  %1879 = vtanh.f32 %v512_v39  ;;  %v527_v46 = vadd.f32 %v1572_v43, %v2261_v24 }
 0x131   : > { %v1860_v45 = vpop.eup %1859  ;;  %1241 = vst.msk [vmem:[%s2280_s4 + $0x290] sm:$0xff] %vm1158_vm0, %v1858_v42  ;;  %v847_v47 = vadd.f32 %v1668_v44, %v2261_v24  ;;  %v521_v48 = vpop.f32.mrb[27].mxu0  ;;  %1881 = vtanh.f32 %v832_v40 }
 0x132   : > { %v841_v49 = vpop.f32.mrb[27].mxu1  ;;  %v1862_v50 = vpop.eup %1861  ;;  %1180 = vst.msk [vmem:[%s2280_s4 + $0xa8] sm:$0xff] %vm1158_vm0, %v1860_v45  ;;  %v522_v51 = vadd.f32 %v2261_v24, %v521_v48  ;;  %1883 = vtanh.f32 %v527_v46 }
 0x133   : > { %v842_v52 = vadd.f32 %v2261_v24, %v841_v49  ;;  %v1864_v53 = vpop.eup %1863  ;;  %1244 = vst.msk [vmem:[%s2280_s4 + $0x2a8] sm:$0xff] %vm1158_vm0, %v1862_v50  ;;  %1885 = vtanh.f32 %v847_v47  ;;  %v1575_v55 = vpop.f32.mrb[28].mxu0 }
 0x134   : > { %v1866_v54 = vpop.eup %1865  ;;  %1179 = vst.msk [vmem:[%s2280_s4 + $0xa0] sm:$0xff] %vm1158_vm0, %v1864_v53  ;;  %v1671_v56 = vpop.f32.mrb[28].mxu1  ;;  %1887 = vtanh.f32 %v522_v51  ;;  %v537_v58 = vadd.f32 %v1575_v55, %v2261_v24 }
 0x135   : > { %v1868_v57 = vpop.eup %1867  ;;  %1243 = vst.msk [vmem:[%s2280_s4 + $0x2a0] sm:$0xff] %vm1158_vm0, %v1866_v54  ;;  %v857_v59 = vadd.f32 %v1671_v56, %v2261_v24  ;;  %v531_v60 = vpop.f32.mrb[29].mxu0  ;;  %1889 = vtanh.f32 %v842_v52 }
 0x136   : > { %v851_v61 = vpop.f32.mrb[29].mxu1  ;;  %v1870_v62 = vpop.eup %1869  ;;  %1182 = vst.msk [vmem:[%s2280_s4 + $0xb8] sm:$0xff] %vm1158_vm0, %v1868_v57  ;;  %v532_v63 = vadd.f32 %v2261_v24, %v531_v60  ;;  %1891 = vtanh.f32 %v537_v58 }
 0x137   : > { %v852_v0 = vadd.f32 %v2261_v24, %v851_v61  ;;  %v1872_v1 = vpop.eup %1871  ;;  %1246 = vst.msk [vmem:[%s2280_s4 + $0x2b8] sm:$0xff] %vm1158_vm0, %v1870_v62  ;;  %1893 = vtanh.f32 %v857_v59  ;;  %v1578_v3 = vpop.f32.mrb[30].mxu0 }
 0x138   : > { %v1874_v2 = vpop.eup %1873  ;;  %1181 = vst.msk [vmem:[%s2280_s4 + $0xb0] sm:$0xff] %vm1158_vm0, %v1872_v1  ;;  %v1674_v4 = vpop.f32.mrb[30].mxu1  ;;  %1895 = vtanh.f32 %v532_v63  ;;  %v547_v6 = vadd.f32 %v1578_v3, %v2261_v24 }
 0x139   : > { %v1876_v5 = vpop.eup %1875  ;;  %1245 = vst.msk [vmem:[%s2280_s4 + $0x2b0] sm:$0xff] %vm1158_vm0, %v1874_v2  ;;  %v867_v7 = vadd.f32 %v1674_v4, %v2261_v24  ;;  %v541_v8 = vpop.f32.mrb[31].mxu0  ;;  %1897 = vtanh.f32 %v852_v0 }
 0x13a   : > { %v861_v9 = vpop.f32.mrb[31].mxu1  ;;  %v1878_v10 = vpop.eup %1877  ;;  %1184 = vst.msk [vmem:[%s2280_s4 + $0xc8] sm:$0xff] %vm1158_vm0, %v1876_v5  ;;  %v542_v11 = vadd.f32 %v2261_v24, %v541_v8  ;;  %1899 = vtanh.f32 %v547_v6 }
 0x13b   : > { %v862_v12 = vadd.f32 %v2261_v24, %v861_v9  ;;  %v1880_v13 = vpop.eup %1879  ;;  %1248 = vst.msk [vmem:[%s2280_s4 + $0x2c8] sm:$0xff] %vm1158_vm0, %v1878_v10  ;;  %1901 = vtanh.f32 %v867_v7  ;;  %v1581_v15 = vpop.f32.mrb[32].mxu0 }
 0x13c   : > { %v1882_v14 = vpop.eup %1881  ;;  %1183 = vst.msk [vmem:[%s2280_s4 + $0xc0] sm:$0xff] %vm1158_vm0, %v1880_v13  ;;  %v1677_v16 = vpop.f32.mrb[32].mxu1  ;;  %1903 = vtanh.f32 %v542_v11  ;;  %v557_v18 = vadd.f32 %v1581_v15, %v2261_v24 }
 0x13d   : > { %v1884_v17 = vpop.eup %1883  ;;  %1247 = vst.msk [vmem:[%s2280_s4 + $0x2c0] sm:$0xff] %vm1158_vm0, %v1882_v14  ;;  %v877_v19 = vadd.f32 %v1677_v16, %v2261_v24  ;;  %v551_v20 = vpop.f32.mrb[33].mxu0  ;;  %1905 = vtanh.f32 %v862_v12 }
 0x13e   : > { %v871_v21 = vpop.f32.mrb[33].mxu1  ;;  %v1886_v22 = vpop.eup %1885  ;;  %1186 = vst.msk [vmem:[%s2280_s4 + $0xd8] sm:$0xff] %vm1158_vm0, %v1884_v17  ;;  %v552_v23 = vadd.f32 %v2261_v24, %v551_v20  ;;  %1907 = vtanh.f32 %v557_v18 }
 0x13f   : > { %v872_v25 = vadd.f32 %v2261_v24, %v871_v21  ;;  %v1888_v26 = vpop.eup %1887  ;;  %1250 = vst.msk [vmem:[%s2280_s4 + $0x2d8] sm:$0xff] %vm1158_vm0, %v1886_v22  ;;  %1909 = vtanh.f32 %v877_v19  ;;  %v1584_v28 = vpop.f32.mrb[34].mxu0 }
 0x140   : > { %v1890_v27 = vpop.eup %1889  ;;  %1185 = vst.msk [vmem:[%s2280_s4 + $0xd0] sm:$0xff] %vm1158_vm0, %v1888_v26  ;;  %v1680_v29 = vpop.f32.mrb[34].mxu1  ;;  %1911 = vtanh.f32 %v552_v23  ;;  %v567_v31 = vadd.f32 %v1584_v28, %v2261_v24 }
 0x141   : > { %v1892_v30 = vpop.eup %1891  ;;  %1249 = vst.msk [vmem:[%s2280_s4 + $0x2d0] sm:$0xff] %vm1158_vm0, %v1890_v27  ;;  %v887_v32 = vadd.f32 %v1680_v29, %v2261_v24  ;;  %v561_v33 = vpop.f32.mrb[35].mxu0  ;;  %1913 = vtanh.f32 %v872_v25 }
 0x142   : > { %v881_v34 = vpop.f32.mrb[35].mxu1  ;;  %v1894_v35 = vpop.eup %1893  ;;  %1188 = vst.msk [vmem:[%s2280_s4 + $0xe8] sm:$0xff] %vm1158_vm0, %v1892_v30  ;;  %v562_v36 = vadd.f32 %v2261_v24, %v561_v33  ;;  %1915 = vtanh.f32 %v567_v31 }
 0x143   : > { %v882_v37 = vadd.f32 %v2261_v24, %v881_v34  ;;  %v1896_v38 = vpop.eup %1895  ;;  %1252 = vst.msk [vmem:[%s2280_s4 + $0x2e8] sm:$0xff] %vm1158_vm0, %v1894_v35  ;;  %1917 = vtanh.f32 %v887_v32  ;;  %v1587_v40 = vpop.f32.mrb[36].mxu0 }
 0x144   : > { %v1898_v39 = vpop.eup %1897  ;;  %1187 = vst.msk [vmem:[%s2280_s4 + $0xe0] sm:$0xff] %vm1158_vm0, %v1896_v38  ;;  %v1683_v41 = vpop.f32.mrb[36].mxu1  ;;  %1919 = vtanh.f32 %v562_v36  ;;  %v577_v43 = vadd.f32 %v1587_v40, %v2261_v24 }
 0x145   : > { %v1900_v42 = vpop.eup %1899  ;;  %1251 = vst.msk [vmem:[%s2280_s4 + $0x2e0] sm:$0xff] %vm1158_vm0, %v1898_v39  ;;  %v897_v44 = vadd.f32 %v1683_v41, %v2261_v24  ;;  %v571_v45 = vpop.f32.mrb[37].mxu0  ;;  %1921 = vtanh.f32 %v882_v37 }
 0x146   : > { %v891_v46 = vpop.f32.mrb[37].mxu1  ;;  %v1902_v47 = vpop.eup %1901  ;;  %1190 = vst.msk [vmem:[%s2280_s4 + $0xf8] sm:$0xff] %vm1158_vm0, %v1900_v42  ;;  %v572_v48 = vadd.f32 %v2261_v24, %v571_v45  ;;  %1923 = vtanh.f32 %v577_v43 }
 0x147   : > { %v892_v49 = vadd.f32 %v2261_v24, %v891_v46  ;;  %v1904_v50 = vpop.eup %1903  ;;  %1254 = vst.msk [vmem:[%s2280_s4 + $0x2f8] sm:$0xff] %vm1158_vm0, %v1902_v47  ;;  %1925 = vtanh.f32 %v897_v44  ;;  %v1590_v52 = vpop.f32.mrb[38].mxu0 }
 0x148   : > { %v1906_v51 = vpop.eup %1905  ;;  %1189 = vst.msk [vmem:[%s2280_s4 + $0xf0] sm:$0xff] %vm1158_vm0, %v1904_v50  ;;  %v1686_v53 = vpop.f32.mrb[38].mxu1  ;;  %1927 = vtanh.f32 %v572_v48  ;;  %v587_v55 = vadd.f32 %v1590_v52, %v2261_v24 }
 0x149   : > { %v1908_v54 = vpop.eup %1907  ;;  %1253 = vst.msk [vmem:[%s2280_s4 + $0x2f0] sm:$0xff] %vm1158_vm0, %v1906_v51  ;;  %v907_v56 = vadd.f32 %v1686_v53, %v2261_v24  ;;  %v581_v57 = vpop.f32.mrb[39].mxu0  ;;  %1929 = vtanh.f32 %v892_v49 }
 0x14a   : > { %v901_v58 = vpop.f32.mrb[39].mxu1  ;;  %v1910_v59 = vpop.eup %1909  ;;  %1192 = vst.msk [vmem:[%s2280_s4 + $0x108] sm:$0xff] %vm1158_vm0, %v1908_v54  ;;  %v582_v60 = vadd.f32 %v2261_v24, %v581_v57  ;;  %1931 = vtanh.f32 %v587_v55 }
 0x14b   : > { %v902_v61 = vadd.f32 %v2261_v24, %v901_v58  ;;  %v1912_v62 = vpop.eup %1911  ;;  %1256 = vst.msk [vmem:[%s2280_s4 + $0x308] sm:$0xff] %vm1158_vm0, %v1910_v59  ;;  %1933 = vtanh.f32 %v907_v56  ;;  %v1593_v0 = vpop.f32.mrb[40].mxu0 }
 0x14c   : > { %v1914_v63 = vpop.eup %1913  ;;  %1191 = vst.msk [vmem:[%s2280_s4 + $0x100] sm:$0xff] %vm1158_vm0, %v1912_v62  ;;  %v1689_v1 = vpop.f32.mrb[40].mxu1  ;;  %1935 = vtanh.f32 %v582_v60  ;;  %v597_v3 = vadd.f32 %v1593_v0, %v2261_v24 }
 0x14d   : > { %v1916_v2 = vpop.eup %1915  ;;  %1255 = vst.msk [vmem:[%s2280_s4 + $0x300] sm:$0xff] %vm1158_vm0, %v1914_v63  ;;  %v917_v4 = vadd.f32 %v1689_v1, %v2261_v24  ;;  %v591_v5 = vpop.f32.mrb[41].mxu0  ;;  %1937 = vtanh.f32 %v902_v61 }
 0x14e   : > { %v911_v6 = vpop.f32.mrb[41].mxu1  ;;  %v1918_v7 = vpop.eup %1917  ;;  %1194 = vst.msk [vmem:[%s2280_s4 + $0x118] sm:$0xff] %vm1158_vm0, %v1916_v2  ;;  %v592_v8 = vadd.f32 %v2261_v24, %v591_v5  ;;  %1939 = vtanh.f32 %v597_v3 }
 0x14f   : > { %v912_v9 = vadd.f32 %v2261_v24, %v911_v6  ;;  %v1920_v10 = vpop.eup %1919  ;;  %1258 = vst.msk [vmem:[%s2280_s4 + $0x318] sm:$0xff] %vm1158_vm0, %v1918_v7  ;;  %1941 = vtanh.f32 %v917_v4  ;;  %v1596_v12 = vpop.f32.mrb[42].mxu0 }
 0x150   : > { %v1922_v11 = vpop.eup %1921  ;;  %1193 = vst.msk [vmem:[%s2280_s4 + $0x110] sm:$0xff] %vm1158_vm0, %v1920_v10  ;;  %v1692_v13 = vpop.f32.mrb[42].mxu1  ;;  %1943 = vtanh.f32 %v592_v8  ;;  %v607_v15 = vadd.f32 %v1596_v12, %v2261_v24 }
 0x151   : > { %v1924_v14 = vpop.eup %1923  ;;  %1257 = vst.msk [vmem:[%s2280_s4 + $0x310] sm:$0xff] %vm1158_vm0, %v1922_v11  ;;  %v927_v16 = vadd.f32 %v1692_v13, %v2261_v24  ;;  %v601_v17 = vpop.f32.mrb[43].mxu0  ;;  %1945 = vtanh.f32 %v912_v9 }
 0x152   : > { %v921_v18 = vpop.f32.mrb[43].mxu1  ;;  %v1926_v19 = vpop.eup %1925  ;;  %1196 = vst.msk [vmem:[%s2280_s4 + $0x128] sm:$0xff] %vm1158_vm0, %v1924_v14  ;;  %v602_v20 = vadd.f32 %v2261_v24, %v601_v17  ;;  %1947 = vtanh.f32 %v607_v15 }
 0x153   : > { %v922_v21 = vadd.f32 %v2261_v24, %v921_v18  ;;  %v1928_v22 = vpop.eup %1927  ;;  %1260 = vst.msk [vmem:[%s2280_s4 + $0x328] sm:$0xff] %vm1158_vm0, %v1926_v19  ;;  %1949 = vtanh.f32 %v927_v16  ;;  %v1599_v25 = vpop.f32.mrb[44].mxu0 }
 0x154   : > { %v1930_v23 = vpop.eup %1929  ;;  %1195 = vst.msk [vmem:[%s2280_s4 + $0x120] sm:$0xff] %vm1158_vm0, %v1928_v22  ;;  %v1695_v26 = vpop.f32.mrb[44].mxu1  ;;  %1951 = vtanh.f32 %v602_v20  ;;  %v617_v28 = vadd.f32 %v1599_v25, %v2261_v24 }
 0x155   : > { %v1932_v27 = vpop.eup %1931  ;;  %1259 = vst.msk [vmem:[%s2280_s4 + $0x320] sm:$0xff] %vm1158_vm0, %v1930_v23  ;;  %v937_v29 = vadd.f32 %v1695_v26, %v2261_v24  ;;  %v611_v30 = vpop.f32.mrb[45].mxu0  ;;  %1953 = vtanh.f32 %v922_v21 }
 0x156   : > { %v931_v31 = vpop.f32.mrb[45].mxu1  ;;  %v1934_v32 = vpop.eup %1933  ;;  %1198 = vst.msk [vmem:[%s2280_s4 + $0x138] sm:$0xff] %vm1158_vm0, %v1932_v27  ;;  %v612_v33 = vadd.f32 %v2261_v24, %v611_v30  ;;  %1955 = vtanh.f32 %v617_v28 }
 0x157   : > { %v932_v34 = vadd.f32 %v2261_v24, %v931_v31  ;;  %v1936_v35 = vpop.eup %1935  ;;  %1262 = vst.msk [vmem:[%s2280_s4 + $0x338] sm:$0xff] %vm1158_vm0, %v1934_v32  ;;  %1957 = vtanh.f32 %v937_v29  ;;  %v1602_v37 = vpop.f32.mrb[46].mxu0 }
 0x158   : > { %v1938_v36 = vpop.eup %1937  ;;  %1197 = vst.msk [vmem:[%s2280_s4 + $0x130] sm:$0xff] %vm1158_vm0, %v1936_v35  ;;  %v1698_v38 = vpop.f32.mrb[46].mxu1  ;;  %1959 = vtanh.f32 %v612_v33  ;;  %v627_v40 = vadd.f32 %v1602_v37, %v2261_v24 }
 0x159   : > { %v1940_v39 = vpop.eup %1939  ;;  %1261 = vst.msk [vmem:[%s2280_s4 + $0x330] sm:$0xff] %vm1158_vm0, %v1938_v36  ;;  %v947_v41 = vadd.f32 %v1698_v38, %v2261_v24  ;;  %v621_v42 = vpop.f32.mrb[47].mxu0  ;;  %1961 = vtanh.f32 %v932_v34 }
 0x15a   : > { %v941_v43 = vpop.f32.mrb[47].mxu1  ;;  %v1942_v44 = vpop.eup %1941  ;;  %1200 = vst.msk [vmem:[%s2280_s4 + $0x148] sm:$0xff] %vm1158_vm0, %v1940_v39  ;;  %v622_v45 = vadd.f32 %v2261_v24, %v621_v42  ;;  %1963 = vtanh.f32 %v627_v40 }
 0x15b   : > { %v942_v46 = vadd.f32 %v2261_v24, %v941_v43  ;;  %v1944_v47 = vpop.eup %1943  ;;  %1264 = vst.msk [vmem:[%s2280_s4 + $0x348] sm:$0xff] %vm1158_vm0, %v1942_v44  ;;  %1965 = vtanh.f32 %v947_v41  ;;  %v1605_v49 = vpop.f32.mrb[48].mxu0 }
 0x15c   : > { %v1946_v48 = vpop.eup %1945  ;;  %1199 = vst.msk [vmem:[%s2280_s4 + $0x140] sm:$0xff] %vm1158_vm0, %v1944_v47  ;;  %v1701_v50 = vpop.f32.mrb[48].mxu1  ;;  %1967 = vtanh.f32 %v622_v45  ;;  %v637_v52 = vadd.f32 %v1605_v49, %v2261_v24 }
 0x15d   : > { %v1948_v51 = vpop.eup %1947  ;;  %1263 = vst.msk [vmem:[%s2280_s4 + $0x340] sm:$0xff] %vm1158_vm0, %v1946_v48  ;;  %v957_v53 = vadd.f32 %v1701_v50, %v2261_v24  ;;  %v631_v54 = vpop.f32.mrb[49].mxu0  ;;  %1969 = vtanh.f32 %v942_v46 }
 0x15e   : > { %v951_v55 = vpop.f32.mrb[49].mxu1  ;;  %v1950_v56 = vpop.eup %1949  ;;  %1202 = vst.msk [vmem:[%s2280_s4 + $0x158] sm:$0xff] %vm1158_vm0, %v1948_v51  ;;  %v632_v57 = vadd.f32 %v2261_v24, %v631_v54  ;;  %1971 = vtanh.f32 %v637_v52 }
 0x15f   : > { %v952_v58 = vadd.f32 %v2261_v24, %v951_v55  ;;  %v1952_v59 = vpop.eup %1951  ;;  %1266 = vst.msk [vmem:[%s2280_s4 + $0x358] sm:$0xff] %vm1158_vm0, %v1950_v56  ;;  %1973 = vtanh.f32 %v957_v53  ;;  %v1608_v61 = vpop.f32.mrb[50].mxu0 }
 0x160   : > { %v1954_v60 = vpop.eup %1953  ;;  %1201 = vst.msk [vmem:[%s2280_s4 + $0x150] sm:$0xff] %vm1158_vm0, %v1952_v59  ;;  %v1704_v62 = vpop.f32.mrb[50].mxu1  ;;  %1975 = vtanh.f32 %v632_v57  ;;  %v647_v0 = vadd.f32 %v1608_v61, %v2261_v24 }
 0x161   : > { %v1956_v63 = vpop.eup %1955  ;;  %1265 = vst.msk [vmem:[%s2280_s4 + $0x350] sm:$0xff] %vm1158_vm0, %v1954_v60  ;;  %v967_v1 = vadd.f32 %v1704_v62, %v2261_v24  ;;  %v641_v2 = vpop.f32.mrb[51].mxu0  ;;  %1977 = vtanh.f32 %v952_v58 }
 0x162   : > { %v961_v3 = vpop.f32.mrb[51].mxu1  ;;  %v1958_v4 = vpop.eup %1957  ;;  %1204 = vst.msk [vmem:[%s2280_s4 + $0x168] sm:$0xff] %vm1158_vm0, %v1956_v63  ;;  %v642_v5 = vadd.f32 %v2261_v24, %v641_v2  ;;  %1979 = vtanh.f32 %v647_v0 }
 0x163   : > { %v962_v6 = vadd.f32 %v2261_v24, %v961_v3  ;;  %v1960_v7 = vpop.eup %1959  ;;  %1268 = vst.msk [vmem:[%s2280_s4 + $0x368] sm:$0xff] %vm1158_vm0, %v1958_v4  ;;  %1981 = vtanh.f32 %v967_v1  ;;  %v1611_v9 = vpop.f32.mrb[52].mxu0 }
 0x164   : > { %v1962_v8 = vpop.eup %1961  ;;  %1203 = vst.msk [vmem:[%s2280_s4 + $0x160] sm:$0xff] %vm1158_vm0, %v1960_v7  ;;  %v1707_v10 = vpop.f32.mrb[52].mxu1  ;;  %1983 = vtanh.f32 %v642_v5  ;;  %v657_v12 = vadd.f32 %v1611_v9, %v2261_v24 }
 0x165   : > { %v1964_v11 = vpop.eup %1963  ;;  %1267 = vst.msk [vmem:[%s2280_s4 + $0x360] sm:$0xff] %vm1158_vm0, %v1962_v8  ;;  %v977_v13 = vadd.f32 %v1707_v10, %v2261_v24  ;;  %v651_v14 = vpop.f32.mrb[53].mxu0  ;;  %1985 = vtanh.f32 %v962_v6 }
 0x166   : > { %v971_v15 = vpop.f32.mrb[53].mxu1  ;;  %v1966_v16 = vpop.eup %1965  ;;  %1206 = vst.msk [vmem:[%s2280_s4 + $0x178] sm:$0xff] %vm1158_vm0, %v1964_v11  ;;  %v652_v17 = vadd.f32 %v2261_v24, %v651_v14  ;;  %1987 = vtanh.f32 %v657_v12 }
 0x167   : > { %v972_v18 = vadd.f32 %v2261_v24, %v971_v15  ;;  %v1968_v19 = vpop.eup %1967  ;;  %1270 = vst.msk [vmem:[%s2280_s4 + $0x378] sm:$0xff] %vm1158_vm0, %v1966_v16  ;;  %1989 = vtanh.f32 %v977_v13  ;;  %v1614_v21 = vpop.f32.mrb[54].mxu0  ;;  %v2573_v24 = vld [vmem:[%s2664_s2] ss:$0 sm:$0xff] }
 0x168   : > { %v1970_v20 = vpop.eup %1969  ;;  %1205 = vst.msk [vmem:[%s2280_s4 + $0x170] sm:$0xff] %vm1158_vm0, %v1968_v19  ;;  %v1710_v22 = vpop.f32.mrb[54].mxu1  ;;  %1991 = vtanh.f32 %v652_v17  ;;  %v667_v25 = vadd.f32 %v2573_v24, %v1614_v21 }
 0x169   : > { %v1972_v23 = vpop.eup %1971  ;;  %1269 = vst.msk [vmem:[%s2280_s4 + $0x370] sm:$0xff] %vm1158_vm0, %v1970_v20  ;;  %v987_v26 = vadd.f32 %v2573_v24, %v1710_v22  ;;  %v661_v27 = vpop.f32.mrb[55].mxu0  ;;  %1993 = vtanh.f32 %v972_v18 }
 0x16a   : > { %v981_v28 = vpop.f32.mrb[55].mxu1  ;;  %v1974_v29 = vpop.eup %1973  ;;  %1208 = vst.msk [vmem:[%s2280_s4 + $0x188] sm:$0xff] %vm1158_vm0, %v1972_v23  ;;  %v662_v30 = vadd.f32 %v2573_v24, %v661_v27  ;;  %1995 = vtanh.f32 %v667_v25 }
 0x16b   : > { %v982_v31 = vadd.f32 %v2573_v24, %v981_v28  ;;  %v1976_v32 = vpop.eup %1975  ;;  %1272 = vst.msk [vmem:[%s2280_s4 + $0x388] sm:$0xff] %vm1158_vm0, %v1974_v29  ;;  %1997 = vtanh.f32 %v987_v26  ;;  %v1617_v34 = vpop.f32.mrb[56].mxu0 }
 0x16c   : > { %v1978_v33 = vpop.eup %1977  ;;  %1207 = vst.msk [vmem:[%s2280_s4 + $0x180] sm:$0xff] %vm1158_vm0, %v1976_v32  ;;  %v1713_v35 = vpop.f32.mrb[56].mxu1  ;;  %1999 = vtanh.f32 %v662_v30  ;;  %v677_v37 = vadd.f32 %v2573_v24, %v1617_v34 }
 0x16d   : > { %v1980_v36 = vpop.eup %1979  ;;  %1271 = vst.msk [vmem:[%s2280_s4 + $0x380] sm:$0xff] %vm1158_vm0, %v1978_v33  ;;  %v997_v38 = vadd.f32 %v2573_v24, %v1713_v35  ;;  %v671_v39 = vpop.f32.mrb[57].mxu0  ;;  %2001 = vtanh.f32 %v982_v31 }
 0x16e   : > { %v991_v40 = vpop.f32.mrb[57].mxu1  ;;  %v1982_v41 = vpop.eup %1981  ;;  %1210 = vst.msk [vmem:[%s2280_s4 + $0x198] sm:$0xff] %vm1158_vm0, %v1980_v36  ;;  %v672_v42 = vadd.f32 %v2573_v24, %v671_v39  ;;  %2003 = vtanh.f32 %v677_v37 }
 0x16f   : > { %v992_v43 = vadd.f32 %v2573_v24, %v991_v40  ;;  %v1984_v44 = vpop.eup %1983  ;;  %1274 = vst.msk [vmem:[%s2280_s4 + $0x398] sm:$0xff] %vm1158_vm0, %v1982_v41  ;;  %2005 = vtanh.f32 %v997_v38  ;;  %v1620_v46 = vpop.f32.mrb[58].mxu0 }
 0x170   : > { %v1986_v45 = vpop.eup %1985  ;;  %1209 = vst.msk [vmem:[%s2280_s4 + $0x190] sm:$0xff] %vm1158_vm0, %v1984_v44  ;;  %v1716_v47 = vpop.f32.mrb[58].mxu1  ;;  %2007 = vtanh.f32 %v672_v42  ;;  %v687_v49 = vadd.f32 %v2573_v24, %v1620_v46 }
 0x171   : > { %v1988_v48 = vpop.eup %1987  ;;  %1273 = vst.msk [vmem:[%s2280_s4 + $0x390] sm:$0xff] %vm1158_vm0, %v1986_v45  ;;  %v1007_v50 = vadd.f32 %v2573_v24, %v1716_v47  ;;  %v681_v51 = vpop.f32.mrb[59].mxu0  ;;  %2009 = vtanh.f32 %v992_v43 }
 0x172   : > { %v1001_v52 = vpop.f32.mrb[59].mxu1  ;;  %v1990_v53 = vpop.eup %1989  ;;  %1212 = vst.msk [vmem:[%s2280_s4 + $0x1a8] sm:$0xff] %vm1158_vm0, %v1988_v48  ;;  %v682_v54 = vadd.f32 %v2573_v24, %v681_v51  ;;  %2011 = vtanh.f32 %v687_v49 }
 0x173   : > { %v1002_v55 = vadd.f32 %v2573_v24, %v1001_v52  ;;  %v1992_v56 = vpop.eup %1991  ;;  %1276 = vst.msk [vmem:[%s2280_s4 + $0x3a8] sm:$0xff] %vm1158_vm0, %v1990_v53  ;;  %2013 = vtanh.f32 %v1007_v50  ;;  %v1623_v58 = vpop.f32.mrb[60].mxu0 }
 0x174   : > { %v1994_v57 = vpop.eup %1993  ;;  %1211 = vst.msk [vmem:[%s2280_s4 + $0x1a0] sm:$0xff] %vm1158_vm0, %v1992_v56  ;;  %v1719_v59 = vpop.f32.mrb[60].mxu1  ;;  %2015 = vtanh.f32 %v682_v54  ;;  %v697_v61 = vadd.f32 %v2573_v24, %v1623_v58 }
 0x175   : > { %v1996_v60 = vpop.eup %1995  ;;  %1275 = vst.msk [vmem:[%s2280_s4 + $0x3a0] sm:$0xff] %vm1158_vm0, %v1994_v57  ;;  %v1017_v62 = vadd.f32 %v2573_v24, %v1719_v59  ;;  %v691_v63 = vpop.f32.mrb[61].mxu0  ;;  %2017 = vtanh.f32 %v1002_v55 }
 0x176   : > { %v1011_v0 = vpop.f32.mrb[61].mxu1  ;;  %v1998_v1 = vpop.eup %1997  ;;  %1214 = vst.msk [vmem:[%s2280_s4 + $0x1b8] sm:$0xff] %vm1158_vm0, %v1996_v60  ;;  %v692_v2 = vadd.f32 %v2573_v24, %v691_v63  ;;  %2019 = vtanh.f32 %v697_v61 }
 0x177   : > { %v1012_v3 = vadd.f32 %v2573_v24, %v1011_v0  ;;  %v2000_v4 = vpop.eup %1999  ;;  %1278 = vst.msk [vmem:[%s2280_s4 + $0x3b8] sm:$0xff] %vm1158_vm0, %v1998_v1  ;;  %2021 = vtanh.f32 %v1017_v62  ;;  %v1626_v6 = vpop.f32.mrb[62].mxu0 }
 0x178   : > { %v2002_v5 = vpop.eup %2001  ;;  %1213 = vst.msk [vmem:[%s2280_s4 + $0x1b0] sm:$0xff] %vm1158_vm0, %v2000_v4  ;;  %v1722_v7 = vpop.f32.mrb[62].mxu1  ;;  %2023 = vtanh.f32 %v692_v2  ;;  %v707_v9 = vadd.f32 %v2573_v24, %v1626_v6 }
 0x179   : > { %v2004_v8 = vpop.eup %2003  ;;  %1277 = vst.msk [vmem:[%s2280_s4 + $0x3b0] sm:$0xff] %vm1158_vm0, %v2002_v5  ;;  %v1027_v10 = vadd.f32 %v2573_v24, %v1722_v7  ;;  %v701_v11 = vpop.f32.mrb[63].mxu0  ;;  %2025 = vtanh.f32 %v1012_v3 }
 0x17a   : > { %v1021_v12 = vpop.f32.mrb[63].mxu1  ;;  %v2006_v13 = vpop.eup %2005  ;;  %1216 = vst.msk [vmem:[%s2280_s4 + $0x1c8] sm:$0xff] %vm1158_vm0, %v2004_v8  ;;  %v702_v14 = vadd.f32 %v2573_v24, %v701_v11  ;;  %2027 = vtanh.f32 %v707_v9 }
 0x17b   : > { %v1022_v15 = vadd.f32 %v2573_v24, %v1021_v12  ;;  %v2008_v16 = vpop.eup %2007  ;;  %1280 = vst.msk [vmem:[%s2280_s4 + $0x3c8] sm:$0xff] %vm1158_vm0, %v2006_v13  ;;  %2029 = vtanh.f32 %v1027_v10 }
 0x17c   : > { %v2010_v17 = vpop.eup %2009  ;;  %1215 = vst.msk [vmem:[%s2280_s4 + $0x1c0] sm:$0xff] %vm1158_vm0, %v2008_v16  ;;  %2031 = vtanh.f32 %v702_v14 }
 0x17d   : > { %v2012_v18 = vpop.eup %2011  ;;  %1279 = vst.msk [vmem:[%s2280_s4 + $0x3c0] sm:$0xff] %vm1158_vm0, %v2010_v17  ;;  %2033 = vtanh.f32 %v1022_v15 }
 0x17e   : > { %v2014_v19 = vpop.eup %2013  ;;  %1218 = vst.msk [vmem:[%s2280_s4 + $0x1d8] sm:$0xff] %vm1158_vm0, %v2012_v18 }
 0x17f   : > { %v2016_v20 = vpop.eup %2015  ;;  %1282 = vst.msk [vmem:[%s2280_s4 + $0x3d8] sm:$0xff] %vm1158_vm0, %v2014_v19 }
 0x180   : > { %v2018_v21 = vpop.eup %2017  ;;  %1217 = vst.msk [vmem:[%s2280_s4 + $0x1d0] sm:$0xff] %vm1158_vm0, %v2016_v20 }
 0x181   : > { %v2020_v22 = vpop.eup %2019  ;;  %1281 = vst.msk [vmem:[%s2280_s4 + $0x3d0] sm:$0xff] %vm1158_vm0, %v2018_v21 }
 0x182   : > { %v2022_v23 = vpop.eup %2021  ;;  %1220 = vst.msk [vmem:[%s2280_s4 + $0x1e8] sm:$0xff] %vm1158_vm0, %v2020_v22 }
 0x183   : > { %v2024_v24 = vpop.eup %2023  ;;  %1284 = vst.msk [vmem:[%s2280_s4 + $0x3e8] sm:$0xff] %vm1158_vm0, %v2022_v23 }
 0x184   : > { %v2026_v25 = vpop.eup %2025  ;;  %1219 = vst.msk [vmem:[%s2280_s4 + $0x1e0] sm:$0xff] %vm1158_vm0, %v2024_v24 }
 0x185   : > { %v2028_v26 = vpop.eup %2027  ;;  %1283 = vst.msk [vmem:[%s2280_s4 + $0x3e0] sm:$0xff] %vm1158_vm0, %v2026_v25 }
 0x186   : > { %v2030_v27 = vpop.eup %2029  ;;  %1222 = vst.msk [vmem:[%s2280_s4 + $0x1f8] sm:$0xff] %vm1158_vm0, %v2028_v26 }
 0x187   : > { %v2032_v28 = vpop.eup %2031  ;;  %1286 = vst.msk [vmem:[%s2280_s4 + $0x3f8] sm:$0xff] %vm1158_vm0, %v2030_v27 }
 0x188   : > { %v2034_v29 = vpop.eup %2033  ;;  %1221 = vst.msk [vmem:[%s2280_s4 + $0x1f0] sm:$0xff] %vm1158_vm0, %v2032_v28 }
 0x189   : > { %1285 = vst.msk [vmem:[%s2280_s4 + $0x3f0] sm:$0xff] %vm1158_vm0, %v2034_v29 }
 0x18a PF: > { %s13_s12 = sadd.s32 1, %s2042_s12  }
 0x18b   : > { %p10_p4 = scmp.ge.s32.totalorder %s13_s12, 4  }
 0x18d   :  { %12 = sbr.rel (!%p10_p4) target bundleno = 1 (0x1), region = 62 }

</bundles_post_ra>
